<compile_context>
chip_gen: v7x
topology: tpu7x:2x2x1
jax: 0.10.0
libtpu: 0.0.40
codegen_flags: <defaults>
</compile_context>

<pallas_src>
import functools

import jax
import jax.numpy as jnp
import numpy as np
from jax.experimental import pallas as pl
from jax.experimental.pallas import tpu as pltpu


def _predictor_kernel(n_layers, emb_ref, *refs):
    """Wavefront LSTM stack + final projection (bf16 MXU operands, f32 accumulate).

    refs = [w_ih_0(Din_p,4Hp) bf16, w_hh_0(Hp,4Hp) bf16, b_0(1,4Hp) f32, ... per layer,
            fc_w(Hp,Vp) bf16, fc_b(1,Vp) f32,                               # inputs
            logits_ref(T*Bp,Vp) f32, hn_ref(L,Bp,Hp) f32, cn_ref(L,Bp,Hp) f32,  # outputs
            seq_ref(T*Bp,Hp) f32, gx0_ref(T*Bp,4Hp) f32]                    # scratch
    Sequence layout is time-major: row index = t*Bp + b.
    Gate order inside the 4Hp axis is (i, f, o, g) (reordered host-side).
    """
    L = n_layers
    n_w = 3 * L + 2
    weights = refs[:n_w]
    logits_ref, hn_ref, cn_ref = refs[n_w:n_w + 3]
    seq_ref, gx0_ref = refs[n_w + 3], refs[n_w + 4]

    Bp = hn_ref.shape[1]
    Hp = hn_ref.shape[2]
    TB = emb_ref.shape[0]
    T = TB // Bp

    w_ih = [weights[3 * l + 0][...] for l in range(L)]     # (Din_p, 4Hp) bf16
    w_hh = [weights[3 * l + 1][...] for l in range(L)]     # (Hp, 4Hp)    bf16
    b = [weights[3 * l + 2][...] for l in range(L)]        # (1, 4Hp)     f32 (b_ih+b_hh)
    fc_w = weights[3 * L][...]                              # (Hp, Vp)     bf16
    fc_b = weights[3 * L + 1][...]                          # (1, Vp)      f32

    # Hoisted layer-0 input projection: one (T*Bp,Ep)@(Ep,4Hp) MXU matmul, staged
    # through VMEM scratch so per-step reads are cheap full-tile loads.
    gx0_ref[...] = jnp.dot(emb_ref[...], w_ih[0],
                           preferred_element_type=jnp.float32) + b[0]

    zeros = jnp.zeros((Bp, Hp), jnp.float32)
    h = [zeros] * L                     # f32 carries (one (8,128) vreg each at toy size)
    c = [zeros] * L
    out_h = [zeros] * L                 # layer l's output at its latest computed timestep

    def lstm_step(g, c_prev):
        # Gate order (i, f, o, g): one sigmoid over the contiguous 3*Hp block,
        # one tanh over the g block, one tanh(c) -> 3 EUP pushes per step.
        sig = jax.nn.sigmoid(g[:, :3 * Hp])
        i_g = sig[:, 0 * Hp:1 * Hp]
        f_g = sig[:, 1 * Hp:2 * Hp]
        o_g = sig[:, 2 * Hp:3 * Hp]
        g_g = jnp.tanh(g[:, 3 * Hp:4 * Hp])
        c_new = f_g * c_prev + i_g * g_g                    # strictly f32 (v5e-safe)
        h_new = o_g * jnp.tanh(c_new)
        return h_new, c_new

    # Wavefront / diagonal schedule: at diagonal step d, layer l processes timestep
    # t = d - l, so the L recurrence chains are independent and can overlap in the
    # MXU/EUP pipelines instead of running strictly layer-after-layer.
    # TODO(synk): switch the unrolled Python loops to lax.fori_loop (unroll=4..8)
    # carrying (h, c) once T grows beyond ~32, to bound vreg live ranges.
    for d in range(T + L - 1):
        prev_out = list(out_h)          # snapshot: layer outputs from diagonal step d-1
        for l in range(L):
            t = d - l
            if t < 0 or t >= T:
                continue
            # Recurrent matmul (bf16 operands, f32 accumulate). TODO(synk): keep this
            # matmul in f32 on v6e/v7x if long-T drift vs. the f32 reference matters.
            hh = jnp.dot(h[l].astype(jnp.bfloat16), w_hh[l],
                         preferred_element_type=jnp.float32)
            if l == 0:
                g = gx0_ref[pl.ds(t * Bp, Bp), :] + hh
            else:
                g = (jnp.dot(prev_out[l - 1].astype(jnp.bfloat16), w_ih[l],
                             preferred_element_type=jnp.float32) + hh + b[l])
            h[l], c[l] = lstm_step(g, c[l])
            out_h[l] = h[l]
            if l == L - 1:
                # Full-(8,128)-tile unmasked f32 store (Bp % 8 == 0, Hp % 128 == 0).
                seq_ref[pl.ds(t * Bp, Bp), :] = h[l]

    for l in range(L):
        hn_ref[l, :, :] = h[l]
        cn_ref[l, :, :] = c[l]

    # Final projection: one lane-dense (T*Bp,Hp)@(Hp,Vp) matmul, full-slab store.
    # TODO(synk): for production vocab sizes, tile Vp with a grid/BlockSpec (and/or
    # emit bf16 logits) so the logits slab pipelines instead of sitting resident.
    logits_ref[...] = jnp.dot(seq_ref[...].astype(jnp.bfloat16), fc_w,
                              preferred_element_type=jnp.float32) + fc_b


def _round_up(x, m):
    return (x + m - 1) // m * m


# PyTorch LSTM gate order along the 4H axis is (i, f, g, o); we repack to (i, f, o, g).
_GATE_SRC_ORDER = (0, 1, 3, 2)


def _pack_gate_matrix(w, H, Hp, din_p):
    """w:(4H,Din) PyTorch layout -> (din_p,4Hp) transposed, gate-reordered, zero-padded."""
    din = w.shape[1]
    out = jnp.zeros((din_p, 4 * Hp), jnp.float32)
    for k, s in enumerate(_GATE_SRC_ORDER):
        out = out.at[:din, k * Hp:k * Hp + H].set(w[s * H:(s + 1) * H, :].T)
    return out


def _pack_gate_bias(b_ih, b_hh, H, Hp):
    """(1,4H)+(1,4H) -> fused (1,4Hp), gate-reordered, zero-padded (pad lanes stay 0)."""
    b = (b_ih + b_hh).reshape(-1)
    out = jnp.zeros((1, 4 * Hp), jnp.float32)
    for k, s in enumerate(_GATE_SRC_ORDER):
        out = out.at[0, k * Hp:k * Hp + H].set(b[s * H:(s + 1) * H])
    return out


def init_params(key, vocab, embed_dim, hidden_dim, n_layers, output_dim):
    """Deterministic synthetic init (PyTorch-like uniform ranges), f32 / PyTorch layout."""
    params = {}
    k = 1.0 / np.sqrt(hidden_dim)
    keys = jax.random.split(key, 4 * n_layers + 3)
    params["embed"] = jax.random.normal(keys[0], (vocab, embed_dim), jnp.float32)
    for l in range(n_layers):
        din = embed_dim if l == 0 else hidden_dim
        params[f"w_ih_{l}"] = jax.random.uniform(keys[1 + 4 * l], (4 * hidden_dim, din),
                                                 jnp.float32, -k, k)
        params[f"w_hh_{l}"] = jax.random.uniform(keys[2 + 4 * l], (4 * hidden_dim, hidden_dim),
                                                 jnp.float32, -k, k)
        params[f"b_ih_{l}"] = jax.random.uniform(keys[3 + 4 * l], (1, 4 * hidden_dim),
                                                 jnp.float32, -k, k)
        params[f"b_hh_{l}"] = jax.random.uniform(keys[4 + 4 * l], (1, 4 * hidden_dim),
                                                 jnp.float32, -k, k)
    kf = 1.0 / np.sqrt(hidden_dim)
    params["fc_w"] = jax.random.uniform(keys[-2], (output_dim, hidden_dim), jnp.float32, -kf, kf)
    params["fc_b"] = jax.random.uniform(keys[-1], (1, output_dim), jnp.float32, -kf, kf)
    return params


def predictor_forward(params, x_ids, bos_idx, n_layers, hidden_dim):
    B, S = x_ids.shape
    T = S + 1
    H = hidden_dim
    E = params["embed"].shape[1]
    output_dim = params["fc_w"].shape[0]

    Bp = _round_up(B, 8)            # sublane granularity for f32 rows
    Hp = _round_up(H, 128)          # lane granularity for gate slices / h,c state
    Ep = _round_up(E, 128)          # lane-dense layer-0 input projection
    Vp = _round_up(output_dim, 128)  # lane-dense padded logits width

    # Prepend BOS + embedding gather (plain-JAX glue, outside the kernel).
    ids = jnp.concatenate([jnp.full((B, 1), bos_idx, x_ids.dtype), x_ids], axis=1)   # (B, T)
    emb = jnp.take(params["embed"], ids, axis=0)                                     # (B, T, E)
    emb_p = jnp.zeros((Bp, T, Ep), jnp.float32).at[:B, :, :E].set(emb)
    # Time-major flat layout: row = t*Bp + b; bf16 MXU operand.
    emb_tm = jnp.transpose(emb_p, (1, 0, 2)).reshape(T * Bp, Ep).astype(jnp.bfloat16)

    # Host-side weight prep: transpose, gate-reorder to (i,f,o,g), zero-pad to
    # (lane/sublane)-dense shapes, fuse biases, cast MXU operands to bf16.
    # Zero pad rows/cols guarantee padded h/c lanes stay exactly 0 in the recurrence.
    inputs = [emb_tm]
    for l in range(n_layers):
        din_p = Ep if l == 0 else Hp
        inputs.append(_pack_gate_matrix(params[f"w_ih_{l}"], H, Hp, din_p).astype(jnp.bfloat16))
        inputs.append(_pack_gate_matrix(params[f"w_hh_{l}"], H, Hp, Hp).astype(jnp.bfloat16))
        inputs.append(_pack_gate_bias(params[f"b_ih_{l}"], params[f"b_hh_{l}"], H, Hp))
    fc_w_p = jnp.zeros((Hp, Vp), jnp.float32).at[:H, :output_dim].set(params["fc_w"].T)
    fc_b_p = jnp.zeros((1, Vp), jnp.float32).at[:, :output_dim].set(params["fc_b"])
    inputs.append(fc_w_p.astype(jnp.bfloat16))                                       # (Hp, Vp)
    inputs.append(fc_b_p)                                                            # (1, Vp)

    vmem = pl.BlockSpec(memory_space=pltpu.MemorySpace.VMEM)
    out_shapes = (
        jax.ShapeDtypeStruct((T * Bp, Vp), jnp.float32),          # time-major padded logits
        jax.ShapeDtypeStruct((n_layers, Bp, Hp), jnp.float32),    # hn (padded)
        jax.ShapeDtypeStruct((n_layers, Bp, Hp), jnp.float32),    # cn (padded)
    )
    scratch_shapes = [
        pltpu.VMEM((T * Bp, Hp), jnp.float32),        # last-layer sequence (full-tile stores)
        pltpu.VMEM((T * Bp, 4 * Hp), jnp.float32),    # hoisted layer-0 gates
    ]

    # Size scoped VMEM from the actual buffers (+headroom); use the device's real
    # VMEM capacity as the cap instead of unconditionally clamping to 64 MiB.
    def _nbytes(shape, dtype):
        return int(np.prod(shape)) * jnp.dtype(dtype).itemsize
    total = sum(_nbytes(a.shape, a.dtype) for a in inputs)
    total += sum(_nbytes(s.shape, s.dtype) for s in out_shapes)
    total += sum(_nbytes(s.shape, s.dtype) for s in scratch_shapes)
    try:
        vmem_cap = int(getattr(pltpu.get_tpu_info(), "vmem_capacity_bytes", 64 << 20))
    except Exception:
        vmem_cap = 64 << 20
    vmem_limit = int(min(vmem_cap, max(4 << 20, 2 * total + (1 << 20))))

    # TODO(synk): for production sizes add a "parallel" grid axis over batch (v7x 2-TC)
    # and BlockSpec-tile fc_w/logits over Vp (and chunk gx0 over time for v7x's 64 MiB).
    kernel = functools.partial(_predictor_kernel, n_layers)
    logits_tm, hn_p, cn_p = pl.pallas_call(
        kernel,
        out_shape=out_shapes,
        in_specs=[vmem] * len(inputs),
        out_specs=(vmem, vmem, vmem),
        scratch_shapes=scratch_shapes,
        compiler_params=pltpu.CompilerParams(vmem_limit_bytes=vmem_limit),
    )(*inputs)

    # Un-pad + back to batch-major (layout plumbing outside the kernel).
    logits = logits_tm.reshape(T, Bp, Vp)[:, :B, :output_dim].transpose(1, 0, 2)
    hn = hn_p[:, :B, :H]
    cn = cn_p[:, :B, :H]
    return logits, (hn, cn)


def reference_forward(params, x_ids, bos_idx, n_layers, hidden_dim):
    """Pure-JAX f32 reference of the PyTorch forward for validation."""
    B, S = x_ids.shape
    H = hidden_dim
    ids = jnp.concatenate([jnp.full((B, 1), bos_idx, x_ids.dtype), x_ids], axis=1)
    x = jnp.take(params["embed"], ids, axis=0).astype(jnp.float32)
    hn_l, cn_l = [], []
    for l in range(n_layers):
        w_ih = params[f"w_ih_{l}"]; w_hh = params[f"w_hh_{l}"]
        b = params[f"b_ih_{l}"][0] + params[f"b_hh_{l}"][0]
        h = jnp.zeros((B, H), jnp.float32)
        c = jnp.zeros((B, H), jnp.float32)
        outs = []
        for t in range(x.shape[1]):
            g = x[:, t, :] @ w_ih.T + h @ w_hh.T + b
            i_g = jax.nn.sigmoid(g[:, :H]); f_g = jax.nn.sigmoid(g[:, H:2 * H])
            g_g = jnp.tanh(g[:, 2 * H:3 * H]); o_g = jax.nn.sigmoid(g[:, 3 * H:])
            c = f_g * c + i_g * g_g
            h = o_g * jnp.tanh(c)
            outs.append(h)
        x = jnp.stack(outs, axis=1)
        hn_l.append(h); cn_l.append(c)
    logits = x @ params["fc_w"].T + params["fc_b"][0]
    return logits, (jnp.stack(hn_l), jnp.stack(cn_l))


if __name__ == "__main__":
    B, S = 2, 8
    VOCAB, EMBED, HIDDEN, LAYERS = 16, 32, 32, 2
    OUTPUT = VOCAB + 1          # vocab + blank (blank last)
    BOS = 0

    key = jax.random.PRNGKey(0)
    params = init_params(key, VOCAB, EMBED, HIDDEN, LAYERS, OUTPUT)
    x_ids = jax.random.randint(jax.random.fold_in(key, 123), (B, S), 0, VOCAB, dtype=jnp.int32)

    logits, (hn, cn) = predictor_forward(params, x_ids, BOS, LAYERS, HIDDEN)
    jax.block_until_ready((logits, hn, cn))

    assert logits.shape == (B, S + 1, OUTPUT)
    assert hn.shape == (LAYERS, B, HIDDEN) and cn.shape == (LAYERS, B, HIDDEN)

    ref_logits, (ref_hn, ref_cn) = reference_forward(params, x_ids, BOS, LAYERS, HIDDEN)
    np.testing.assert_allclose(np.asarray(logits), np.asarray(ref_logits), rtol=2e-2, atol=2e-2)
    np.testing.assert_allclose(np.asarray(hn), np.asarray(ref_hn), rtol=2e-2, atol=2e-2)
    np.testing.assert_allclose(np.asarray(cn), np.asarray(ref_cn), rtol=2e-2, atol=2e-2)

    print("KERNEL_OK")
</pallas_src>

<mosaic_0001>
module attributes {stable_mosaic.version = 11 : i64} {
  func.func @_predictor_kernel(%arg0: memref<72x128xbf16, #tpu.memory_space<vmem>>, %arg1: memref<128x512xbf16, #tpu.memory_space<vmem>>, %arg2: memref<128x512xbf16, #tpu.memory_space<vmem>>, %arg3: memref<1x512xf32, #tpu.memory_space<vmem>>, %arg4: memref<128x512xbf16, #tpu.memory_space<vmem>>, %arg5: memref<128x512xbf16, #tpu.memory_space<vmem>>, %arg6: memref<1x512xf32, #tpu.memory_space<vmem>>, %arg7: memref<128x128xbf16, #tpu.memory_space<vmem>>, %arg8: memref<1x128xf32, #tpu.memory_space<vmem>>, %arg9: memref<72x128xf32, #tpu.memory_space<vmem>>, %arg10: memref<2x8x128xf32, #tpu.memory_space<vmem>>, %arg11: memref<2x8x128xf32, #tpu.memory_space<vmem>>, %arg12: memref<72x128xf32, #tpu.memory_space<vmem>>, %arg13: memref<72x512xf32, #tpu.memory_space<vmem>>) attributes {dimension_semantics = [], scalar_prefetch = 0 : i64, scratch_operands = 2 : i64, tpu.core_type = #tpu.core_type<tc>} {
    %c0 = arith.constant 0 : index
    %c0_0 = arith.constant 0 : index
    %0 = vector.load %arg1[%c0, %c0_0] : memref<128x512xbf16, #tpu.memory_space<vmem>>, vector<128x512xbf16>
    %c0_1 = arith.constant 0 : index
    %c0_2 = arith.constant 0 : index
    %1 = vector.load %arg4[%c0_1, %c0_2] : memref<128x512xbf16, #tpu.memory_space<vmem>>, vector<128x512xbf16>
    %c0_3 = arith.constant 0 : index
    %c0_4 = arith.constant 0 : index
    %2 = vector.load %arg2[%c0_3, %c0_4] : memref<128x512xbf16, #tpu.memory_space<vmem>>, vector<128x512xbf16>
    %c0_5 = arith.constant 0 : index
    %c0_6 = arith.constant 0 : index
    %3 = vector.load %arg5[%c0_5, %c0_6] : memref<128x512xbf16, #tpu.memory_space<vmem>>, vector<128x512xbf16>
    %c0_7 = arith.constant 0 : index
    %c0_8 = arith.constant 0 : index
    %4 = vector.load %arg3[%c0_7, %c0_8] : memref<1x512xf32, #tpu.memory_space<vmem>>, vector<1x512xf32>
    %c0_9 = arith.constant 0 : index
    %c0_10 = arith.constant 0 : index
    %5 = vector.load %arg6[%c0_9, %c0_10] : memref<1x512xf32, #tpu.memory_space<vmem>>, vector<1x512xf32>
    %c0_11 = arith.constant 0 : index
    %c0_12 = arith.constant 0 : index
    %6 = vector.load %arg7[%c0_11, %c0_12] : memref<128x128xbf16, #tpu.memory_space<vmem>>, vector<128x128xbf16>
    %c0_13 = arith.constant 0 : index
    %c0_14 = arith.constant 0 : index
    %7 = vector.load %arg8[%c0_13, %c0_14] : memref<1x128xf32, #tpu.memory_space<vmem>>, vector<1x128xf32>
    %c0_15 = arith.constant 0 : index
    %c0_16 = arith.constant 0 : index
    %8 = vector.load %arg0[%c0_15, %c0_16] : memref<72x128xbf16, #tpu.memory_space<vmem>>, vector<72x128xbf16>
    %cst = arith.constant dense<0.000000e+00> : vector<72x512xf32>
    %9 = tpu.matmul %8, %0, %cst {dimension_numbers = #tpu.dot_dimension_numbers<[1], [0], [0], [1], [0, 0, 1, 1], [], []>} : vector<72x128xbf16>, vector<128x512xbf16>, vector<72x512xf32> -> vector<72x512xf32>
    %10 = vector.broadcast %4 : vector<1x512xf32> to vector<72x512xf32>
    %11 = arith.addf %9, %10 : vector<72x512xf32>
    %c0_17 = arith.constant 0 : index
    %c0_18 = arith.constant 0 : index
    %12 = vector.load %arg13[%c0_17, %c0_18] : memref<72x512xf32, #tpu.memory_space<vmem>>, vector<72x512xf32>
    tpu.vector_store %arg13[%c0_17, %c0_18], %11 {strides = array<i32>} : memref<72x512xf32, #tpu.memory_space<vmem>>, vector<72x512xf32>,
    %cst_19 = arith.constant 0.000000e+00 : f32
    %13 = vector.broadcast %cst_19 : f32 to vector<8x128xf32>
    %14 = arith.truncf %13 : vector<8x128xf32> to vector<8x128xbf16>
    %cst_20 = arith.constant dense<0.000000e+00> : vector<8x512xf32>
    %15 = tpu.matmul %14, %2, %cst_20 {dimension_numbers = #tpu.dot_dimension_numbers<[1], [0], [0], [1], [0, 0, 1, 1], [], []>} : vector<8x128xbf16>, vector<128x512xbf16>, vector<8x512xf32> -> vector<8x512xf32>
    %c0_21 = arith.constant 0 : index
    %c0_22 = arith.constant 0 : index
    %16 = vector.load %arg13[%c0_21, %c0_22] : memref<72x512xf32, #tpu.memory_space<vmem>>, vector<8x512xf32>
    %17 = arith.addf %16, %15 : vector<8x512xf32>
    %18 = vector.extract_strided_slice %17 {offsets = [0, 0], sizes = [8, 384], strides = [1, 1]} : vector<8x512xf32> to vector<8x384xf32>
    %19 = arith.negf %18 : vector<8x384xf32>
    %20 = math.exp %19 : vector<8x384xf32>
    %cst_23 = arith.constant 1.000000e+00 : f32
    %21 = vector.broadcast %cst_23 : f32 to vector<8x384xf32>
    %22 = arith.addf %21, %20 : vector<8x384xf32>
    %23 = arith.divf %21, %22 : vector<8x384xf32>
    %24 = vector.extract_strided_slice %23 {offsets = [0, 0], sizes = [8, 128], strides = [1, 1]} : vector<8x384xf32> to vector<8x128xf32>
    %25 = vector.extract_strided_slice %23 {offsets = [0, 128], sizes = [8, 128], strides = [1, 1]} : vector<8x384xf32> to vector<8x128xf32>
    %26 = vector.extract_strided_slice %23 {offsets = [0, 256], sizes = [8, 128], strides = [1, 1]} : vector<8x384xf32> to vector<8x128xf32>
    %27 = vector.extract_strided_slice %17 {offsets = [0, 384], sizes = [8, 128], strides = [1, 1]} : vector<8x512xf32> to vector<8x128xf32>
    %28 = math.tanh %27 : vector<8x128xf32>
    %29 = arith.mulf %25, %13 : vector<8x128xf32>
    %30 = arith.mulf %24, %28 : vector<8x128xf32>
    %31 = arith.addf %29, %30 : vector<8x128xf32>
    %32 = math.tanh %31 : vector<8x128xf32>
    %33 = arith.mulf %26, %32 : vector<8x128xf32>
    %34 = arith.truncf %33 : vector<8x128xf32> to vector<8x128xbf16>
    %cst_24 = arith.constant dense<0.000000e+00> : vector<8x512xf32>
    %35 = tpu.matmul %34, %2, %cst_24 {dimension_numbers = #tpu.dot_dimension_numbers<[1], [0], [0], [1], [0, 0, 1, 1], [], []>} : vector<8x128xbf16>, vector<128x512xbf16>, vector<8x512xf32> -> vector<8x512xf32>
    %c8 = arith.constant 8 : index
    %c0_25 = arith.constant 0 : index
    %36 = vector.load %arg13[%c8, %c0_25] : memref<72x512xf32, #tpu.memory_space<vmem>>, vector<8x512xf32>
    %37 = arith.addf %36, %35 : vector<8x512xf32>
    %38 = vector.extract_strided_slice %37 {offsets = [0, 0], sizes = [8, 384], strides = [1, 1]} : vector<8x512xf32> to vector<8x384xf32>
    %39 = arith.negf %38 : vector<8x384xf32>
    %40 = math.exp %39 : vector<8x384xf32>
    %cst_26 = arith.constant 1.000000e+00 : f32
    %41 = vector.broadcast %cst_26 : f32 to vector<8x384xf32>
    %42 = arith.addf %41, %40 : vector<8x384xf32>
    %43 = arith.divf %41, %42 : vector<8x384xf32>
    %44 = vector.extract_strided_slice %43 {offsets = [0, 0], sizes = [8, 128], strides = [1, 1]} : vector<8x384xf32> to vector<8x128xf32>
    %45 = vector.extract_strided_slice %43 {offsets = [0, 128], sizes = [8, 128], strides = [1, 1]} : vector<8x384xf32> to vector<8x128xf32>
    %46 = vector.extract_strided_slice %43 {offsets = [0, 256], sizes = [8, 128], strides = [1, 1]} : vector<8x384xf32> to vector<8x128xf32>
    %47 = vector.extract_strided_slice %37 {offsets = [0, 384], sizes = [8, 128], strides = [1, 1]} : vector<8x512xf32> to vector<8x128xf32>
    %48 = math.tanh %47 : vector<8x128xf32>
    %49 = arith.mulf %45, %31 : vector<8x128xf32>
    %50 = arith.mulf %44, %48 : vector<8x128xf32>
    %51 = arith.addf %49, %50 : vector<8x128xf32>
    %52 = math.tanh %51 : vector<8x128xf32>
    %53 = arith.mulf %46, %52 : vector<8x128xf32>
    %54 = arith.truncf %13 : vector<8x128xf32> to vector<8x128xbf16>
    %cst_27 = arith.constant dense<0.000000e+00> : vector<8x512xf32>
    %55 = tpu.matmul %54, %3, %cst_27 {dimension_numbers = #tpu.dot_dimension_numbers<[1], [0], [0], [1], [0, 0, 1, 1], [], []>} : vector<8x128xbf16>, vector<128x512xbf16>, vector<8x512xf32> -> vector<8x512xf32>
    %56 = arith.truncf %33 : vector<8x128xf32> to vector<8x128xbf16>
    %cst_28 = arith.constant dense<0.000000e+00> : vector<8x512xf32>
    %57 = tpu.matmul %56, %1, %cst_28 {dimension_numbers = #tpu.dot_dimension_numbers<[1], [0], [0], [1], [0, 0, 1, 1], [], []>} : vector<8x128xbf16>, vector<128x512xbf16>, vector<8x512xf32> -> vector<8x512xf32>
    %58 = arith.addf %57, %55 : vector<8x512xf32>
    %59 = vector.broadcast %5 : vector<1x512xf32> to vector<8x512xf32>
    %60 = arith.addf %58, %59 : vector<8x512xf32>
    %61 = vector.extract_strided_slice %60 {offsets = [0, 0], sizes = [8, 384], strides = [1, 1]} : vector<8x512xf32> to vector<8x384xf32>
    %62 = arith.negf %61 : vector<8x384xf32>
    %63 = math.exp %62 : vector<8x384xf32>
    %cst_29 = arith.constant 1.000000e+00 : f32
    %64 = vector.broadcast %cst_29 : f32 to vector<8x384xf32>
    %65 = arith.addf %64, %63 : vector<8x384xf32>
    %66 = arith.divf %64, %65 : vector<8x384xf32>
    %67 = vector.extract_strided_slice %66 {offsets = [0, 0], sizes = [8, 128], strides = [1, 1]} : vector<8x384xf32> to vector<8x128xf32>
    %68 = vector.extract_strided_slice %66 {offsets = [0, 128], sizes = [8, 128], strides = [1, 1]} : vector<8x384xf32> to vector<8x128xf32>
    %69 = vector.extract_strided_slice %66 {offsets = [0, 256], sizes = [8, 128], strides = [1, 1]} : vector<8x384xf32> to vector<8x128xf32>
    %70 = vector.extract_strided_slice %60 {offsets = [0, 384], sizes = [8, 128], strides = [1, 1]} : vector<8x512xf32> to vector<8x128xf32>
    %71 = math.tanh %70 : vector<8x128xf32>
    %72 = arith.mulf %68, %13 : vector<8x128xf32>
    %73 = arith.mulf %67, %71 : vector<8x128xf32>
    %74 = arith.addf %72, %73 : vector<8x128xf32>
    %75 = math.tanh %74 : vector<8x128xf32>
    %76 = arith.mulf %69, %75 : vector<8x128xf32>
    %c0_30 = arith.constant 0 : index
    %c0_31 = arith.constant 0 : index
    %77 = vector.load %arg12[%c0_30, %c0_31] : memref<72x128xf32, #tpu.memory_space<vmem>>, vector<8x128xf32>
    tpu.vector_store %arg12[%c0_30, %c0_31], %76 {strides = array<i32>} : memref<72x128xf32, #tpu.memory_space<vmem>>, vector<8x128xf32>,
    %78 = arith.truncf %53 : vector<8x128xf32> to vector<8x128xbf16>
    %cst_32 = arith.constant dense<0.000000e+00> : vector<8x512xf32>
    %79 = tpu.matmul %78, %2, %cst_32 {dimension_numbers = #tpu.dot_dimension_numbers<[1], [0], [0], [1], [0, 0, 1, 1], [], []>} : vector<8x128xbf16>, vector<128x512xbf16>, vector<8x512xf32> -> vector<8x512xf32>
    %c16 = arith.constant 16 : index
    %c0_33 = arith.constant 0 : index
    %80 = vector.load %arg13[%c16, %c0_33] : memref<72x512xf32, #tpu.memory_space<vmem>>, vector<8x512xf32>
    %81 = arith.addf %80, %79 : vector<8x512xf32>
    %82 = vector.extract_strided_slice %81 {offsets = [0, 0], sizes = [8, 384], strides = [1, 1]} : vector<8x512xf32> to vector<8x384xf32>
    %83 = arith.negf %82 : vector<8x384xf32>
    %84 = math.exp %83 : vector<8x384xf32>
    %cst_34 = arith.constant 1.000000e+00 : f32
    %85 = vector.broadcast %cst_34 : f32 to vector<8x384xf32>
    %86 = arith.addf %85, %84 : vector<8x384xf32>
    %87 = arith.divf %85, %86 : vector<8x384xf32>
    %88 = vector.extract_strided_slice %87 {offsets = [0, 0], sizes = [8, 128], strides = [1, 1]} : vector<8x384xf32> to vector<8x128xf32>
    %89 = vector.extract_strided_slice %87 {offsets = [0, 128], sizes = [8, 128], strides = [1, 1]} : vector<8x384xf32> to vector<8x128xf32>
    %90 = vector.extract_strided_slice %87 {offsets = [0, 256], sizes = [8, 128], strides = [1, 1]} : vector<8x384xf32> to vector<8x128xf32>
    %91 = vector.extract_strided_slice %81 {offsets = [0, 384], sizes = [8, 128], strides = [1, 1]} : vector<8x512xf32> to vector<8x128xf32>
    %92 = math.tanh %91 : vector<8x128xf32>
    %93 = arith.mulf %89, %51 : vector<8x128xf32>
    %94 = arith.mulf %88, %92 : vector<8x128xf32>
    %95 = arith.addf %93, %94 : vector<8x128xf32>
    %96 = math.tanh %95 : vector<8x128xf32>
    %97 = arith.mulf %90, %96 : vector<8x128xf32>
    %98 = arith.truncf %76 : vector<8x128xf32> to vector<8x128xbf16>
    %cst_35 = arith.constant dense<0.000000e+00> : vector<8x512xf32>
    %99 = tpu.matmul %98, %3, %cst_35 {dimension_numbers = #tpu.dot_dimension_numbers<[1], [0], [0], [1], [0, 0, 1, 1], [], []>} : vector<8x128xbf16>, vector<128x512xbf16>, vector<8x512xf32> -> vector<8x512xf32>
    %100 = arith.truncf %53 : vector<8x128xf32> to vector<8x128xbf16>
    %cst_36 = arith.constant dense<0.000000e+00> : vector<8x512xf32>
    %101 = tpu.matmul %100, %1, %cst_36 {dimension_numbers = #tpu.dot_dimension_numbers<[1], [0], [0], [1], [0, 0, 1, 1], [], []>} : vector<8x128xbf16>, vector<128x512xbf16>, vector<8x512xf32> -> vector<8x512xf32>
    %102 = arith.addf %101, %99 : vector<8x512xf32>
    %103 = vector.broadcast %5 : vector<1x512xf32> to vector<8x512xf32>
    %104 = arith.addf %102, %103 : vector<8x512xf32>
    %105 = vector.extract_strided_slice %104 {offsets = [0, 0], sizes = [8, 384], strides = [1, 1]} : vector<8x512xf32> to vector<8x384xf32>
    %106 = arith.negf %105 : vector<8x384xf32>
    %107 = math.exp %106 : vector<8x384xf32>
    %cst_37 = arith.constant 1.000000e+00 : f32
    %108 = vector.broadcast %cst_37 : f32 to vector<8x384xf32>
    %109 = arith.addf %108, %107 : vector<8x384xf32>
    %110 = arith.divf %108, %109 : vector<8x384xf32>
    %111 = vector.extract_strided_slice %110 {offsets = [0, 0], sizes = [8, 128], strides = [1, 1]} : vector<8x384xf32> to vector<8x128xf32>
    %112 = vector.extract_strided_slice %110 {offsets = [0, 128], sizes = [8, 128], strides = [1, 1]} : vector<8x384xf32> to vector<8x128xf32>
    %113 = vector.extract_strided_slice %110 {offsets = [0, 256], sizes = [8, 128], strides = [1, 1]} : vector<8x384xf32> to vector<8x128xf32>
    %114 = vector.extract_strided_slice %104 {offsets = [0, 384], sizes = [8, 128], strides = [1, 1]} : vector<8x512xf32> to vector<8x128xf32>
    %115 = math.tanh %114 : vector<8x128xf32>
    %116 = arith.mulf %112, %74 : vector<8x128xf32>
    %117 = arith.mulf %111, %115 : vector<8x128xf32>
    %118 = arith.addf %116, %117 : vector<8x128xf32>
    %119 = math.tanh %118 : vector<8x128xf32>
    %120 = arith.mulf %113, %119 : vector<8x128xf32>
    %c8_38 = arith.constant 8 : index
    %c0_39 = arith.constant 0 : index
    %121 = vector.load %arg12[%c8_38, %c0_39] : memref<72x128xf32, #tpu.memory_space<vmem>>, vector<8x128xf32>
    tpu.vector_store %arg12[%c8_38, %c0_39], %120 {strides = array<i32>} : memref<72x128xf32, #tpu.memory_space<vmem>>, vector<8x128xf32>,
    %122 = arith.truncf %97 : vector<8x128xf32> to vector<8x128xbf16>
    %cst_40 = arith.constant dense<0.000000e+00> : vector<8x512xf32>
    %123 = tpu.matmul %122, %2, %cst_40 {dimension_numbers = #tpu.dot_dimension_numbers<[1], [0], [0], [1], [0, 0, 1, 1], [], []>} : vector<8x128xbf16>, vector<128x512xbf16>, vector<8x512xf32> -> vector<8x512xf32>
    %c24 = arith.constant 24 : index
    %c0_41 = arith.constant 0 : index
    %124 = vector.load %arg13[%c24, %c0_41] : memref<72x512xf32, #tpu.memory_space<vmem>>, vector<8x512xf32>
    %125 = arith.addf %124, %123 : vector<8x512xf32>
    %126 = vector.extract_strided_slice %125 {offsets = [0, 0], sizes = [8, 384], strides = [1, 1]} : vector<8x512xf32> to vector<8x384xf32>
    %127 = arith.negf %126 : vector<8x384xf32>
    %128 = math.exp %127 : vector<8x384xf32>
    %cst_42 = arith.constant 1.000000e+00 : f32
    %129 = vector.broadcast %cst_42 : f32 to vector<8x384xf32>
    %130 = arith.addf %129, %128 : vector<8x384xf32>
    %131 = arith.divf %129, %130 : vector<8x384xf32>
    %132 = vector.extract_strided_slice %131 {offsets = [0, 0], sizes = [8, 128], strides = [1, 1]} : vector<8x384xf32> to vector<8x128xf32>
    %133 = vector.extract_strided_slice %131 {offsets = [0, 128], sizes = [8, 128], strides = [1, 1]} : vector<8x384xf32> to vector<8x128xf32>
    %134 = vector.extract_strided_slice %131 {offsets = [0, 256], sizes = [8, 128], strides = [1, 1]} : vector<8x384xf32> to vector<8x128xf32>
    %135 = vector.extract_strided_slice %125 {offsets = [0, 384], sizes = [8, 128], strides = [1, 1]} : vector<8x512xf32> to vector<8x128xf32>
    %136 = math.tanh %135 : vector<8x128xf32>
    %137 = arith.mulf %133, %95 : vector<8x128xf32>
    %138 = arith.mulf %132, %136 : vector<8x128xf32>
    %139 = arith.addf %137, %138 : vector<8x128xf32>
    %140 = math.tanh %139 : vector<8x128xf32>
    %141 = arith.mulf %134, %140 : vector<8x128xf32>
    %142 = arith.truncf %120 : vector<8x128xf32> to vector<8x128xbf16>
    %cst_43 = arith.constant dense<0.000000e+00> : vector<8x512xf32>
    %143 = tpu.matmul %142, %3, %cst_43 {dimension_numbers = #tpu.dot_dimension_numbers<[1], [0], [0], [1], [0, 0, 1, 1], [], []>} : vector<8x128xbf16>, vector<128x512xbf16>, vector<8x512xf32> -> vector<8x512xf32>
    %144 = arith.truncf %97 : vector<8x128xf32> to vector<8x128xbf16>
    %cst_44 = arith.constant dense<0.000000e+00> : vector<8x512xf32>
    %145 = tpu.matmul %144, %1, %cst_44 {dimension_numbers = #tpu.dot_dimension_numbers<[1], [0], [0], [1], [0, 0, 1, 1], [], []>} : vector<8x128xbf16>, vector<128x512xbf16>, vector<8x512xf32> -> vector<8x512xf32>
    %146 = arith.addf %145, %143 : vector<8x512xf32>
    %147 = vector.broadcast %5 : vector<1x512xf32> to vector<8x512xf32>
    %148 = arith.addf %146, %147 : vector<8x512xf32>
    %149 = vector.extract_strided_slice %148 {offsets = [0, 0], sizes = [8, 384], strides = [1, 1]} : vector<8x512xf32> to vector<8x384xf32>
    %150 = arith.negf %149 : vector<8x384xf32>
    %151 = math.exp %150 : vector<8x384xf32>
    %cst_45 = arith.constant 1.000000e+00 : f32
    %152 = vector.broadcast %cst_45 : f32 to vector<8x384xf32>
    %153 = arith.addf %152, %151 : vector<8x384xf32>
    %154 = arith.divf %152, %153 : vector<8x384xf32>
    %155 = vector.extract_strided_slice %154 {offsets = [0, 0], sizes = [8, 128], strides = [1, 1]} : vector<8x384xf32> to vector<8x128xf32>
    %156 = vector.extract_strided_slice %154 {offsets = [0, 128], sizes = [8, 128], strides = [1, 1]} : vector<8x384xf32> to vector<8x128xf32>
    %157 = vector.extract_strided_slice %154 {offsets = [0, 256], sizes = [8, 128], strides = [1, 1]} : vector<8x384xf32> to vector<8x128xf32>
    %158 = vector.extract_strided_slice %148 {offsets = [0, 384], sizes = [8, 128], strides = [1, 1]} : vector<8x512xf32> to vector<8x128xf32>
    %159 = math.tanh %158 : vector<8x128xf32>
    %160 = arith.mulf %156, %118 : vector<8x128xf32>
    %161 = arith.mulf %155, %159 : vector<8x128xf32>
    %162 = arith.addf %160, %161 : vector<8x128xf32>
    %163 = math.tanh %162 : vector<8x128xf32>
    %164 = arith.mulf %157, %163 : vector<8x128xf32>
    %c16_46 = arith.constant 16 : index
    %c0_47 = arith.constant 0 : index
    %165 = vector.load %arg12[%c16_46, %c0_47] : memref<72x128xf32, #tpu.memory_space<vmem>>, vector<8x128xf32>
    tpu.vector_store %arg12[%c16_46, %c0_47], %164 {strides = array<i32>} : memref<72x128xf32, #tpu.memory_space<vmem>>, vector<8x128xf32>,
    %166 = arith.truncf %141 : vector<8x128xf32> to vector<8x128xbf16>
    %cst_48 = arith.constant dense<0.000000e+00> : vector<8x512xf32>
    %167 = tpu.matmul %166, %2, %cst_48 {dimension_numbers = #tpu.dot_dimension_numbers<[1], [0], [0], [1], [0, 0, 1, 1], [], []>} : vector<8x128xbf16>, vector<128x512xbf16>, vector<8x512xf32> -> vector<8x512xf32>
    %c32 = arith.constant 32 : index
    %c0_49 = arith.constant 0 : index
    %168 = vector.load %arg13[%c32, %c0_49] : memref<72x512xf32, #tpu.memory_space<vmem>>, vector<8x512xf32>
    %169 = arith.addf %168, %167 : vector<8x512xf32>
    %170 = vector.extract_strided_slice %169 {offsets = [0, 0], sizes = [8, 384], strides = [1, 1]} : vector<8x512xf32> to vector<8x384xf32>
    %171 = arith.negf %170 : vector<8x384xf32>
    %172 = math.exp %171 : vector<8x384xf32>
    %cst_50 = arith.constant 1.000000e+00 : f32
    %173 = vector.broadcast %cst_50 : f32 to vector<8x384xf32>
    %174 = arith.addf %173, %172 : vector<8x384xf32>
    %175 = arith.divf %173, %174 : vector<8x384xf32>
    %176 = vector.extract_strided_slice %175 {offsets = [0, 0], sizes = [8, 128], strides = [1, 1]} : vector<8x384xf32> to vector<8x128xf32>
    %177 = vector.extract_strided_slice %175 {offsets = [0, 128], sizes = [8, 128], strides = [1, 1]} : vector<8x384xf32> to vector<8x128xf32>
    %178 = vector.extract_strided_slice %175 {offsets = [0, 256], sizes = [8, 128], strides = [1, 1]} : vector<8x384xf32> to vector<8x128xf32>
    %179 = vector.extract_strided_slice %169 {offsets = [0, 384], sizes = [8, 128], strides = [1, 1]} : vector<8x512xf32> to vector<8x128xf32>
    %180 = math.tanh %179 : vector<8x128xf32>
    %181 = arith.mulf %177, %139 : vector<8x128xf32>
    %182 = arith.mulf %176, %180 : vector<8x128xf32>
    %183 = arith.addf %181, %182 : vector<8x128xf32>
    %184 = math.tanh %183 : vector<8x128xf32>
    %185 = arith.mulf %178, %184 : vector<8x128xf32>
    %186 = arith.truncf %164 : vector<8x128xf32> to vector<8x128xbf16>
    %cst_51 = arith.constant dense<0.000000e+00> : vector<8x512xf32>
    %187 = tpu.matmul %186, %3, %cst_51 {dimension_numbers = #tpu.dot_dimension_numbers<[1], [0], [0], [1], [0, 0, 1, 1], [], []>} : vector<8x128xbf16>, vector<128x512xbf16>, vector<8x512xf32> -> vector<8x512xf32>
    %188 = arith.truncf %141 : vector<8x128xf32> to vector<8x128xbf16>
    %cst_52 = arith.constant dense<0.000000e+00> : vector<8x512xf32>
    %189 = tpu.matmul %188, %1, %cst_52 {dimension_numbers = #tpu.dot_dimension_numbers<[1], [0], [0], [1], [0, 0, 1, 1], [], []>} : vector<8x128xbf16>, vector<128x512xbf16>, vector<8x512xf32> -> vector<8x512xf32>
    %190 = arith.addf %189, %187 : vector<8x512xf32>
    %191 = vector.broadcast %5 : vector<1x512xf32> to vector<8x512xf32>
    %192 = arith.addf %190, %191 : vector<8x512xf32>
    %193 = vector.extract_strided_slice %192 {offsets = [0, 0], sizes = [8, 384], strides = [1, 1]} : vector<8x512xf32> to vector<8x384xf32>
    %194 = arith.negf %193 : vector<8x384xf32>
    %195 = math.exp %194 : vector<8x384xf32>
    %cst_53 = arith.constant 1.000000e+00 : f32
    %196 = vector.broadcast %cst_53 : f32 to vector<8x384xf32>
    %197 = arith.addf %196, %195 : vector<8x384xf32>
    %198 = arith.divf %196, %197 : vector<8x384xf32>
    %199 = vector.extract_strided_slice %198 {offsets = [0, 0], sizes = [8, 128], strides = [1, 1]} : vector<8x384xf32> to vector<8x128xf32>
    %200 = vector.extract_strided_slice %198 {offsets = [0, 128], sizes = [8, 128], strides = [1, 1]} : vector<8x384xf32> to vector<8x128xf32>
    %201 = vector.extract_strided_slice %198 {offsets = [0, 256], sizes = [8, 128], strides = [1, 1]} : vector<8x384xf32> to vector<8x128xf32>
    %202 = vector.extract_strided_slice %192 {offsets = [0, 384], sizes = [8, 128], strides = [1, 1]} : vector<8x512xf32> to vector<8x128xf32>
    %203 = math.tanh %202 : vector<8x128xf32>
    %204 = arith.mulf %200, %162 : vector<8x128xf32>
    %205 = arith.mulf %199, %203 : vector<8x128xf32>
    %206 = arith.addf %204, %205 : vector<8x128xf32>
    %207 = math.tanh %206 : vector<8x128xf32>
    %208 = arith.mulf %201, %207 : vector<8x128xf32>
    %c24_54 = arith.constant 24 : index
    %c0_55 = arith.constant 0 : index
    %209 = vector.load %arg12[%c24_54, %c0_55] : memref<72x128xf32, #tpu.memory_space<vmem>>, vector<8x128xf32>
    tpu.vector_store %arg12[%c24_54, %c0_55], %208 {strides = array<i32>} : memref<72x128xf32, #tpu.memory_space<vmem>>, vector<8x128xf32>,
    %210 = arith.truncf %185 : vector<8x128xf32> to vector<8x128xbf16>
    %cst_56 = arith.constant dense<0.000000e+00> : vector<8x512xf32>
    %211 = tpu.matmul %210, %2, %cst_56 {dimension_numbers = #tpu.dot_dimension_numbers<[1], [0], [0], [1], [0, 0, 1, 1], [], []>} : vector<8x128xbf16>, vector<128x512xbf16>, vector<8x512xf32> -> vector<8x512xf32>
    %c40 = arith.constant 40 : index
    %c0_57 = arith.constant 0 : index
    %212 = vector.load %arg13[%c40, %c0_57] : memref<72x512xf32, #tpu.memory_space<vmem>>, vector<8x512xf32>
    %213 = arith.addf %212, %211 : vector<8x512xf32>
    %214 = vector.extract_strided_slice %213 {offsets = [0, 0], sizes = [8, 384], strides = [1, 1]} : vector<8x512xf32> to vector<8x384xf32>
    %215 = arith.negf %214 : vector<8x384xf32>
    %216 = math.exp %215 : vector<8x384xf32>
    %cst_58 = arith.constant 1.000000e+00 : f32
    %217 = vector.broadcast %cst_58 : f32 to vector<8x384xf32>
    %218 = arith.addf %217, %216 : vector<8x384xf32>
    %219 = arith.divf %217, %218 : vector<8x384xf32>
    %220 = vector.extract_strided_slice %219 {offsets = [0, 0], sizes = [8, 128], strides = [1, 1]} : vector<8x384xf32> to vector<8x128xf32>
    %221 = vector.extract_strided_slice %219 {offsets = [0, 128], sizes = [8, 128], strides = [1, 1]} : vector<8x384xf32> to vector<8x128xf32>
    %222 = vector.extract_strided_slice %219 {offsets = [0, 256], sizes = [8, 128], strides = [1, 1]} : vector<8x384xf32> to vector<8x128xf32>
    %223 = vector.extract_strided_slice %213 {offsets = [0, 384], sizes = [8, 128], strides = [1, 1]} : vector<8x512xf32> to vector<8x128xf32>
    %224 = math.tanh %223 : vector<8x128xf32>
    %225 = arith.mulf %221, %183 : vector<8x128xf32>
    %226 = arith.mulf %220, %224 : vector<8x128xf32>
    %227 = arith.addf %225, %226 : vector<8x128xf32>
    %228 = math.tanh %227 : vector<8x128xf32>
    %229 = arith.mulf %222, %228 : vector<8x128xf32>
    %230 = arith.truncf %208 : vector<8x128xf32> to vector<8x128xbf16>
    %cst_59 = arith.constant dense<0.000000e+00> : vector<8x512xf32>
    %231 = tpu.matmul %230, %3, %cst_59 {dimension_numbers = #tpu.dot_dimension_numbers<[1], [0], [0], [1], [0, 0, 1, 1], [], []>} : vector<8x128xbf16>, vector<128x512xbf16>, vector<8x512xf32> -> vector<8x512xf32>
    %232 = arith.truncf %185 : vector<8x128xf32> to vector<8x128xbf16>
    %cst_60 = arith.constant dense<0.000000e+00> : vector<8x512xf32>
    %233 = tpu.matmul %232, %1, %cst_60 {dimension_numbers = #tpu.dot_dimension_numbers<[1], [0], [0], [1], [0, 0, 1, 1], [], []>} : vector<8x128xbf16>, vector<128x512xbf16>, vector<8x512xf32> -> vector<8x512xf32>
    %234 = arith.addf %233, %231 : vector<8x512xf32>
    %235 = vector.broadcast %5 : vector<1x512xf32> to vector<8x512xf32>
    %236 = arith.addf %234, %235 : vector<8x512xf32>
    %237 = vector.extract_strided_slice %236 {offsets = [0, 0], sizes = [8, 384], strides = [1, 1]} : vector<8x512xf32> to vector<8x384xf32>
    %238 = arith.negf %237 : vector<8x384xf32>
    %239 = math.exp %238 : vector<8x384xf32>
    %cst_61 = arith.constant 1.000000e+00 : f32
    %240 = vector.broadcast %cst_61 : f32 to vector<8x384xf32>
    %241 = arith.addf %240, %239 : vector<8x384xf32>
    %242 = arith.divf %240, %241 : vector<8x384xf32>
    %243 = vector.extract_strided_slice %242 {offsets = [0, 0], sizes = [8, 128], strides = [1, 1]} : vector<8x384xf32> to vector<8x128xf32>
    %244 = vector.extract_strided_slice %242 {offsets = [0, 128], sizes = [8, 128], strides = [1, 1]} : vector<8x384xf32> to vector<8x128xf32>
    %245 = vector.extract_strided_slice %242 {offsets = [0, 256], sizes = [8, 128], strides = [1, 1]} : vector<8x384xf32> to vector<8x128xf32>
    %246 = vector.extract_strided_slice %236 {offsets = [0, 384], sizes = [8, 128], strides = [1, 1]} : vector<8x512xf32> to vector<8x128xf32>
    %247 = math.tanh %246 : vector<8x128xf32>
    %248 = arith.mulf %244, %206 : vector<8x128xf32>
    %249 = arith.mulf %243, %247 : vector<8x128xf32>
    %250 = arith.addf %248, %249 : vector<8x128xf32>
    %251 = math.tanh %250 : vector<8x128xf32>
    %252 = arith.mulf %245, %251 : vector<8x128xf32>
    %c32_62 = arith.constant 32 : index
    %c0_63 = arith.constant 0 : index
    %253 = vector.load %arg12[%c32_62, %c0_63] : memref<72x128xf32, #tpu.memory_space<vmem>>, vector<8x128xf32>
    tpu.vector_store %arg12[%c32_62, %c0_63], %252 {strides = array<i32>} : memref<72x128xf32, #tpu.memory_space<vmem>>, vector<8x128xf32>,
    %254 = arith.truncf %229 : vector<8x128xf32> to vector<8x128xbf16>
    %cst_64 = arith.constant dense<0.000000e+00> : vector<8x512xf32>
    %255 = tpu.matmul %254, %2, %cst_64 {dimension_numbers = #tpu.dot_dimension_numbers<[1], [0], [0], [1], [0, 0, 1, 1], [], []>} : vector<8x128xbf16>, vector<128x512xbf16>, vector<8x512xf32> -> vector<8x512xf32>
    %c48 = arith.constant 48 : index
    %c0_65 = arith.constant 0 : index
    %256 = vector.load %arg13[%c48, %c0_65] : memref<72x512xf32, #tpu.memory_space<vmem>>, vector<8x512xf32>
    %257 = arith.addf %256, %255 : vector<8x512xf32>
    %258 = vector.extract_strided_slice %257 {offsets = [0, 0], sizes = [8, 384], strides = [1, 1]} : vector<8x512xf32> to vector<8x384xf32>
    %259 = arith.negf %258 : vector<8x384xf32>
    %260 = math.exp %259 : vector<8x384xf32>
    %cst_66 = arith.constant 1.000000e+00 : f32
    %261 = vector.broadcast %cst_66 : f32 to vector<8x384xf32>
    %262 = arith.addf %261, %260 : vector<8x384xf32>
    %263 = arith.divf %261, %262 : vector<8x384xf32>
    %264 = vector.extract_strided_slice %263 {offsets = [0, 0], sizes = [8, 128], strides = [1, 1]} : vector<8x384xf32> to vector<8x128xf32>
    %265 = vector.extract_strided_slice %263 {offsets = [0, 128], sizes = [8, 128], strides = [1, 1]} : vector<8x384xf32> to vector<8x128xf32>
    %266 = vector.extract_strided_slice %263 {offsets = [0, 256], sizes = [8, 128], strides = [1, 1]} : vector<8x384xf32> to vector<8x128xf32>
    %267 = vector.extract_strided_slice %257 {offsets = [0, 384], sizes = [8, 128], strides = [1, 1]} : vector<8x512xf32> to vector<8x128xf32>
    %268 = math.tanh %267 : vector<8x128xf32>
    %269 = arith.mulf %265, %227 : vector<8x128xf32>
    %270 = arith.mulf %264, %268 : vector<8x128xf32>
    %271 = arith.addf %269, %270 : vector<8x128xf32>
    %272 = math.tanh %271 : vector<8x128xf32>
    %273 = arith.mulf %266, %272 : vector<8x128xf32>
    %274 = arith.truncf %252 : vector<8x128xf32> to vector<8x128xbf16>
    %cst_67 = arith.constant dense<0.000000e+00> : vector<8x512xf32>
    %275 = tpu.matmul %274, %3, %cst_67 {dimension_numbers = #tpu.dot_dimension_numbers<[1], [0], [0], [1], [0, 0, 1, 1], [], []>} : vector<8x128xbf16>, vector<128x512xbf16>, vector<8x512xf32> -> vector<8x512xf32>
    %276 = arith.truncf %229 : vector<8x128xf32> to vector<8x128xbf16>
    %cst_68 = arith.constant dense<0.000000e+00> : vector<8x512xf32>
    %277 = tpu.matmul %276, %1, %cst_68 {dimension_numbers = #tpu.dot_dimension_numbers<[1], [0], [0], [1], [0, 0, 1, 1], [], []>} : vector<8x128xbf16>, vector<128x512xbf16>, vector<8x512xf32> -> vector<8x512xf32>
    %278 = arith.addf %277, %275 : vector<8x512xf32>
    %279 = vector.broadcast %5 : vector<1x512xf32> to vector<8x512xf32>
    %280 = arith.addf %278, %279 : vector<8x512xf32>
    %281 = vector.extract_strided_slice %280 {offsets = [0, 0], sizes = [8, 384], strides = [1, 1]} : vector<8x512xf32> to vector<8x384xf32>
    %282 = arith.negf %281 : vector<8x384xf32>
    %283 = math.exp %282 : vector<8x384xf32>
    %cst_69 = arith.constant 1.000000e+00 : f32
    %284 = vector.broadcast %cst_69 : f32 to vector<8x384xf32>
    %285 = arith.addf %284, %283 : vector<8x384xf32>
    %286 = arith.divf %284, %285 : vector<8x384xf32>
    %287 = vector.extract_strided_slice %286 {offsets = [0, 0], sizes = [8, 128], strides = [1, 1]} : vector<8x384xf32> to vector<8x128xf32>
    %288 = vector.extract_strided_slice %286 {offsets = [0, 128], sizes = [8, 128], strides = [1, 1]} : vector<8x384xf32> to vector<8x128xf32>
    %289 = vector.extract_strided_slice %286 {offsets = [0, 256], sizes = [8, 128], strides = [1, 1]} : vector<8x384xf32> to vector<8x128xf32>
    %290 = vector.extract_strided_slice %280 {offsets = [0, 384], sizes = [8, 128], strides = [1, 1]} : vector<8x512xf32> to vector<8x128xf32>
    %291 = math.tanh %290 : vector<8x128xf32>
    %292 = arith.mulf %288, %250 : vector<8x128xf32>
    %293 = arith.mulf %287, %291 : vector<8x128xf32>
    %294 = arith.addf %292, %293 : vector<8x128xf32>
    %295 = math.tanh %294 : vector<8x128xf32>
    %296 = arith.mulf %289, %295 : vector<8x128xf32>
    %c40_70 = arith.constant 40 : index
    %c0_71 = arith.constant 0 : index
    %297 = vector.load %arg12[%c40_70, %c0_71] : memref<72x128xf32, #tpu.memory_space<vmem>>, vector<8x128xf32>
    tpu.vector_store %arg12[%c40_70, %c0_71], %296 {strides = array<i32>} : memref<72x128xf32, #tpu.memory_space<vmem>>, vector<8x128xf32>,
    %298 = arith.truncf %273 : vector<8x128xf32> to vector<8x128xbf16>
    %cst_72 = arith.constant dense<0.000000e+00> : vector<8x512xf32>
    %299 = tpu.matmul %298, %2, %cst_72 {dimension_numbers = #tpu.dot_dimension_numbers<[1], [0], [0], [1], [0, 0, 1, 1], [], []>} : vector<8x128xbf16>, vector<128x512xbf16>, vector<8x512xf32> -> vector<8x512xf32>
    %c56 = arith.constant 56 : index
    %c0_73 = arith.constant 0 : index
    %300 = vector.load %arg13[%c56, %c0_73] : memref<72x512xf32, #tpu.memory_space<vmem>>, vector<8x512xf32>
    %301 = arith.addf %300, %299 : vector<8x512xf32>
    %302 = vector.extract_strided_slice %301 {offsets = [0, 0], sizes = [8, 384], strides = [1, 1]} : vector<8x512xf32> to vector<8x384xf32>
    %303 = arith.negf %302 : vector<8x384xf32>
    %304 = math.exp %303 : vector<8x384xf32>
    %cst_74 = arith.constant 1.000000e+00 : f32
    %305 = vector.broadcast %cst_74 : f32 to vector<8x384xf32>
    %306 = arith.addf %305, %304 : vector<8x384xf32>
    %307 = arith.divf %305, %306 : vector<8x384xf32>
    %308 = vector.extract_strided_slice %307 {offsets = [0, 0], sizes = [8, 128], strides = [1, 1]} : vector<8x384xf32> to vector<8x128xf32>
    %309 = vector.extract_strided_slice %307 {offsets = [0, 128], sizes = [8, 128], strides = [1, 1]} : vector<8x384xf32> to vector<8x128xf32>
    %310 = vector.extract_strided_slice %307 {offsets = [0, 256], sizes = [8, 128], strides = [1, 1]} : vector<8x384xf32> to vector<8x128xf32>
    %311 = vector.extract_strided_slice %301 {offsets = [0, 384], sizes = [8, 128], strides = [1, 1]} : vector<8x512xf32> to vector<8x128xf32>
    %312 = math.tanh %311 : vector<8x128xf32>
    %313 = arith.mulf %309, %271 : vector<8x128xf32>
    %314 = arith.mulf %308, %312 : vector<8x128xf32>
    %315 = arith.addf %313, %314 : vector<8x128xf32>
    %316 = math.tanh %315 : vector<8x128xf32>
    %317 = arith.mulf %310, %316 : vector<8x128xf32>
    %318 = arith.truncf %296 : vector<8x128xf32> to vector<8x128xbf16>
    %cst_75 = arith.constant dense<0.000000e+00> : vector<8x512xf32>
    %319 = tpu.matmul %318, %3, %cst_75 {dimension_numbers = #tpu.dot_dimension_numbers<[1], [0], [0], [1], [0, 0, 1, 1], [], []>} : vector<8x128xbf16>, vector<128x512xbf16>, vector<8x512xf32> -> vector<8x512xf32>
    %320 = arith.truncf %273 : vector<8x128xf32> to vector<8x128xbf16>
    %cst_76 = arith.constant dense<0.000000e+00> : vector<8x512xf32>
    %321 = tpu.matmul %320, %1, %cst_76 {dimension_numbers = #tpu.dot_dimension_numbers<[1], [0], [0], [1], [0, 0, 1, 1], [], []>} : vector<8x128xbf16>, vector<128x512xbf16>, vector<8x512xf32> -> vector<8x512xf32>
    %322 = arith.addf %321, %319 : vector<8x512xf32>
    %323 = vector.broadcast %5 : vector<1x512xf32> to vector<8x512xf32>
    %324 = arith.addf %322, %323 : vector<8x512xf32>
    %325 = vector.extract_strided_slice %324 {offsets = [0, 0], sizes = [8, 384], strides = [1, 1]} : vector<8x512xf32> to vector<8x384xf32>
    %326 = arith.negf %325 : vector<8x384xf32>
    %327 = math.exp %326 : vector<8x384xf32>
    %cst_77 = arith.constant 1.000000e+00 : f32
    %328 = vector.broadcast %cst_77 : f32 to vector<8x384xf32>
    %329 = arith.addf %328, %327 : vector<8x384xf32>
    %330 = arith.divf %328, %329 : vector<8x384xf32>
    %331 = vector.extract_strided_slice %330 {offsets = [0, 0], sizes = [8, 128], strides = [1, 1]} : vector<8x384xf32> to vector<8x128xf32>
    %332 = vector.extract_strided_slice %330 {offsets = [0, 128], sizes = [8, 128], strides = [1, 1]} : vector<8x384xf32> to vector<8x128xf32>
    %333 = vector.extract_strided_slice %330 {offsets = [0, 256], sizes = [8, 128], strides = [1, 1]} : vector<8x384xf32> to vector<8x128xf32>
    %334 = vector.extract_strided_slice %324 {offsets = [0, 384], sizes = [8, 128], strides = [1, 1]} : vector<8x512xf32> to vector<8x128xf32>
    %335 = math.tanh %334 : vector<8x128xf32>
    %336 = arith.mulf %332, %294 : vector<8x128xf32>
    %337 = arith.mulf %331, %335 : vector<8x128xf32>
    %338 = arith.addf %336, %337 : vector<8x128xf32>
    %339 = math.tanh %338 : vector<8x128xf32>
    %340 = arith.mulf %333, %339 : vector<8x128xf32>
    %c48_78 = arith.constant 48 : index
    %c0_79 = arith.constant 0 : index
    %341 = vector.load %arg12[%c48_78, %c0_79] : memref<72x128xf32, #tpu.memory_space<vmem>>, vector<8x128xf32>
    tpu.vector_store %arg12[%c48_78, %c0_79], %340 {strides = array<i32>} : memref<72x128xf32, #tpu.memory_space<vmem>>, vector<8x128xf32>,
    %342 = arith.truncf %317 : vector<8x128xf32> to vector<8x128xbf16>
    %cst_80 = arith.constant dense<0.000000e+00> : vector<8x512xf32>
    %343 = tpu.matmul %342, %2, %cst_80 {dimension_numbers = #tpu.dot_dimension_numbers<[1], [0], [0], [1], [0, 0, 1, 1], [], []>} : vector<8x128xbf16>, vector<128x512xbf16>, vector<8x512xf32> -> vector<8x512xf32>
    %c64 = arith.constant 64 : index
    %c0_81 = arith.constant 0 : index
    %344 = vector.load %arg13[%c64, %c0_81] : memref<72x512xf32, #tpu.memory_space<vmem>>, vector<8x512xf32>
    %345 = arith.addf %344, %343 : vector<8x512xf32>
    %346 = vector.extract_strided_slice %345 {offsets = [0, 0], sizes = [8, 384], strides = [1, 1]} : vector<8x512xf32> to vector<8x384xf32>
    %347 = arith.negf %346 : vector<8x384xf32>
    %348 = math.exp %347 : vector<8x384xf32>
    %cst_82 = arith.constant 1.000000e+00 : f32
    %349 = vector.broadcast %cst_82 : f32 to vector<8x384xf32>
    %350 = arith.addf %349, %348 : vector<8x384xf32>
    %351 = arith.divf %349, %350 : vector<8x384xf32>
    %352 = vector.extract_strided_slice %351 {offsets = [0, 0], sizes = [8, 128], strides = [1, 1]} : vector<8x384xf32> to vector<8x128xf32>
    %353 = vector.extract_strided_slice %351 {offsets = [0, 128], sizes = [8, 128], strides = [1, 1]} : vector<8x384xf32> to vector<8x128xf32>
    %354 = vector.extract_strided_slice %351 {offsets = [0, 256], sizes = [8, 128], strides = [1, 1]} : vector<8x384xf32> to vector<8x128xf32>
    %355 = vector.extract_strided_slice %345 {offsets = [0, 384], sizes = [8, 128], strides = [1, 1]} : vector<8x512xf32> to vector<8x128xf32>
    %356 = math.tanh %355 : vector<8x128xf32>
    %357 = arith.mulf %353, %315 : vector<8x128xf32>
    %358 = arith.mulf %352, %356 : vector<8x128xf32>
    %359 = arith.addf %357, %358 : vector<8x128xf32>
    %360 = math.tanh %359 : vector<8x128xf32>
    %361 = arith.mulf %354, %360 : vector<8x128xf32>
    %362 = arith.truncf %340 : vector<8x128xf32> to vector<8x128xbf16>
    %cst_83 = arith.constant dense<0.000000e+00> : vector<8x512xf32>
    %363 = tpu.matmul %362, %3, %cst_83 {dimension_numbers = #tpu.dot_dimension_numbers<[1], [0], [0], [1], [0, 0, 1, 1], [], []>} : vector<8x128xbf16>, vector<128x512xbf16>, vector<8x512xf32> -> vector<8x512xf32>
    %364 = arith.truncf %317 : vector<8x128xf32> to vector<8x128xbf16>
    %cst_84 = arith.constant dense<0.000000e+00> : vector<8x512xf32>
    %365 = tpu.matmul %364, %1, %cst_84 {dimension_numbers = #tpu.dot_dimension_numbers<[1], [0], [0], [1], [0, 0, 1, 1], [], []>} : vector<8x128xbf16>, vector<128x512xbf16>, vector<8x512xf32> -> vector<8x512xf32>
    %366 = arith.addf %365, %363 : vector<8x512xf32>
    %367 = vector.broadcast %5 : vector<1x512xf32> to vector<8x512xf32>
    %368 = arith.addf %366, %367 : vector<8x512xf32>
    %369 = vector.extract_strided_slice %368 {offsets = [0, 0], sizes = [8, 384], strides = [1, 1]} : vector<8x512xf32> to vector<8x384xf32>
    %370 = arith.negf %369 : vector<8x384xf32>
    %371 = math.exp %370 : vector<8x384xf32>
    %cst_85 = arith.constant 1.000000e+00 : f32
    %372 = vector.broadcast %cst_85 : f32 to vector<8x384xf32>
    %373 = arith.addf %372, %371 : vector<8x384xf32>
    %374 = arith.divf %372, %373 : vector<8x384xf32>
    %375 = vector.extract_strided_slice %374 {offsets = [0, 0], sizes = [8, 128], strides = [1, 1]} : vector<8x384xf32> to vector<8x128xf32>
    %376 = vector.extract_strided_slice %374 {offsets = [0, 128], sizes = [8, 128], strides = [1, 1]} : vector<8x384xf32> to vector<8x128xf32>
    %377 = vector.extract_strided_slice %374 {offsets = [0, 256], sizes = [8, 128], strides = [1, 1]} : vector<8x384xf32> to vector<8x128xf32>
    %378 = vector.extract_strided_slice %368 {offsets = [0, 384], sizes = [8, 128], strides = [1, 1]} : vector<8x512xf32> to vector<8x128xf32>
    %379 = math.tanh %378 : vector<8x128xf32>
    %380 = arith.mulf %376, %338 : vector<8x128xf32>
    %381 = arith.mulf %375, %379 : vector<8x128xf32>
    %382 = arith.addf %380, %381 : vector<8x128xf32>
    %383 = math.tanh %382 : vector<8x128xf32>
    %384 = arith.mulf %377, %383 : vector<8x128xf32>
    %c56_86 = arith.constant 56 : index
    %c0_87 = arith.constant 0 : index
    %385 = vector.load %arg12[%c56_86, %c0_87] : memref<72x128xf32, #tpu.memory_space<vmem>>, vector<8x128xf32>
    tpu.vector_store %arg12[%c56_86, %c0_87], %384 {strides = array<i32>} : memref<72x128xf32, #tpu.memory_space<vmem>>, vector<8x128xf32>,
    %386 = arith.truncf %384 : vector<8x128xf32> to vector<8x128xbf16>
    %cst_88 = arith.constant dense<0.000000e+00> : vector<8x512xf32>
    %387 = tpu.matmul %386, %3, %cst_88 {dimension_numbers = #tpu.dot_dimension_numbers<[1], [0], [0], [1], [0, 0, 1, 1], [], []>} : vector<8x128xbf16>, vector<128x512xbf16>, vector<8x512xf32> -> vector<8x512xf32>
    %388 = arith.truncf %361 : vector<8x128xf32> to vector<8x128xbf16>
    %cst_89 = arith.constant dense<0.000000e+00> : vector<8x512xf32>
    %389 = tpu.matmul %388, %1, %cst_89 {dimension_numbers = #tpu.dot_dimension_numbers<[1], [0], [0], [1], [0, 0, 1, 1], [], []>} : vector<8x128xbf16>, vector<128x512xbf16>, vector<8x512xf32> -> vector<8x512xf32>
    %390 = arith.addf %389, %387 : vector<8x512xf32>
    %391 = vector.broadcast %5 : vector<1x512xf32> to vector<8x512xf32>
    %392 = arith.addf %390, %391 : vector<8x512xf32>
    %393 = vector.extract_strided_slice %392 {offsets = [0, 0], sizes = [8, 384], strides = [1, 1]} : vector<8x512xf32> to vector<8x384xf32>
    %394 = arith.negf %393 : vector<8x384xf32>
    %395 = math.exp %394 : vector<8x384xf32>
    %cst_90 = arith.constant 1.000000e+00 : f32
    %396 = vector.broadcast %cst_90 : f32 to vector<8x384xf32>
    %397 = arith.addf %396, %395 : vector<8x384xf32>
    %398 = arith.divf %396, %397 : vector<8x384xf32>
    %399 = vector.extract_strided_slice %398 {offsets = [0, 0], sizes = [8, 128], strides = [1, 1]} : vector<8x384xf32> to vector<8x128xf32>
    %400 = vector.extract_strided_slice %398 {offsets = [0, 128], sizes = [8, 128], strides = [1, 1]} : vector<8x384xf32> to vector<8x128xf32>
    %401 = vector.extract_strided_slice %398 {offsets = [0, 256], sizes = [8, 128], strides = [1, 1]} : vector<8x384xf32> to vector<8x128xf32>
    %402 = vector.extract_strided_slice %392 {offsets = [0, 384], sizes = [8, 128], strides = [1, 1]} : vector<8x512xf32> to vector<8x128xf32>
    %403 = math.tanh %402 : vector<8x128xf32>
    %404 = arith.mulf %400, %382 : vector<8x128xf32>
    %405 = arith.mulf %399, %403 : vector<8x128xf32>
    %406 = arith.addf %404, %405 : vector<8x128xf32>
    %407 = math.tanh %406 : vector<8x128xf32>
    %408 = arith.mulf %401, %407 : vector<8x128xf32>
    %c64_91 = arith.constant 64 : index
    %c0_92 = arith.constant 0 : index
    %409 = vector.load %arg12[%c64_91, %c0_92] : memref<72x128xf32, #tpu.memory_space<vmem>>, vector<8x128xf32>
    tpu.vector_store %arg12[%c64_91, %c0_92], %408 {strides = array<i32>} : memref<72x128xf32, #tpu.memory_space<vmem>>, vector<8x128xf32>,
    %c0_93 = arith.constant 0 : index
    %c0_94 = arith.constant 0 : index
    %c0_95 = arith.constant 0 : index
    %410 = vector.load %arg10[%c0_93, %c0_94, %c0_95] : memref<2x8x128xf32, #tpu.memory_space<vmem>>, vector<1x8x128xf32>
    %411 = vector.shape_cast %410 : vector<1x8x128xf32> to vector<8x128xf32>
    %412 = vector.shape_cast %361 : vector<8x128xf32> to vector<1x8x128xf32>
    tpu.vector_store %arg10[%c0_93, %c0_94, %c0_95], %412 {strides = array<i32>} : memref<2x8x128xf32, #tpu.memory_space<vmem>>, vector<1x8x128xf32>,
    %c0_96 = arith.constant 0 : index
    %c0_97 = arith.constant 0 : index
    %c0_98 = arith.constant 0 : index
    %413 = vector.load %arg11[%c0_96, %c0_97, %c0_98] : memref<2x8x128xf32, #tpu.memory_space<vmem>>, vector<1x8x128xf32>
    %414 = vector.shape_cast %413 : vector<1x8x128xf32> to vector<8x128xf32>
    %415 = vector.shape_cast %359 : vector<8x128xf32> to vector<1x8x128xf32>
    tpu.vector_store %arg11[%c0_96, %c0_97, %c0_98], %415 {strides = array<i32>} : memref<2x8x128xf32, #tpu.memory_space<vmem>>, vector<1x8x128xf32>,
    %c1 = arith.constant 1 : index
    %c0_99 = arith.constant 0 : index
    %c0_100 = arith.constant 0 : index
    %416 = vector.load %arg10[%c1, %c0_99, %c0_100] : memref<2x8x128xf32, #tpu.memory_space<vmem>>, vector<1x8x128xf32>
    %417 = vector.shape_cast %416 : vector<1x8x128xf32> to vector<8x128xf32>
    %418 = vector.shape_cast %408 : vector<8x128xf32> to vector<1x8x128xf32>
    tpu.vector_store %arg10[%c1, %c0_99, %c0_100], %418 {strides = array<i32>} : memref<2x8x128xf32, #tpu.memory_space<vmem>>, vector<1x8x128xf32>,
    %c1_101 = arith.constant 1 : index
    %c0_102 = arith.constant 0 : index
    %c0_103 = arith.constant 0 : index
    %419 = vector.load %arg11[%c1_101, %c0_102, %c0_103] : memref<2x8x128xf32, #tpu.memory_space<vmem>>, vector<1x8x128xf32>
    %420 = vector.shape_cast %419 : vector<1x8x128xf32> to vector<8x128xf32>
    %421 = vector.shape_cast %406 : vector<8x128xf32> to vector<1x8x128xf32>
    tpu.vector_store %arg11[%c1_101, %c0_102, %c0_103], %421 {strides = array<i32>} : memref<2x8x128xf32, #tpu.memory_space<vmem>>, vector<1x8x128xf32>,
    %c0_104 = arith.constant 0 : index
    %c0_105 = arith.constant 0 : index
    %422 = vector.load %arg12[%c0_104, %c0_105] : memref<72x128xf32, #tpu.memory_space<vmem>>, vector<72x128xf32>
    %423 = arith.truncf %422 : vector<72x128xf32> to vector<72x128xbf16>
    %cst_106 = arith.constant dense<0.000000e+00> : vector<72x128xf32>
    %424 = tpu.matmul %423, %6, %cst_106 {dimension_numbers = #tpu.dot_dimension_numbers<[1], [0], [0], [1], [0, 0, 1, 1], [], []>} : vector<72x128xbf16>, vector<128x128xbf16>, vector<72x128xf32> -> vector<72x128xf32>
    %425 = vector.broadcast %7 : vector<1x128xf32> to vector<72x128xf32>
    %426 = arith.addf %424, %425 : vector<72x128xf32>
    %c0_107 = arith.constant 0 : index
    %c0_108 = arith.constant 0 : index
    %427 = vector.load %arg9[%c0_107, %c0_108] : memref<72x128xf32, #tpu.memory_space<vmem>>, vector<72x128xf32>
    tpu.vector_store %arg9[%c0_107, %c0_108], %426 {strides = array<i32>} : memref<72x128xf32, #tpu.memory_space<vmem>>, vector<72x128xf32>,
    return
  }
}

</mosaic_0001>

<bundles_post_ra>
// kernel: tpu_custom_call.1
= control target key start
LH: loop header
LB: loop body
LE: loop exit
PB: predicated region body
PF: predicated region fallthrough
CT: control target
= control target key end

     0   :  { %17 = vsyncpa [#allocation5], 0  ;;  %s7440_s0 = inlined_call_operand.hbm [shape: bf16[72,128], index: 0, kind: input, shape index: {}]   ;;  %s7441_s1 = inlined_call_operand.hbm [shape: bf16[128,512], index: 1, kind: input, shape index: {}]   ;;  %s7442_s2 = inlined_call_operand.hbm [shape: bf16[128,512], index: 2, kind: input, shape index: {}]   ;;  %s7443_s3 = inlined_call_operand.vmem [shape: f32[1,512], index: 3, kind: input, shape index: {}]   ;;  %s7444_s4 = inlined_call_operand.hbm [shape: bf16[128,512], index: 4, kind: input, shape index: {}]   ;;  %s7445_s5 = inlined_call_operand.hbm [shape: bf16[128,512], index: 5, kind: input, shape index: {}]   ;;  %s7446_s6 = inlined_call_operand.vmem [shape: f32[1,512], index: 6, kind: input, shape index: {}]   ;;  %s7447_s7 = inlined_call_operand.hbm [shape: bf16[128,128], index: 7, kind: input, shape index: {}]   ;;  %s7448_s8 = inlined_call_operand.vmem [shape: f32[1,128], index: 8, kind: input, shape index: {}]   ;;  %s7449_s9 = inlined_call_operand.hbm [shape: f32[72,128], index: 9, kind: output, shape index: {0}]   ;;  %s7450_s10 = inlined_call_operand.hbm [shape: f32[2,8,128], index: 10, kind: output, shape index: {1}]   ;;  %s7451_s11 = inlined_call_operand.hbm [shape: f32[2,8,128], index: 11, kind: output, shape index: {2}]  }
   0x1   :  { %18 = vsyncpa [#allocation8], 0 }
   0x2   :  { %19 = vsyncpa [#allocation11], 0 }
   0x3   :  { %20 = vsyncpa [#allocation14], 0 }
   0x4   :  { %21 = vsyncpa [#allocation6], 0 }
   0x5   :  { %22 = vsyncpa [#allocation17], 0  ;;  %s5340_s17 = smov [#allocation7]   ;;  %s5130_s21 = scalar_lea.hbm %s7441_s1, 4096 }
   0x6   :  { %s40_s18 = sshll.u32 %s5340_s17, 4  ;;  %p5131_p0 = scmp.ne.s32.totalorder %s7441_s1, %s5130_s21  ;;  %s41_s18 = int_to_ptr.vmem [resolvable:$true] %s40_s18 }
   0x7   :  { %p5134_p1 = scmp.lt.u32.totalorder %s5130_s21, %s7441_s1 }
   0x9   :  { %p5136_p2 = pnand %p5134_p1, %p5131_p0 }
   0xb   :  { %5139 = shalt.err (!%p5136_p2)
}
   0xc   :  { %s5140_s26 = scalar_lea.vmem %s41_s18, 4096  ;;  %p5145_p4 = scmp.lt.s32.totalorder %s41_s18, %s41_s18 }
   0xd   :  { %p5141_p3 = scmp.ne.s32.totalorder %s41_s18, %s5140_s26  ;;  %p5146_p5 = scmp.lt.s32.totalorder %s5140_s26, %s5140_s26 }
   0xf   :  { %p5147_p6 = por %p5146_p5, %p5145_p4 }
  0x11   :  { %p5148_p7 = pnand %p5147_p6, %p5141_p3 }
  0x13   :  { %5151 = shalt.err (!%p5148_p7)
}
  0x14   :  { %s5341_s27 = smov 256   ;;  %s5342_s28 = smov 16  }
  0x15   :  { %46 = dma.hbm_to_vmem [thread:$0]  %s7441_s1, 4096, %s41_s18, [#allocation8], %s5341_s27, %s5341_s27, %s5342_s28  }
  0x16   :  { %s5343_s12 = smov [#allocation10]   ;;  %s5344_s14 = smov [#allocation4]  }
  0x17   :  { %s66_s13 = sshll.u32 %s5343_s12, 4  ;;  %s28_s15 = sshll.u32 %s5344_s14, 4  ;;  %s67_s13 = int_to_ptr.vmem [resolvable:$true] %s66_s13  ;;  %s29_s15 = int_to_ptr.vmem [resolvable:$true] %s28_s15 }
  0x18   :  { %s5152_s19 = scalar_lea.hbm %s7444_s4, 4096 }
  0x19   :  { %p5153_p8 = scmp.ne.s32.totalorder %s7444_s4, %s5152_s19  ;;  %p5156_p9 = scmp.lt.u32.totalorder %s5152_s19, %s7444_s4 }
  0x1b   :  { %p5158_p10 = pnand %p5156_p9, %p5153_p8 }
  0x1d   :  { %5161 = shalt.err (!%p5158_p10)
}
  0x1e   :  { %s5162_s1 = scalar_lea.vmem %s67_s13, 4096  ;;  %p5167_p12 = scmp.lt.s32.totalorder %s67_s13, %s67_s13 }
  0x1f   :  { %p5163_p11 = scmp.ne.s32.totalorder %s67_s13, %s5162_s1  ;;  %p5168_p13 = scmp.lt.s32.totalorder %s5162_s1, %s5162_s1 }
  0x21   :  { %p5169_p0 = por %p5168_p13, %p5167_p12 }
  0x23   :  { %p5170_p1 = pnand %p5169_p0, %p5163_p11 }
  0x25   :  { %5173 = shalt.err (!%p5170_p1)
}
  0x26   :  { %72 = dma.hbm_to_vmem [thread:$0]  %s7444_s4, 4096, %s67_s13, [#allocation11], %s5341_s27, %s5341_s27, %s5342_s28  }
  0x27   :  { %s5174_s29 = scalar_lea.hbm %s7440_s0, 576 }
  0x28   :  { %p5175_p2 = scmp.ne.s32.totalorder %s7440_s0, %s5174_s29  ;;  %p5178_p3 = scmp.lt.u32.totalorder %s5174_s29, %s7440_s0 }
  0x2a   :  { %p5180_p4 = pnand %p5178_p3, %p5175_p2 }
  0x2c   :  { %5183 = shalt.err (!%p5180_p4)
}
  0x2d   :  { %s5184_s17 = scalar_lea.vmem %s29_s15, 576  ;;  %p5189_p6 = scmp.lt.s32.totalorder %s29_s15, %s29_s15 }
  0x2e   :  { %p5185_p5 = scmp.ne.s32.totalorder %s29_s15, %s5184_s17  ;;  %p5190_p7 = scmp.lt.s32.totalorder %s5184_s17, %s5184_s17 }
  0x30   :  { %p5191_p8 = por %p5190_p7, %p5189_p6 }
  0x32   :  { %p5192_p9 = pnand %p5191_p8, %p5185_p5 }
  0x34   :  { %5195 = shalt.err (!%p5192_p9)
}
  0x35   :  { %s5345_s4 = smov 64   ;;  %s5346_s13 = smov 4  }
  0x36   :  { %34 = dma.hbm_to_vmem [thread:$0]  %s7440_s0, 576, %s29_s15, [#allocation5], %s5345_s4, %s5345_s4, %s5346_s13  }
  0x37   :  { %s5347_s21 = smov [#allocation9]   ;;  %s5348_s23 = smov [#allocation12]  }
  0x38   :  { %s52_s22 = sshll.u32 %s5347_s21, 4  ;;  %s78_s1 = sshll.u32 %s5348_s23, 4  ;;  %s53_s22 = int_to_ptr.vmem [resolvable:$true] %s52_s22  ;;  %s79_s1 = int_to_ptr.vmem [resolvable:$true] %s78_s1 }
  0x39   :  { %s5196_s25 = scalar_lea.hbm %s7442_s2, 4096 }
  0x3a   :  { %p5197_p10 = scmp.ne.s32.totalorder %s7442_s2, %s5196_s25  ;;  %p5200_p11 = scmp.lt.u32.totalorder %s5196_s25, %s7442_s2 }
  0x3c   :  { %p5202_p12 = pnand %p5200_p11, %p5197_p10 }
  0x3e   :  { %5205 = shalt.err (!%p5202_p12)
}
  0x3f   :  { %s5206_s0 = scalar_lea.vmem %s53_s22, 4096  ;;  %p5211_p0 = scmp.lt.s32.totalorder %s53_s22, %s53_s22 }
  0x40   :  { %p5207_p13 = scmp.ne.s32.totalorder %s53_s22, %s5206_s0  ;;  %p5212_p1 = scmp.lt.s32.totalorder %s5206_s0, %s5206_s0 }
  0x42   :  { %p5213_p2 = por %p5212_p1, %p5211_p0 }
  0x44   :  { %p5214_p3 = pnand %p5213_p2, %p5207_p13 }
  0x46   :  { %5217 = shalt.err (!%p5214_p3)
}
  0x47   :  { %58 = dma.hbm_to_vmem [thread:$0]  %s7442_s2, 4096, %s53_s22, [#allocation8], %s5341_s27, %s5341_s27, %s5342_s28  }
  0x48   :  { %s5218_s19 = scalar_lea.hbm %s7445_s5, 4096 }
  0x49   :  { %p5219_p4 = scmp.ne.s32.totalorder %s7445_s5, %s5218_s19  ;;  %p5222_p5 = scmp.lt.u32.totalorder %s5218_s19, %s7445_s5 }
  0x4b   :  { %p5224_p6 = pnand %p5222_p5, %p5219_p4 }
  0x4d   :  { %5227 = shalt.err (!%p5224_p6)
}
  0x4e   :  { %s5228_s24 = scalar_lea.vmem %s79_s1, 4096  ;;  %p5233_p8 = scmp.lt.s32.totalorder %s79_s1, %s79_s1 }
  0x4f   :  { %p5229_p7 = scmp.ne.s32.totalorder %s79_s1, %s5228_s24  ;;  %p5234_p9 = scmp.lt.s32.totalorder %s5228_s24, %s5228_s24 }
  0x51   :  { %p5235_p10 = por %p5234_p9, %p5233_p8 }
  0x53   :  { %p5236_p11 = pnand %p5235_p10, %p5229_p7 }
  0x55   :  { %5239 = shalt.err (!%p5236_p11)
}
  0x56   :  { %84 = dma.hbm_to_vmem [thread:$0]  %s7445_s5, 4096, %s79_s1, [#allocation11], %s5341_s27, %s5341_s27, %s5342_s28  }
  0x57   :  { %s5349_s25 = smov [#allocation13]   ;;  %s5240_s12 = scalar_lea.hbm %s7447_s7, 1024 }
  0x58   :  { %s92_s26 = sshll.u32 %s5349_s25, 4  ;;  %p5241_p12 = scmp.ne.s32.totalorder %s7447_s7, %s5240_s12  ;;  %s93_s26 = int_to_ptr.vmem [resolvable:$true] %s92_s26 }
  0x59   :  { %p5244_p13 = scmp.lt.u32.totalorder %s5240_s12, %s7447_s7 }
  0x5b   :  { %p5246_p0 = pnand %p5244_p13, %p5241_p12 }
  0x5d   :  { %5249 = shalt.err (!%p5246_p0)
}
  0x5e   :  { %s5250_s17 = scalar_lea.vmem %s93_s26, 1024  ;;  %p5255_p2 = scmp.lt.s32.totalorder %s93_s26, %s93_s26 }
  0x5f   :  { %p5251_p1 = scmp.ne.s32.totalorder %s93_s26, %s5250_s17  ;;  %p5256_p3 = scmp.lt.s32.totalorder %s5250_s17, %s5250_s17 }
  0x61   :  { %p5257_p4 = por %p5256_p3, %p5255_p2 }
  0x63   :  { %p5258_p5 = pnand %p5257_p4, %p5251_p1 }
  0x65   :  { %5261 = shalt.err (!%p5258_p5)
}
  0x66   :  { %98 = dma.hbm_to_vmem [thread:$0]  %s7447_s7, 1024, %s93_s26, [#allocation14], %s5345_s4, %s5345_s4, %s5346_s13  }
  0x67   :  { %5328 = dma.done.wait [#allocation5], 576  }
  0x68   :  { %5329 = vsyncadd [#allocation5], 4294966720 }
  0x69   :  { %5330 = dma.done.wait [#allocation8], 8192  }
  0x6a   :  { %5331 = vsyncadd [#allocation8], 4294959104 }
  0x6b   :  { %5332 = dma.done.wait [#allocation11], 8192  }
  0x6c   :  { %5333 = vsyncadd [#allocation11], 4294959104 }
  0x6d   :  { %5334 = dma.done.wait [#allocation14], 1024  }
  0x6e   :  { %5335 = vsyncadd [#allocation14], 4294966272  ;;  %v7452_v0 = vmov 0   ;;  %v4445_v1 = vld [vmem:[#allocation7 + $0xc] ss:$16 sps:$4 sm:$0xff]   ;;  %v4479_v36 = vld [vmem:[#allocation4 + $0x8] sm:$0xff]  }
  0x6f   :  { %598 = vmatprep.mubr.bf16.mxu1 %v7452_v0  ;;  %517 = vmatprep.mubr.bf16.mxu0 %v7452_v0  ;;  %v4447_v2 = vld [vmem:[#allocation7 + $0x8] ss:$16 sps:$4 sm:$0xff]   ;;  %v4448_v3 = vld [vmem:[#allocation7 + $0x2c] ss:$16 sps:$4 sm:$0xff]   ;;  %v4475_v10 = vld [vmem:[#allocation7 + $0x4] ss:$16 sps:$4 sm:$0xff]  }
  0x70   :  { %566 = vmatprep.subr.bf16.mxu1 %v4445_v1  ;;  %v4450_v4 = vld [vmem:[#allocation7 + $0x28] ss:$16 sps:$4 sm:$0xff]   ;;  %v4451_v5 = vld [vmem:[#allocation7 + $0x4c] ss:$16 sps:$4 sm:$0xff]   ;;  %v4478_v12 = vld [vmem:[#allocation7] ss:$16 sps:$4 sm:$0xff]   ;;  %485 = vmatprep.subr.bf16.mxu0 %v4475_v10 }
  0x71   :  { %567 = vmatpush1.bf16.msra.mxu1 %v4447_v2  ;;  %v4453_v6 = vld [vmem:[#allocation7 + $0x48] ss:$16 sps:$4 sm:$0xff]   ;;  %v4454_v7 = vld [vmem:[#allocation7 + $0x6c] ss:$16 sps:$4 sm:$0xff]   ;;  %486 = vmatpush1.bf16.msra.mxu0 %v4478_v12  ;;  %v4480_v14 = vld [vmem:[#allocation7 + $0x24] ss:$16 sps:$4 sm:$0xff]  }
  0x72   :  { %568 = vmatprep.subr.bf16.mxu1 %v4448_v3  ;;  %v4456_v8 = vld [vmem:[#allocation7 + $0x68] ss:$16 sps:$4 sm:$0xff]   ;;  %v4457_v9 = vld [vmem:[#allocation7 + $0x8c] ss:$16 sps:$4 sm:$0xff]   ;;  %v4484_v15 = vld [vmem:[#allocation7 + $0x20] ss:$16 sps:$4 sm:$0xff]   ;;  %487 = vmatprep.subr.bf16.mxu0 %v4480_v14 }
  0x73   :  { %v4459_v11 = vld [vmem:[#allocation7 + $0x88] ss:$16 sps:$4 sm:$0xff]   ;;  %v4460_v13 = vld [vmem:[#allocation7 + $0xac] ss:$16 sps:$4 sm:$0xff]   ;;  %v4486_v18 = vld [vmem:[#allocation7 + $0x44] ss:$16 sps:$4 sm:$0xff]  }
  0x74   :  { %v4462_v16 = vld [vmem:[#allocation7 + $0xa8] ss:$16 sps:$4 sm:$0xff]   ;;  %v4463_v17 = vld [vmem:[#allocation7 + $0xcc] ss:$16 sps:$4 sm:$0xff]   ;;  %v4488_v19 = vld [vmem:[#allocation7 + $0x40] ss:$16 sps:$4 sm:$0xff]  }
  0x75   :  { %569 = vmatpush1.bf16.msra.mxu1 %v4450_v4  ;;  %488 = vmatpush1.bf16.msra.mxu0 %v4484_v15  ;;  %v4465_v20 = vld [vmem:[#allocation7 + $0xc8] ss:$16 sps:$4 sm:$0xff]   ;;  %v4493_v21 = vld [vmem:[#allocation7 + $0x64] ss:$16 sps:$4 sm:$0xff]   ;;  %v4466_v22 = vld [vmem:[#allocation7 + $0xec] ss:$16 sps:$4 sm:$0xff]  }
  0x76   :  { %570 = vmatprep.subr.bf16.mxu1 %v4451_v5  ;;  %489 = vmatprep.subr.bf16.mxu0 %v4486_v18  ;;  %v4495_v23 = vld [vmem:[#allocation7 + $0x60] ss:$16 sps:$4 sm:$0xff]   ;;  %v4499_v24 = vld [vmem:[#allocation7 + $0x84] ss:$16 sps:$4 sm:$0xff]   ;;  %v4468_v25 = vld [vmem:[#allocation7 + $0xe8] ss:$16 sps:$4 sm:$0xff]  }
  0x77   :  { %v5510_v26 = vld [vmem:[#allocation9 + $0x4] ss:$16 sps:$4 sm:$0xff]   ;;  %v4501_v27 = vld [vmem:[#allocation7 + $0x80] ss:$16 sps:$4 sm:$0xff]   ;;  %v5566_v53 = vld [vmem:[#allocation9 + $0xc] ss:$16 sps:$4 sm:$0xff]  }
  0x78   :  { %v4469_v28 = vld [vmem:[#allocation4] sm:$0xff]   ;;  %v4505_v29 = vld [vmem:[#allocation7 + $0xa4] ss:$16 sps:$4 sm:$0xff]   ;;  %v4491_v44 = vld [vmem:[#allocation4 + $0x10] sm:$0xff]   ;;  %vm5352_vm0 = vmmov 0  }
  0x79   :  { %571 = vmatpush1.bf16.msra.mxu1 %v4453_v6  ;;  %490 = vmatpush1.bf16.msra.mxu0 %v4488_v19  ;;  %v5512_v30 = vld [vmem:[#allocation9] ss:$16 sps:$4 sm:$0xff]   ;;  %v5515_v31 = vld [vmem:[#allocation9 + $0x24] ss:$16 sps:$4 sm:$0xff]   ;;  %v4515_v54 = vld [vmem:[#allocation4 + $0x20] ss:$0 sps:$4 sm:$0xff]  }
  0x7a   :  { %572 = vmatprep.subr.bf16.mxu1 %v4454_v7  ;;  %491 = vmatprep.subr.bf16.mxu0 %v4493_v21  ;;  %v4508_v32 = vld [vmem:[#allocation7 + $0xa0] ss:$16 sps:$4 sm:$0xff]   ;;  %v4509_v33 = vld [vmem:[#allocation7 + $0xc4] ss:$16 sps:$4 sm:$0xff]   ;;  %v5580_v55 = vld [vmem:[#allocation9 + $0x8] ss:$16 sps:$4 sm:$0xff]  }
  0x7b   :  { %v5518_v34 = vld [vmem:[#allocation9 + $0x20] ss:$16 sps:$4 sm:$0xff]   ;;  %v5522_v35 = vld [vmem:[#allocation9 + $0x44] ss:$16 sps:$4 sm:$0xff]   ;;  %v5583_v56 = vld [vmem:[#allocation9 + $0x2c] ss:$16 sps:$4 sm:$0xff]  }
  0x7c   :  { %v4513_v37 = vld [vmem:[#allocation7 + $0xc0] ss:$16 sps:$4 sm:$0xff]   ;;  %v4516_v38 = vld [vmem:[#allocation7 + $0xe4] ss:$16 sps:$4 sm:$0xff]   ;;  %v5591_v57 = vld [vmem:[#allocation9 + $0x28] ss:$16 sps:$4 sm:$0xff]  }
  0x7d   :  { %573 = vmatpush1.bf16.msra.mxu1 %v4456_v8  ;;  %492 = vmatpush1.bf16.msra.mxu0 %v4495_v23  ;;  %v5525_v39 = vld [vmem:[#allocation9 + $0x40] ss:$16 sps:$4 sm:$0xff]   ;;  %v5528_v40 = vld [vmem:[#allocation9 + $0x64] ss:$16 sps:$4 sm:$0xff]   ;;  %v5595_v58 = vld [vmem:[#allocation9 + $0x4c] ss:$16 sps:$4 sm:$0xff]  }
  0x7e   :  { %574 = vmatprep.subr.bf16.mxu1 %v4457_v9  ;;  %493 = vmatprep.subr.bf16.mxu0 %v4499_v24  ;;  %v4518_v41 = vld [vmem:[#allocation7 + $0xe0] ss:$16 sps:$4 sm:$0xff]   ;;  %v5535_v43 = vld [vmem:[#allocation9 + $0x84] ss:$16 sps:$4 sm:$0xff]   ;;  %v5599_v59 = vld [vmem:[#allocation9 + $0x48] ss:$16 sps:$4 sm:$0xff]  }
  0x7f   :  { %v5532_v42 = vld [vmem:[#allocation9 + $0x60] ss:$16 sps:$4 sm:$0xff]   ;;  %v5541_v46 = vld [vmem:[#allocation9 + $0xa4] ss:$16 sps:$4 sm:$0xff]   ;;  %v5602_v60 = vld [vmem:[#allocation9 + $0x6c] ss:$16 sps:$4 sm:$0xff]  }
  0x80   :  { %v5539_v45 = vld [vmem:[#allocation9 + $0x80] ss:$16 sps:$4 sm:$0xff]   ;;  %v5548_v48 = vld [vmem:[#allocation9 + $0xc4] ss:$16 sps:$4 sm:$0xff]   ;;  %v5606_v61 = vld [vmem:[#allocation9 + $0x68] ss:$16 sps:$4 sm:$0xff]  }
  0x81   :  { %575 = vmatpush1.bf16.msra.mxu1 %v4459_v11  ;;  %494 = vmatpush1.bf16.msra.mxu0 %v4501_v27  ;;  %v5544_v47 = vld [vmem:[#allocation9 + $0xa0] ss:$16 sps:$4 sm:$0xff]   ;;  %v4502_v49 = vld [vmem:[#allocation4 + $0x18] sm:$0xff]   ;;  %v5609_v62 = vld [vmem:[#allocation9 + $0x8c] ss:$16 sps:$4 sm:$0xff]  }
  0x82   :  { %576 = vmatprep.subr.bf16.mxu1 %v4460_v13  ;;  %495 = vmatprep.subr.bf16.mxu0 %v4505_v29  ;;  %v5554_v50 = vld [vmem:[#allocation9 + $0xc0] ss:$16 sps:$4 sm:$0xff]   ;;  %v5557_v51 = vld [vmem:[#allocation9 + $0xe4] ss:$16 sps:$4 sm:$0xff]   ;;  %v5612_v63 = vld [vmem:[#allocation9 + $0x88] ss:$16 sps:$4 sm:$0xff]  }
  0x83   :  { %v5562_v52 = vld [vmem:[#allocation9 + $0xe0] ss:$16 sps:$4 sm:$0xff]   ;;  %v5615_v1 = vld [vmem:[#allocation9 + $0xac] ss:$16 sps:$4 sm:$0xff]   ;;  %v5618_v2 = vld [vmem:[#allocation9 + $0xa8] ss:$16 sps:$4 sm:$0xff]  }
  0x84   :  { %v5621_v3 = vld [vmem:[#allocation9 + $0xcc] ss:$16 sps:$4 sm:$0xff]   ;;  %v5624_v4 = vld [vmem:[#allocation9 + $0xc8] ss:$16 sps:$4 sm:$0xff]   ;;  %v5652_v7 = vld [vmem:[#allocation12 + $0x4] ss:$16 sps:$4 sm:$0xff]  }
  0x85   :  { %577 = vmatpush1.bf16.msra.mxu1 %v4462_v16  ;;  %496 = vmatpush1.bf16.msra.mxu0 %v4508_v32  ;;  %v5627_v5 = vld [vmem:[#allocation9 + $0xec] ss:$16 sps:$4 sm:$0xff]   ;;  %v5630_v6 = vld [vmem:[#allocation9 + $0xe8] ss:$16 sps:$4 sm:$0xff]  }
  0x86   :  { %578 = vmatprep.subr.bf16.mxu1 %v4463_v17  ;;  %497 = vmatprep.subr.bf16.mxu0 %v4509_v33  ;;  %v5654_v8 = vld [vmem:[#allocation12 + $0xc] ss:$16 sps:$4 sm:$0xff]  }
  0x89   :  { %579 = vmatpush1.bf16.msra.mxu1 %v4465_v20  ;;  %498 = vmatpush1.bf16.msra.mxu0 %v4513_v37 }
  0x8a   :  { %580 = vmatprep.subr.bf16.mxu1 %v4466_v22  ;;  %499 = vmatprep.subr.bf16.mxu0 %v4516_v38  ;;  %v248_v38 = vld [vmem:[%s7443_s3] sm:$0xf] }
  0x8d   :  { %581 = vmatpush1.bf16.msra.mxu1 %v4468_v25  ;;  %500 = vmatpush1.bf16.msra.mxu0 %v4518_v41  ;;  %v277_v25 = vlaneseq }
  0x8e   :  { %843 = vmatprep.subr.bf16.mxu1 %v5510_v26  ;;  %958 = vmatprep.subr.bf16.mxu0 %v5510_v26 }
  0x8f   :  { %v5688_v32 = vshrl.u32 %v277_v25, 7 }
  0x90   :  { %599 = vmatmul.mubr.bf16.vlgmr.msra.gmra.mrb[0].mxu1 %v4469_v28  ;;  %518 = vmatmul.mubr.bf16.vlgmr.msra.gmra.mrb[0].mxu0 %v4469_v28 }
  0x91   :  { %844 = vmatpush1.bf16.msra.mxu1 %v5512_v30  ;;  %608 = vmatprep.mubr.bf16.mxu1 %v7452_v0  ;;  %7823 = vst [vmem:[#allocation36_spill] sm:$0xff] %v5688_v32  ;;  %v7455_v37 = vsub.s32 1, %v5688_v32 }
  0x92   :  { %845 = vmatprep.subr.bf16.mxu1 %v5515_v31  ;;  %959 = vmatpush1.bf16.msra.mxu0 %v5512_v30 }
  0x93   :  { %527 = vmatprep.mubr.bf16.mxu0 %v7452_v0  ;;  %960 = vmatprep.subr.bf16.mxu0 %v5515_v31 }
  0x95   :  { %846 = vmatpush1.bf16.msra.mxu1 %v5518_v34 }
  0x96   :  { %847 = vmatprep.subr.bf16.mxu1 %v5522_v35  ;;  %961 = vmatpush1.bf16.msra.mxu0 %v5518_v34 }
  0x97   :  { %962 = vmatprep.subr.bf16.mxu0 %v5522_v35 }
  0x98   :  { %609 = vmatmul.mubr.bf16.gmra.mrb[4].mxu1 %v4479_v36  ;;  %528 = vmatmul.mubr.bf16.gmra.mrb[4].mxu0 %v4479_v36  ;;  %v7454_v36 = vsub.s32 0, %v5688_v32 }
  0x99   :  { %848 = vmatpush1.bf16.msra.mxu1 %v5525_v39  ;;  %618 = vmatprep.mubr.bf16.mxu1 %v7452_v0 }
  0x9a   :  { %849 = vmatprep.subr.bf16.mxu1 %v5528_v40  ;;  %963 = vmatpush1.bf16.msra.mxu0 %v5525_v39  ;;  %v5699_v41 = vrot.slane %v248_v38, %v7454_v36 }
  0x9b   :  { %537 = vmatprep.mubr.bf16.mxu0 %v7452_v0  ;;  %964 = vmatprep.subr.bf16.mxu0 %v5528_v40 }
  0x9c   :  { %7825 = vst [vmem:[#allocation38_spill] sm:$0xff] %v5699_v41 }
  0x9d   :  { %850 = vmatpush1.bf16.msra.mxu1 %v5532_v42 }
  0x9e   :  { %851 = vmatprep.subr.bf16.mxu1 %v5535_v43  ;;  %965 = vmatpush1.bf16.msra.mxu0 %v5532_v42 }
  0x9f   :  { %966 = vmatprep.subr.bf16.mxu0 %v5535_v43 }
  0xa0   :  { %619 = vmatmul.mubr.bf16.gmra.mrb[8].mxu1 %v4491_v44  ;;  %538 = vmatmul.mubr.bf16.gmra.mrb[8].mxu0 %v4491_v44  ;;  %v5703_v44 = vrot.slane %v248_v38, %v7455_v37 }
  0xa1   :  { %852 = vmatpush1.bf16.msra.mxu1 %v5539_v45  ;;  %628 = vmatprep.mubr.bf16.mxu1 %v7452_v0 }
  0xa2   :  { %853 = vmatprep.subr.bf16.mxu1 %v5541_v46  ;;  %547 = vmatprep.mubr.bf16.mxu0 %v7452_v0 }
  0xa3   :  { %967 = vmatpush1.bf16.msra.mxu0 %v5539_v45 }
  0xa4   :  { %968 = vmatprep.subr.bf16.mxu0 %v5541_v46 }
  0xa5   :  { %854 = vmatpush1.bf16.msra.mxu1 %v5544_v47 }
  0xa6   :  { %855 = vmatprep.subr.bf16.mxu1 %v5548_v48 }
  0xa7   :  { %969 = vmatpush1.bf16.msra.mxu0 %v5544_v47 }
  0xa8   :  { %629 = vmatmul.mubr.bf16.gmra.mrb[12].mxu1 %v4502_v49  ;;  %970 = vmatprep.subr.bf16.mxu0 %v5548_v48 }
  0xa9   :  { %638 = vmatprep.mubr.bf16.mxu1 %v7452_v0  ;;  %856 = vmatpush1.bf16.msra.mxu1 %v5554_v50 }
  0xaa   :  { %857 = vmatprep.subr.bf16.mxu1 %v5557_v51  ;;  %548 = vmatmul.mubr.bf16.gmra.mrb[12].mxu0 %v4502_v49 }
  0xab   :  { %557 = vmatprep.mubr.bf16.mxu0 %v7452_v0  ;;  %971 = vmatpush1.bf16.msra.mxu0 %v5554_v50 }
  0xac   :  { %972 = vmatprep.subr.bf16.mxu0 %v5557_v51 }
  0xad   :  { %858 = vmatpush1.bf16.msra.mxu1 %v5562_v52 }
  0xae   :  { %884 = vmatprep.subr.bf16.mxu1 %v5566_v53 }
  0xaf   :  { %973 = vmatpush1.bf16.msra.mxu0 %v5562_v52 }
  0xb0   :  { %639 = vmatmul.mubr.bf16.gmra.mrb[16].mxu1 %v4515_v54  ;;  %1232 = vmatprep.subr.bf16.mxu0 %v5652_v7 }
  0xb1   :  { %875 = vmatprep.mubr.bf16.mxu1 %v7452_v0 }
  0xb2   :  { %558 = vmatmul.mubr.bf16.gmra.mrb[16].mxu0 %v4515_v54 }
  0xb3   :  { %990 = vmatprep.mubr.bf16.mxu0 %v7452_v0 }
  0xb8   :  { %876 = vmatmul.mubr.bf16.vlgmr.msra.gmra.mrb[20].mxu1 %v7452_v0 }
  0xb9   :  { %885 = vmatpush1.bf16.msra.mxu1 %v5580_v55  ;;  %916 = vmatprep.mubr.bf16.mxu1 %v7452_v0 }
  0xba   :  { %886 = vmatprep.subr.bf16.mxu1 %v5583_v56 }
  0xbd   :  { %887 = vmatpush1.bf16.msra.mxu1 %v5591_v57 }
  0xbe   :  { %888 = vmatprep.subr.bf16.mxu1 %v5595_v58 }
  0xc1   :  { %889 = vmatpush1.bf16.msra.mxu1 %v5599_v59 }
  0xc2   :  { %890 = vmatprep.subr.bf16.mxu1 %v5602_v60 }
  0xc5   :  { %891 = vmatpush1.bf16.msra.mxu1 %v5606_v61 }
  0xc6   :  { %892 = vmatprep.subr.bf16.mxu1 %v5609_v62 }
  0xc9   :  { %893 = vmatpush1.bf16.msra.mxu1 %v5612_v63 }
  0xca   :  { %894 = vmatprep.subr.bf16.mxu1 %v5615_v1 }
  0xcd   :  { %895 = vmatpush1.bf16.msra.mxu1 %v5618_v2 }
  0xce   :  { %896 = vmatprep.subr.bf16.mxu1 %v5621_v3 }
  0xd1   :  { %897 = vmatpush1.bf16.msra.mxu1 %v5624_v4 }
  0xd2   :  { %898 = vmatprep.subr.bf16.mxu1 %v5627_v5 }
  0xd5   :  { %899 = vmatpush1.bf16.msra.mxu1 %v5630_v6 }
  0xd6   :  { %999 = vmatprep.subr.bf16.mxu1 %v5566_v53 }
  0xd8   :  { %917 = vmatmul.mubr.bf16.vlgmr.msra.gmra.mrb[24].mxu1 %v7452_v0 }
  0xd9   :  { %1000 = vmatpush1.bf16.msra.mxu1 %v5580_v55  ;;  %1031 = vmatprep.mubr.bf16.mxu1 %v7452_v0 }
  0xda   :  { %1001 = vmatprep.subr.bf16.mxu1 %v5583_v56 }
  0xdd   :  { %1002 = vmatpush1.bf16.msra.mxu1 %v5591_v57 }
  0xde   :  { %1003 = vmatprep.subr.bf16.mxu1 %v5595_v58 }
  0xe1   :  { %1004 = vmatpush1.bf16.msra.mxu1 %v5599_v59 }
  0xe2   :  { %1005 = vmatprep.subr.bf16.mxu1 %v5602_v60 }
  0xe5   :  { %1006 = vmatpush1.bf16.msra.mxu1 %v5606_v61 }
  0xe6   :  { %1007 = vmatprep.subr.bf16.mxu1 %v5609_v62 }
  0xe9   :  { %1008 = vmatpush1.bf16.msra.mxu1 %v5612_v63 }
  0xea   :  { %1009 = vmatprep.subr.bf16.mxu1 %v5615_v1 }
  0xed   :  { %1010 = vmatpush1.bf16.msra.mxu1 %v5618_v2 }
  0xee   :  { %1011 = vmatprep.subr.bf16.mxu1 %v5621_v3 }
  0xf1   :  { %1012 = vmatpush1.bf16.msra.mxu1 %v5624_v4 }
  0xf2   :  { %1013 = vmatprep.subr.bf16.mxu1 %v5627_v5 }
  0xf5   :  { %1014 = vmatpush1.bf16.msra.mxu1 %v5630_v6 }
  0xf6   :  { %1273 = vmatprep.subr.bf16.mxu1 %v5654_v8 }
 0x163   :  { %v600_v9 = vpop.f32.mrb[0].mxu1  ;;  %v519_v17 = vpop.f32.mrb[0].mxu0 }
 0x164   :  { %v602_v10 = vpop.f32.mrb[1].mxu1  ;;  %v521_v18 = vpop.f32.mrb[1].mxu0  ;;  %v520_v49 = vadd.f32 %v519_v17, %v5699_v41 }
 0x165   :  { %v5658_v11 = vpop.f32.mrb[2].mxu1  ;;  %v5672_v20 = vpop.f32.mrb[2].mxu0  ;;  %v522_v54 = vadd.f32 %v521_v18, %v5703_v44 }
 0x166   :  { %v5660_v12 = vpop.f32.mrb[3].mxu1  ;;  %v5676_v22 = vpop.f32.mrb[3].mxu0 }
 0x16b   :  { %v5662_v13 = vpop.f32.mrb[4].mxu1 }
 0x16c   :  { %7812 = vst [vmem:[#allocation25_spill] sm:$0xff] %v5662_v13  ;;  %v5664_v14 = vpop.f32.mrb[5].mxu1  ;;  %v5800_v13 = vld [vmem:[#allocation12 + $0x88] ss:$16 sps:$4 sm:$0xff]  }
 0x16d   :  { %7813 = vst [vmem:[#allocation26_spill] sm:$0xff] %v5664_v14  ;;  %v5666_v15 = vpop.f32.mrb[6].mxu1  ;;  %7853 = vst [vmem:[#allocation65_spill] sm:$0xff] %v5800_v13 }
 0x16e   :  { %7814 = vst [vmem:[#allocation27_spill] sm:$0xff] %v5666_v15  ;;  %v5668_v16 = vpop.f32.mrb[7].mxu1 }
 0x16f   :  { %7815 = vst [vmem:[#allocation28_spill] sm:$0xff] %v5668_v16 }
 0x173   :  { %v5670_v19 = vpop.f32.mrb[8].mxu1 }
 0x174   :  { %7816 = vst [vmem:[#allocation29_spill] sm:$0xff] %v5670_v19  ;;  %v5674_v21 = vpop.f32.mrb[9].mxu1 }
 0x175   :  { %7817 = vst [vmem:[#allocation30_spill] sm:$0xff] %v5674_v21  ;;  %v5678_v23 = vpop.f32.mrb[10].mxu1 }
 0x176   :  { %7818 = vst [vmem:[#allocation31_spill] sm:$0xff] %v5678_v23  ;;  %v5680_v24 = vpop.f32.mrb[11].mxu1 }
 0x177   :  { %7819 = vst [vmem:[#allocation32_spill] sm:$0xff] %v5680_v24 }
 0x17b   :  { %v5682_v27 = vpop.f32.mrb[12].mxu1 }
 0x17c   :  { %7820 = vst [vmem:[#allocation33_spill] sm:$0xff] %v5682_v27  ;;  %v5684_v28 = vpop.f32.mrb[13].mxu1  ;;  %v5707_v27 = vpop.f32.mrb[4].mxu0 }
 0x17d   :  { %7821 = vst [vmem:[#allocation34_spill] sm:$0xff] %v5684_v28  ;;  %v5686_v29 = vpop.f32.mrb[14].mxu1  ;;  %7826 = vst [vmem:[#allocation39_spill] sm:$0xff] %v5707_v27  ;;  %v5709_v23 = vpop.f32.mrb[5].mxu0 }
 0x17e   :  { %7822 = vst [vmem:[#allocation35_spill] sm:$0xff] %v5686_v29  ;;  %v5690_v33 = vpop.f32.mrb[15].mxu1  ;;  %7827 = vst [vmem:[#allocation40_spill] sm:$0xff] %v5709_v23  ;;  %v5711_v36 = vpop.f32.mrb[6].mxu0 }
 0x17f   :  { %7824 = vst [vmem:[#allocation37_spill] sm:$0xff] %v5690_v33  ;;  %7828 = vst [vmem:[#allocation41_spill] sm:$0xff] %v5711_v36  ;;  %v5713_v21 = vpop.f32.mrb[7].mxu0 }
 0x180   :  { %7829 = vst [vmem:[#allocation42_spill] sm:$0xff] %v5713_v21  ;;  %v5715_v37 = vpop.f32.mrb[8].mxu0 }
 0x181   :  { %7830 = vst [vmem:[#allocation43_spill] sm:$0xff] %v5715_v37  ;;  %v5717_v19 = vpop.f32.mrb[9].mxu0  ;;  %v7456_v37 = vsub.s32 2, %v5688_v32 }
 0x182   :  { %7831 = vst [vmem:[#allocation44_spill] sm:$0xff] %v5717_v19  ;;  %v5719_v17 = vpop.f32.mrb[10].mxu0  ;;  %v7457_v19 = vsub.s32 3, %v5688_v32  ;;  %v5804_v32 = vld [vmem:[#allocation12 + $0xa4] ss:$16 sps:$4 sm:$0xff]  }
 0x183   :  { %7832 = vst [vmem:[#allocation45_spill] sm:$0xff] %v5719_v17  ;;  %v5721_v18 = vpop.f32.mrb[11].mxu0  ;;  %7854 = vst [vmem:[#allocation66_spill] sm:$0xff] %v5804_v32 }
 0x184   :  { %7833 = vst [vmem:[#allocation46_spill] sm:$0xff] %v5721_v18  ;;  %v5735_v18 = vrot.slane %v248_v38, %v7456_v37 }
 0x186   :  { %7838 = vst [vmem:[#allocation51_spill] sm:$0xff] %v5735_v18 }
 0x18b   :  { %v877_v25 = vpop.f32.mrb[20].mxu1 }
 0x18c   :  { %v929_v0 = vadd.f32 %v877_v25, %v520_v49  ;;  %v879_v33 = vpop.f32.mrb[21].mxu1  ;;  %v5723_v49 = vpop.f32.mrb[12].mxu0 }
 0x18d   :  { %v930_v29 = vadd.f32 %v879_v33, %v522_v54  ;;  %v881_v28 = vpop.f32.mrb[22].mxu1  ;;  %7834 = vst [vmem:[#allocation47_spill] sm:$0xff] %v5723_v49 }
 0x18e   :  { %v882_v24 = vpop.f32.mrb[23].mxu1  ;;  %v5725_v28 = vpop.f32.mrb[13].mxu0  ;;  %v4239_v25 = vmul.f32 -1.442695, %v929_v0 }
 0x18f   :  { %7835 = vst [vmem:[#allocation48_spill] sm:$0xff] %v5725_v28  ;;  %v5727_v33 = vpop.f32.mrb[14].mxu0  ;;  %v4240_v24 = vmul.f32 -1.442695, %v930_v29  ;;  %v5739_v28 = vrot.slane %v248_v38, %v7457_v19 }
 0x190   :  { %7836 = vst [vmem:[#allocation49_spill] sm:$0xff] %v5727_v33  ;;  %v5729_v54 = vpop.f32.mrb[15].mxu0 }
 0x191   :  { %7837 = vst [vmem:[#allocation50_spill] sm:$0xff] %v5729_v54  ;;  %4650 = vpow2.f32 %v4240_v24  ;;  %7839 = vst [vmem:[#allocation52_spill] sm:$0xff] %v5739_v28  ;;  %v601_v54 = vadd.f32 %v600_v9, %v5735_v18  ;;  %v603_v24 = vadd.f32 %v602_v10, %v5739_v28 }
 0x192   :  { %4652 = vpow2.f32 %v4239_v25 }
 0x19b   :  { %v4651_v21 = vpop.eup %4650 }
 0x19c   :  { %v4653_v49 = vpop.eup %4652  ;;  %v943_v29 = vadd.f32 1.0, %v4651_v21 }
 0x19d   :  { %v942_v0 = vadd.f32 1.0, %v4653_v49 }
 0x19e   :  { %4654 = vrcp.f32 %v943_v29  ;;  %v5768_v29 = vld [vmem:[#allocation12 + $0x4c] ss:$16 sps:$4 sm:$0xff]  }
 0x19f   :  { %4656 = vrcp.f32 %v942_v0  ;;  %7842 = vst [vmem:[#allocation55_spill] sm:$0xff] %v5768_v29  ;;  %v7843_v0 = vmov 0  }
 0x1a8   :  { %v4655_v23 = vpop.eup %4654 }
 0x1a9   :  { %v4657_v38 = vpop.eup %4656  ;;  %v952_v14 = vmul.f32 0.0, %v4655_v23  ;;  %v5766_v23 = vld [vmem:[#allocation12 + $0x44] ss:$16 sps:$4 sm:$0xff]  }
 0x1aa   :  { %7841 = vst [vmem:[#allocation54_spill] sm:$0xff] %v5766_v23 }
 0x1ab   :  { %v918_v25 = vpop.f32.mrb[24].mxu1 }
 0x1ac   :  { %v931_v33 = vadd.f32 %v918_v25, %v601_v54  ;;  %v920_v17 = vpop.f32.mrb[25].mxu1  ;;  %v5746_v54 = vld [vmem:[#allocation12] ss:$16 sps:$4 sm:$0xff]   ;;  %v5776_v25 = vld [vmem:[#allocation12 + $0x48] ss:$16 sps:$4 sm:$0xff]  }
 0x1ad   :  { %v932_v16 = vadd.f32 %v920_v17, %v603_v24  ;;  %v922_v36 = vpop.f32.mrb[26].mxu1  ;;  %v5774_v24 = vld [vmem:[#allocation12 + $0x40] ss:$16 sps:$4 sm:$0xff]   ;;  %7845 = vst [vmem:[#allocation57_spill] sm:$0xff] %v5776_v25 }
 0x1ae   :  { %v4241_v37 = vmul.f32 -1.442695, %v931_v33  ;;  %v923_v15 = vpop.f32.mrb[27].mxu1  ;;  %v5754_v33 = vld [vmem:[#allocation12 + $0x2c] ss:$16 sps:$4 sm:$0xff]   ;;  %7844 = vst [vmem:[#allocation56_spill] sm:$0xff] %v5774_v24 }
 0x1af   :  { %4658 = vtanh.f32 %v932_v16  ;;  %v5748_v15 = vld [vmem:[#allocation12 + $0x8] ss:$16 sps:$4 sm:$0xff]  }
 0x1b0   :  { %4660 = vpow2.f32 %v4241_v37  ;;  %v5752_v37 = vld [vmem:[#allocation12 + $0x24] ss:$16 sps:$4 sm:$0xff]  }
 0x1b9   :  { %v4659_v19 = vpop.eup %4658 }
 0x1ba   :  { %v4661_v21 = vpop.eup %4660  ;;  %v953_v9 = vmul.f32 %v4659_v19, %v4657_v38  ;;  %v5762_v19 = vld [vmem:[#allocation12 + $0x28] ss:$16 sps:$4 sm:$0xff]   ;;  %v5780_v38 = vld [vmem:[#allocation12 + $0x64] ss:$16 sps:$4 sm:$0xff]  }
 0x1bb   :  { %v944_v49 = vadd.f32 1.0, %v4661_v21  ;;  %7840 = vst [vmem:[#allocation53_spill] sm:$0xff] %v5762_v19  ;;  %7846 = vst [vmem:[#allocation58_spill] sm:$0xff] %v5780_v38  ;;  %v5782_v21 = vld [vmem:[#allocation12 + $0x6c] ss:$16 sps:$4 sm:$0xff]  }
 0x1bc   :  { %v5743_v27 = vadd.f32 %v953_v9, %v952_v14  ;;  %v5760_v14 = vld [vmem:[#allocation12 + $0x20] ss:$16 sps:$4 sm:$0xff]   ;;  %7847 = vst [vmem:[#allocation59_spill] sm:$0xff] %v5782_v21 }
 0x1bd   :  { %4662 = vrcp.f32 %v944_v49  ;;  %v5786_v9 = vld [vmem:[#allocation12 + $0x60] ss:$16 sps:$4 sm:$0xff]   ;;  %v5788_v49 = vld [vmem:[#allocation12 + $0x68] ss:$16 sps:$4 sm:$0xff]  }
 0x1be   :  { %4664 = vtanh.f32 %v5743_v27  ;;  %7848 = vst [vmem:[#allocation60_spill] sm:$0xff] %v5786_v9  ;;  %7849 = vst [vmem:[#allocation61_spill] sm:$0xff] %v5788_v49 }
 0x1c7   :  { %v4663_v10 = vpop.eup %4662 }
 0x1c8   :  { %v4665_v17 = vpop.eup %4664 }
 0x1c9   :  { %v956_v36 = vmul.f32 %v4665_v17, %v4663_v10  ;;  %v5792_v10 = vld [vmem:[#allocation12 + $0x84] ss:$16 sps:$4 sm:$0xff]   ;;  %v5794_v17 = vld [vmem:[#allocation12 + $0x8c] ss:$16 sps:$4 sm:$0xff]  }
 0x1ca   :  { %7850 = vst [vmem:[#allocation62_spill] sm:$0xff] %v5792_v10  ;;  %7851 = vst [vmem:[#allocation63_spill] sm:$0xff] %v5794_v17 }
 0x1cb   :  { %v5750_v16 = vpack.c.bf16 %v956_v36, %v956_v36  ;;  %v5798_v36 = vld [vmem:[#allocation12 + $0x80] ss:$16 sps:$4 sm:$0xff]  }
 0x1cc   :  { %7852 = vst [vmem:[#allocation64_spill] sm:$0xff] %v5798_v36 }
 0x1cd   :  { %991 = vmatmul.mubr.bf16.vlgmr.msra.gmra.mrb[20].mxu0 %v5750_v16  ;;  %1032 = vmatmul.mubr.bf16.vlgmr.msra.gmra.mrb[28].mxu1 %v5750_v16 }
 0x1ce   :  { %1233 = vmatpush1.bf16.msra.mxu0 %v5746_v54  ;;  %1274 = vmatpush1.bf16.msra.mxu1 %v5748_v15 }
 0x1cf   :  { %1234 = vmatprep.subr.bf16.mxu0 %v5752_v37  ;;  %1275 = vmatprep.subr.bf16.mxu1 %v5754_v33 }
 0x1d0   :  { %1264 = vmatprep.mubr.bf16.mxu0 %v7843_v0  ;;  %1305 = vmatprep.mubr.bf16.mxu1 %v7843_v0 }
 0x1d2   :  { %1235 = vmatpush1.bf16.msra.mxu0 %v5760_v14  ;;  %1276 = vmatpush1.bf16.msra.mxu1 %v5762_v19 }
 0x1d3   :  { %1236 = vmatprep.subr.bf16.mxu0 %v5766_v23  ;;  %1277 = vmatprep.subr.bf16.mxu1 %v5768_v29 }
 0x1d6   :  { %1237 = vmatpush1.bf16.msra.mxu0 %v5774_v24  ;;  %1278 = vmatpush1.bf16.msra.mxu1 %v5776_v25 }
 0x1d7   :  { %1238 = vmatprep.subr.bf16.mxu0 %v5780_v38  ;;  %1279 = vmatprep.subr.bf16.mxu1 %v5782_v21  ;;  %v5806_v38 = vld [vmem:[#allocation12 + $0xac] ss:$16 sps:$4 sm:$0xff]   ;;  %v5810_v21 = vld [vmem:[#allocation12 + $0xa0] ss:$16 sps:$4 sm:$0xff]  }
 0x1d8   :  { %7855 = vst [vmem:[#allocation67_spill] sm:$0xff] %v5806_v38  ;;  %7856 = vst [vmem:[#allocation68_spill] sm:$0xff] %v5810_v21 }
 0x1da   :  { %1239 = vmatpush1.bf16.msra.mxu0 %v5786_v9  ;;  %1280 = vmatpush1.bf16.msra.mxu1 %v5788_v49  ;;  %v5812_v9 = vld [vmem:[#allocation12 + $0xa8] ss:$16 sps:$4 sm:$0xff]   ;;  %v5816_v49 = vld [vmem:[#allocation12 + $0xc4] ss:$16 sps:$4 sm:$0xff]  }
 0x1db   :  { %1240 = vmatprep.subr.bf16.mxu0 %v5792_v10  ;;  %1281 = vmatprep.subr.bf16.mxu1 %v5794_v17  ;;  %7857 = vst [vmem:[#allocation69_spill] sm:$0xff] %v5812_v9  ;;  %7858 = vst [vmem:[#allocation70_spill] sm:$0xff] %v5816_v49  ;;  %v5818_v10 = vld [vmem:[#allocation12 + $0xcc] ss:$16 sps:$4 sm:$0xff]   ;;  %v5822_v17 = vld [vmem:[#allocation12 + $0xc0] ss:$16 sps:$4 sm:$0xff]  }
 0x1dc   :  { %7859 = vst [vmem:[#allocation71_spill] sm:$0xff] %v5818_v10  ;;  %7860 = vst [vmem:[#allocation72_spill] sm:$0xff] %v5822_v17 }
 0x1de   :  { %1241 = vmatpush1.bf16.msra.mxu0 %v5798_v36  ;;  %1282 = vmatpush1.bf16.msra.mxu1 %v5800_v13  ;;  %v5824_v36 = vld [vmem:[#allocation12 + $0xc8] ss:$16 sps:$4 sm:$0xff]   ;;  %v5828_v13 = vld [vmem:[#allocation12 + $0xe4] ss:$16 sps:$4 sm:$0xff]  }
 0x1df   :  { %1242 = vmatprep.subr.bf16.mxu0 %v5804_v32  ;;  %1283 = vmatprep.subr.bf16.mxu1 %v5806_v38  ;;  %7861 = vst [vmem:[#allocation73_spill] sm:$0xff] %v5824_v36  ;;  %7862 = vst [vmem:[#allocation74_spill] sm:$0xff] %v5828_v13  ;;  %v5830_v32 = vld [vmem:[#allocation12 + $0xec] ss:$16 sps:$4 sm:$0xff]   ;;  %v5834_v38 = vld [vmem:[#allocation12 + $0xe0] ss:$16 sps:$4 sm:$0xff]  }
 0x1e0   :  { %7863 = vst [vmem:[#allocation75_spill] sm:$0xff] %v5830_v32  ;;  %7864 = vst [vmem:[#allocation76_spill] sm:$0xff] %v5834_v38 }
 0x1e2   :  { %1243 = vmatpush1.bf16.msra.mxu0 %v5810_v21  ;;  %1284 = vmatpush1.bf16.msra.mxu1 %v5812_v9  ;;  %v5836_v21 = vld [vmem:[#allocation12 + $0xe8] ss:$16 sps:$4 sm:$0xff]   ;;  %v5840_v9 = vld [vmem:[#allocation10 + $0x4] ss:$16 sps:$4 sm:$0xff]  }
 0x1e3   :  { %1244 = vmatprep.subr.bf16.mxu0 %v5816_v49  ;;  %1285 = vmatprep.subr.bf16.mxu1 %v5818_v10  ;;  %7865 = vst [vmem:[#allocation77_spill] sm:$0xff] %v5836_v21  ;;  %7866 = vst [vmem:[#allocation78_spill] sm:$0xff] %v5840_v9  ;;  %v5842_v49 = vld [vmem:[#allocation10 + $0xc] ss:$16 sps:$4 sm:$0xff]   ;;  %v5846_v10 = vld [vmem:[#allocation10] ss:$16 sps:$4 sm:$0xff]  }
 0x1e4   :  { %7867 = vst [vmem:[#allocation79_spill] sm:$0xff] %v5842_v49  ;;  %7868 = vst [vmem:[#allocation80_spill] sm:$0xff] %v5846_v10 }
 0x1e6   :  { %1245 = vmatpush1.bf16.msra.mxu0 %v5822_v17  ;;  %1286 = vmatpush1.bf16.msra.mxu1 %v5824_v36  ;;  %v5848_v17 = vld [vmem:[#allocation10 + $0x8] ss:$16 sps:$4 sm:$0xff]   ;;  %v5852_v36 = vld [vmem:[#allocation10 + $0x24] ss:$16 sps:$4 sm:$0xff]  }
 0x1e7   :  { %1246 = vmatprep.subr.bf16.mxu0 %v5828_v13  ;;  %1287 = vmatprep.subr.bf16.mxu1 %v5830_v32  ;;  %7869 = vst [vmem:[#allocation81_spill] sm:$0xff] %v5848_v17  ;;  %7870 = vst [vmem:[#allocation82_spill] sm:$0xff] %v5852_v36  ;;  %v5854_v13 = vld [vmem:[#allocation10 + $0x2c] ss:$16 sps:$4 sm:$0xff]   ;;  %v5886_v32 = vld [vmem:[#allocation10 + $0x60] ss:$16 sps:$4 sm:$0xff]  }
 0x1e8   :  { %7871 = vst [vmem:[#allocation83_spill] sm:$0xff] %v5854_v13  ;;  %7880 = vst [vmem:[#allocation92_spill] sm:$0xff] %v5886_v32 }
 0x1ea   :  { %1247 = vmatpush1.bf16.msra.mxu0 %v5834_v38  ;;  %1288 = vmatpush1.bf16.msra.mxu1 %v5836_v21  ;;  %v5860_v21 = vld [vmem:[#allocation10 + $0x20] ss:$16 sps:$4 sm:$0xff]   ;;  %v5862_v38 = vld [vmem:[#allocation10 + $0x28] ss:$16 sps:$4 sm:$0xff]  }
 0x1eb   :  { %1474 = vmatprep.subr.bf16.mxu0 %v5840_v9  ;;  %1515 = vmatprep.subr.bf16.mxu1 %v5842_v49  ;;  %7872 = vst [vmem:[#allocation84_spill] sm:$0xff] %v5860_v21  ;;  %7873 = vst [vmem:[#allocation85_spill] sm:$0xff] %v5862_v38  ;;  %v5866_v49 = vld [vmem:[#allocation10 + $0x44] ss:$16 sps:$4 sm:$0xff]   ;;  %v5868_v9 = vld [vmem:[#allocation10 + $0x4c] ss:$16 sps:$4 sm:$0xff]  }
 0x1ec   :  { %7874 = vst [vmem:[#allocation86_spill] sm:$0xff] %v5866_v49  ;;  %7875 = vst [vmem:[#allocation87_spill] sm:$0xff] %v5868_v9 }
 0x1ed   :  { %1265 = vmatmul.mubr.bf16.vlgmr.msra.gmra.mrb[24].mxu0 %v7843_v0  ;;  %1306 = vmatmul.mubr.bf16.vlgmr.msra.gmra.mrb[32].mxu1 %v7843_v0 }
 0x1ee   :  { %1475 = vmatpush1.bf16.msra.mxu0 %v5846_v10  ;;  %1516 = vmatpush1.bf16.msra.mxu1 %v5848_v17  ;;  %v5874_v17 = vld [vmem:[#allocation10 + $0x40] ss:$16 sps:$4 sm:$0xff]   ;;  %v5876_v10 = vld [vmem:[#allocation10 + $0x48] ss:$16 sps:$4 sm:$0xff]  }
 0x1ef   :  { %1476 = vmatprep.subr.bf16.mxu0 %v5852_v36  ;;  %1517 = vmatprep.subr.bf16.mxu1 %v5854_v13  ;;  %7876 = vst [vmem:[#allocation88_spill] sm:$0xff] %v5874_v17  ;;  %7877 = vst [vmem:[#allocation89_spill] sm:$0xff] %v5876_v10  ;;  %v5880_v13 = vld [vmem:[#allocation10 + $0x64] ss:$16 sps:$4 sm:$0xff]   ;;  %v5882_v36 = vld [vmem:[#allocation10 + $0x6c] ss:$16 sps:$4 sm:$0xff]  }
 0x1f0   :  { %1506 = vmatprep.mubr.bf16.mxu0 %v7843_v0  ;;  %1547 = vmatprep.mubr.bf16.mxu1 %v7843_v0  ;;  %7878 = vst [vmem:[#allocation90_spill] sm:$0xff] %v5880_v13  ;;  %7879 = vst [vmem:[#allocation91_spill] sm:$0xff] %v5882_v36 }
 0x1f2   :  { %1477 = vmatpush1.bf16.msra.mxu0 %v5860_v21  ;;  %1518 = vmatpush1.bf16.msra.mxu1 %v5862_v38  ;;  %v5888_v21 = vld [vmem:[#allocation10 + $0x68] ss:$16 sps:$4 sm:$0xff]   ;;  %v5892_v38 = vld [vmem:[#allocation10 + $0x84] ss:$16 sps:$4 sm:$0xff]  }
 0x1f3   :  { %1478 = vmatprep.subr.bf16.mxu0 %v5866_v49  ;;  %1519 = vmatprep.subr.bf16.mxu1 %v5868_v9  ;;  %7881 = vst [vmem:[#allocation93_spill] sm:$0xff] %v5888_v21  ;;  %7882 = vst [vmem:[#allocation94_spill] sm:$0xff] %v5892_v38  ;;  %v5894_v49 = vld [vmem:[#allocation10 + $0x8c] ss:$16 sps:$4 sm:$0xff]   ;;  %v5898_v9 = vld [vmem:[#allocation10 + $0x80] ss:$16 sps:$4 sm:$0xff]  }
 0x1f4   :  { %7883 = vst [vmem:[#allocation95_spill] sm:$0xff] %v5894_v49  ;;  %7884 = vst [vmem:[#allocation96_spill] sm:$0xff] %v5898_v9 }
 0x1f6   :  { %1479 = vmatpush1.bf16.msra.mxu0 %v5874_v17  ;;  %1520 = vmatpush1.bf16.msra.mxu1 %v5876_v10  ;;  %v5900_v17 = vld [vmem:[#allocation10 + $0x88] ss:$16 sps:$4 sm:$0xff]   ;;  %v5904_v10 = vld [vmem:[#allocation10 + $0xa4] ss:$16 sps:$4 sm:$0xff]  }
 0x1f7   :  { %1480 = vmatprep.subr.bf16.mxu0 %v5880_v13  ;;  %1521 = vmatprep.subr.bf16.mxu1 %v5882_v36  ;;  %7885 = vst [vmem:[#allocation97_spill] sm:$0xff] %v5900_v17  ;;  %7886 = vst [vmem:[#allocation98_spill] sm:$0xff] %v5904_v10  ;;  %v5906_v13 = vld [vmem:[#allocation10 + $0xac] ss:$16 sps:$4 sm:$0xff]   ;;  %v5910_v36 = vld [vmem:[#allocation10 + $0xa0] ss:$16 sps:$4 sm:$0xff]  }
 0x1f8   :  { %7887 = vst [vmem:[#allocation99_spill] sm:$0xff] %v5906_v13  ;;  %7888 = vst [vmem:[#allocation100_spill] sm:$0xff] %v5910_v36 }
 0x1fa   :  { %1481 = vmatpush1.bf16.msra.mxu0 %v5886_v32  ;;  %1522 = vmatpush1.bf16.msra.mxu1 %v5888_v21  ;;  %v5912_v32 = vld [vmem:[#allocation10 + $0xa8] ss:$16 sps:$4 sm:$0xff]   ;;  %v5916_v21 = vld [vmem:[#allocation10 + $0xc4] ss:$16 sps:$4 sm:$0xff]  }
 0x1fb   :  { %1482 = vmatprep.subr.bf16.mxu0 %v5892_v38  ;;  %1523 = vmatprep.subr.bf16.mxu1 %v5894_v49  ;;  %7889 = vst [vmem:[#allocation101_spill] sm:$0xff] %v5912_v32  ;;  %v5918_v38 = vld [vmem:[#allocation10 + $0xcc] ss:$16 sps:$4 sm:$0xff]   ;;  %v5922_v49 = vld [vmem:[#allocation10 + $0xc0] ss:$16 sps:$4 sm:$0xff]  }
 0x1fe   :  { %1483 = vmatpush1.bf16.msra.mxu0 %v5898_v9  ;;  %1524 = vmatpush1.bf16.msra.mxu1 %v5900_v17  ;;  %v5924_v9 = vld [vmem:[#allocation10 + $0xc8] ss:$16 sps:$4 sm:$0xff]   ;;  %v5928_v17 = vld [vmem:[#allocation10 + $0xe4] ss:$16 sps:$4 sm:$0xff]  }
 0x1ff   :  { %1484 = vmatprep.subr.bf16.mxu0 %v5904_v10  ;;  %1525 = vmatprep.subr.bf16.mxu1 %v5906_v13  ;;  %7890 = vst [vmem:[#allocation102_spill] sm:$0xff] %v5924_v9  ;;  %v5930_v10 = vld [vmem:[#allocation10 + $0xec] ss:$16 sps:$4 sm:$0xff]   ;;  %v5934_v13 = vld [vmem:[#allocation10 + $0xe0] ss:$16 sps:$4 sm:$0xff]  }
 0x200   :  { %7891 = vst [vmem:[#allocation103_spill] sm:$0xff] %v5934_v13 }
 0x202   :  { %1485 = vmatpush1.bf16.msra.mxu0 %v5910_v36  ;;  %1526 = vmatpush1.bf16.msra.mxu1 %v5912_v32  ;;  %v5936_v36 = vld [vmem:[#allocation10 + $0xe8] ss:$16 sps:$4 sm:$0xff]  }
 0x203   :  { %1486 = vmatprep.subr.bf16.mxu0 %v5916_v21  ;;  %1527 = vmatprep.subr.bf16.mxu1 %v5918_v38 }
 0x206   :  { %1487 = vmatpush1.bf16.msra.mxu0 %v5922_v49  ;;  %1528 = vmatpush1.bf16.msra.mxu1 %v5924_v9 }
 0x207   :  { %1488 = vmatprep.subr.bf16.mxu0 %v5928_v17  ;;  %1529 = vmatprep.subr.bf16.mxu1 %v5930_v10 }
 0x20a   :  { %1489 = vmatpush1.bf16.msra.mxu0 %v5934_v13  ;;  %1530 = vmatpush1.bf16.msra.mxu1 %v5936_v36 }
 0x20b   :  { %1607 = vmatprep.subr.bf16.mxu0 %v5510_v26  ;;  %1648 = vmatprep.subr.bf16.mxu1 %v5566_v53  ;;  %v605_v26 = vadd.f32 %v5658_v11, %v5735_v18 }
 0x20d   :  { %1507 = vmatmul.mubr.bf16.vlgmr.msra.gmra.mrb[28].mxu0 %v5750_v16  ;;  %1548 = vmatmul.mubr.bf16.vlgmr.msra.gmra.mrb[36].mxu1 %v5750_v16 }
 0x20e   :  { %1608 = vmatpush1.bf16.msra.mxu0 %v5512_v30  ;;  %1649 = vmatpush1.bf16.msra.mxu1 %v5580_v55  ;;  %v524_v30 = vadd.f32 %v5672_v20, %v5699_v41 }
 0x20f   :  { %1609 = vmatprep.subr.bf16.mxu0 %v5515_v31  ;;  %1650 = vmatprep.subr.bf16.mxu1 %v5583_v56  ;;  %v607_v31 = vadd.f32 %v5660_v12, %v5739_v28 }
 0x210   :  { %1639 = vmatprep.mubr.bf16.mxu0 %v7843_v0  ;;  %1680 = vmatprep.mubr.bf16.mxu1 %v7843_v0 }
 0x212   :  { %1610 = vmatpush1.bf16.msra.mxu0 %v5518_v34  ;;  %1651 = vmatpush1.bf16.msra.mxu1 %v5591_v57  ;;  %v526_v34 = vadd.f32 %v5676_v22, %v5703_v44 }
 0x213   :  { %1611 = vmatprep.subr.bf16.mxu0 %v5522_v35  ;;  %1652 = vmatprep.subr.bf16.mxu1 %v5595_v58 }
 0x216   :  { %1612 = vmatpush1.bf16.msra.mxu0 %v5525_v39  ;;  %1653 = vmatpush1.bf16.msra.mxu1 %v5599_v59 }
 0x217   :  { %1613 = vmatprep.subr.bf16.mxu0 %v5528_v40  ;;  %1654 = vmatprep.subr.bf16.mxu1 %v5602_v60 }
 0x21a   :  { %1614 = vmatpush1.bf16.msra.mxu0 %v5532_v42  ;;  %1655 = vmatpush1.bf16.msra.mxu1 %v5606_v61 }
 0x21b   :  { %1615 = vmatprep.subr.bf16.mxu0 %v5535_v43  ;;  %1656 = vmatprep.subr.bf16.mxu1 %v5609_v62 }
 0x21e   :  { %1616 = vmatpush1.bf16.msra.mxu0 %v5539_v45  ;;  %1657 = vmatpush1.bf16.msra.mxu1 %v5612_v63 }
 0x21f   :  { %1617 = vmatprep.subr.bf16.mxu0 %v5541_v46  ;;  %1658 = vmatprep.subr.bf16.mxu1 %v5615_v1 }
 0x222   :  { %1618 = vmatpush1.bf16.msra.mxu0 %v5544_v47  ;;  %1659 = vmatpush1.bf16.msra.mxu1 %v5618_v2 }
 0x223   :  { %1619 = vmatprep.subr.bf16.mxu0 %v5548_v48  ;;  %1660 = vmatprep.subr.bf16.mxu1 %v5621_v3 }
 0x226   :  { %1620 = vmatpush1.bf16.msra.mxu0 %v5554_v50  ;;  %1661 = vmatpush1.bf16.msra.mxu1 %v5624_v4 }
 0x227   :  { %1621 = vmatprep.subr.bf16.mxu0 %v5557_v51  ;;  %1662 = vmatprep.subr.bf16.mxu1 %v5627_v5 }
 0x22a   :  { %1622 = vmatpush1.bf16.msra.mxu0 %v5562_v52  ;;  %1663 = vmatpush1.bf16.msra.mxu1 %v5630_v6 }
 0x22b   :  { %1722 = vmatprep.subr.bf16.mxu0 %v5652_v7  ;;  %1763 = vmatprep.subr.bf16.mxu1 %v5654_v8 }
 0x2a0   :  { %v992_v35 = vpop.f32.mrb[20].mxu0  ;;  %v1033_v39 = vpop.f32.mrb[28].mxu1 }
 0x2a1   :  { %v1044_v40 = vadd.f32 %v992_v35, %v524_v30  ;;  %v1046_v42 = vadd.f32 %v1033_v39, %v605_v26  ;;  %v994_v43 = vpop.f32.mrb[21].mxu0  ;;  %v1035_v45 = vpop.f32.mrb[29].mxu1 }
 0x2a2   :  { %v1045_v46 = vadd.f32 %v994_v43, %v526_v34  ;;  %v1047_v47 = vadd.f32 %v1035_v45, %v607_v31  ;;  %v996_v48 = vpop.f32.mrb[22].mxu0  ;;  %v1037_v50 = vpop.f32.mrb[30].mxu1 }
 0x2a3   :  { %v4242_v51 = vmul.f32 -1.442695, %v1044_v40  ;;  %v997_v52 = vpop.f32.mrb[23].mxu0  ;;  %v1038_v53 = vpop.f32.mrb[31].mxu1  ;;  %v4244_v12 = vmul.f32 -1.442695, %v1046_v42 }
 0x2a4   :  { %v4243_v11 = vmul.f32 -1.442695, %v1045_v46 }
 0x2a5   :  { %4666 = vpow2.f32 %v4242_v51 }
 0x2a6   :  { %4668 = vpow2.f32 %v4243_v11 }
 0x2a7   :  { %4670 = vtanh.f32 %v1047_v47 }
 0x2a8   :  { %4672 = vpow2.f32 %v4244_v12 }
 0x2af   :  { %v4667_v20 = vpop.eup %4666 }
 0x2b0   :  { %v1057_v16 = vadd.f32 1.0, %v4667_v20  ;;  %v4669_v22 = vpop.eup %4668 }
 0x2b1   :  { %v1058_v26 = vadd.f32 1.0, %v4669_v22  ;;  %v4671_v30 = vpop.eup %4670  ;;  %v7892_v22 = vld [vmem:[#allocation58_spill] sm:$0xff] }
 0x2b2   :  { %4674 = vrcp.f32 %v1057_v16  ;;  %v4673_v34 = vpop.eup %4672 }
 0x2b3   :  { %4676 = vrcp.f32 %v1058_v26  ;;  %v1059_v40 = vadd.f32 1.0, %v4673_v34  ;;  %v7893_v26 = vld [vmem:[#allocation59_spill] sm:$0xff] }
 0x2b5   :  { %4678 = vrcp.f32 %v1059_v40 }
 0x2bc   :  { %v4675_v31 = vpop.eup %4674 }
 0x2bd   :  { %v1068_v35 = vmul.f32 %v4675_v31, %v4671_v30  ;;  %v4677_v39 = vpop.eup %4676  ;;  %v7894_v30 = vld [vmem:[#allocation36_spill] sm:$0xff] }
 0x2be   :  { %v1067_v43 = vmul.f32 %v4677_v39, %v5743_v27  ;;  %v249_v27 = vld [vmem:[%s7446_s6] sm:$0xf]  ;;  %v7895_v34 = vsub.s32 0, %v7894_v30  ;;  %v7898_v39 = vld [vmem:[#allocation61_spill] sm:$0xff] }
 0x2bf   :  { %v4679_v11 = vpop.eup %4678 }
 0x2c0   :  { %v1266_v45 = vpop.f32.mrb[24].mxu0  ;;  %v1307_v46 = vpop.f32.mrb[32].mxu1  ;;  %v5989_v48 = vadd.f32 %v1068_v35, %v1067_v43  ;;  %v6015_v31 = vrot.slane %v249_v27, %v7895_v34  ;;  %v7897_v35 = vld [vmem:[#allocation60_spill] sm:$0xff] }
 0x2c1   :  { %v1268_v42 = vpop.f32.mrb[25].mxu0  ;;  %v1309_v50 = vpop.f32.mrb[33].mxu1 }
 0x2c2   :  { %v1270_v47 = vpop.f32.mrb[26].mxu0  ;;  %v1311_v51 = vpop.f32.mrb[34].mxu1  ;;  %4680 = vtanh.f32 %v5989_v48  ;;  %7896 = vst [vmem:[#allocation36_spill] sm:$0xff] %v6015_v31 }
 0x2c3   :  { %v1271_v52 = vpop.f32.mrb[27].mxu0  ;;  %v1312_v53 = vpop.f32.mrb[35].mxu1  ;;  %v7899_v47 = vsub.s32 1, %v7894_v30 }
 0x2c4   :  { %v7901_v52 = vld [vmem:[#allocation62_spill] sm:$0xff]  ;;  %v7902_v53 = vld [vmem:[#allocation63_spill] sm:$0xff] }
 0x2c5   :  { %v6021_v51 = vrot.slane %v249_v27, %v7899_v47  ;;  %v7904_v47 = vld [vmem:[#allocation65_spill] sm:$0xff] }
 0x2c7   :  { %7900 = vst [vmem:[#allocation104_spill] sm:$0xff] %v6021_v51 }
 0x2cc   :  { %v4681_v12 = vpop.eup %4680 }
 0x2cd   :  { %v1071_v20 = vmul.f32 %v4681_v12, %v4679_v11 }
 0x2cf   :  { %v5992_v16 = vpack.c.bf16 %v1071_v20, %v1071_v20 }
 0x2d1   :  { %1640 = vmatmul.mubr.bf16.vlgmr.msra.gmra.mrb[32].mxu0 %v5992_v16  ;;  %1681 = vmatmul.mubr.bf16.vlgmr.msra.gmra.mrb[40].mxu1 %v5992_v16 }
 0x2d2   :  { %1723 = vmatpush1.bf16.msra.mxu0 %v5746_v54  ;;  %1764 = vmatpush1.bf16.msra.mxu1 %v5748_v15 }
 0x2d3   :  { %1724 = vmatprep.subr.bf16.mxu0 %v5752_v37  ;;  %1765 = vmatprep.subr.bf16.mxu1 %v5754_v33 }
 0x2d4   :  { %1754 = vmatprep.mubr.bf16.mxu0 %v7843_v0  ;;  %1795 = vmatprep.mubr.bf16.mxu1 %v7843_v0 }
 0x2d6   :  { %1725 = vmatpush1.bf16.msra.mxu0 %v5760_v14  ;;  %1766 = vmatpush1.bf16.msra.mxu1 %v5762_v19  ;;  %v7905_v19 = vld [vmem:[#allocation66_spill] sm:$0xff] }
 0x2d7   :  { %1726 = vmatprep.subr.bf16.mxu0 %v5766_v23  ;;  %1767 = vmatprep.subr.bf16.mxu1 %v5768_v29  ;;  %v7903_v23 = vld [vmem:[#allocation64_spill] sm:$0xff] }
 0x2da   :  { %1727 = vmatpush1.bf16.msra.mxu0 %v5774_v24  ;;  %1768 = vmatpush1.bf16.msra.mxu1 %v5776_v25 }
 0x2db   :  { %1728 = vmatprep.subr.bf16.mxu0 %v7892_v22  ;;  %1769 = vmatprep.subr.bf16.mxu1 %v7893_v26 }
 0x2de   :  { %1729 = vmatpush1.bf16.msra.mxu0 %v7897_v35  ;;  %1770 = vmatpush1.bf16.msra.mxu1 %v7898_v39 }
 0x2df   :  { %1730 = vmatprep.subr.bf16.mxu0 %v7901_v52  ;;  %1771 = vmatprep.subr.bf16.mxu1 %v7902_v53 }
 0x2e0   :  { %v1508_v40 = vpop.f32.mrb[28].mxu0  ;;  %v1549_v43 = vpop.f32.mrb[36].mxu1 }
 0x2e1   :  { %v1509_v11 = vadd.f32 %v1508_v40, %v1266_v45  ;;  %v1550_v12 = vadd.f32 %v1549_v43, %v1307_v46  ;;  %v1510_v20 = vpop.f32.mrb[29].mxu0  ;;  %v1551_v26 = vpop.f32.mrb[37].mxu1  ;;  %v7906_v45 = vld [vmem:[#allocation67_spill] sm:$0xff] }
 0x2e2   :  { %v1511_v34 = vadd.f32 %v1510_v20, %v1268_v42  ;;  %v1552_v22 = vadd.f32 %v1551_v26, %v1309_v50  ;;  %v1512_v25 = vpop.f32.mrb[30].mxu0  ;;  %v1553_v35 = vpop.f32.mrb[38].mxu1  ;;  %1731 = vmatpush1.bf16.msra.mxu0 %v7903_v23  ;;  %1772 = vmatpush1.bf16.msra.mxu1 %v7904_v47  ;;  %v7909_v50 = vld [vmem:[#allocation68_spill] sm:$0xff]  ;;  %v7912_v26 = vld [vmem:[#allocation71_spill] sm:$0xff]  ;;  %v7917_v20 = vld [vmem:[#allocation74_spill] sm:$0xff] }
 0x2e3   :  { %v1577_v39 = vadd.f32 %v6015_v31, %v1509_v11  ;;  %v1513_v24 = vpop.f32.mrb[31].mxu0  ;;  %v1554_v29 = vpop.f32.mrb[39].mxu1  ;;  %1732 = vmatprep.subr.bf16.mxu0 %v7905_v19  ;;  %1773 = vmatprep.subr.bf16.mxu1 %v7906_v45  ;;  %v7907_v25 = vsub.s32 2, %v7894_v30  ;;  %v7913_v35 = vsub.s32 3, %v7894_v30  ;;  %v7916_v11 = vld [vmem:[#allocation73_spill] sm:$0xff]  ;;  %v7921_v30 = vld [vmem:[#allocation78_spill] sm:$0xff] }
 0x2e4   :  { %v1578_v52 = vadd.f32 %v6021_v51, %v1511_v34  ;;  %v7910_v29 = vld [vmem:[#allocation69_spill] sm:$0xff]  ;;  %v7911_v24 = vld [vmem:[#allocation70_spill] sm:$0xff]  ;;  %v7918_v34 = vld [vmem:[#allocation75_spill] sm:$0xff] }
 0x2e5   :  { %v4309_v46 = vmul.f32 -1.442695, %v1577_v39  ;;  %v6033_v42 = vrot.slane %v249_v27, %v7907_v25  ;;  %v6041_v43 = vrot.slane %v249_v27, %v7913_v35  ;;  %v7919_v51 = vld [vmem:[#allocation76_spill] sm:$0xff]  ;;  %v7922_v27 = vld [vmem:[#allocation79_spill] sm:$0xff] }
 0x2e6   :  { %v4310_v40 = vmul.f32 -1.442695, %v1578_v52  ;;  %1733 = vmatpush1.bf16.msra.mxu0 %v7909_v50  ;;  %1774 = vmatpush1.bf16.msra.mxu1 %v7910_v29  ;;  %v7915_v52 = vld [vmem:[#allocation72_spill] sm:$0xff] }
 0x2e7   :  { %4682 = vpow2.f32 %v4309_v46  ;;  %7908 = vst [vmem:[#allocation63_spill] sm:$0xff] %v6033_v42  ;;  %1734 = vmatprep.subr.bf16.mxu0 %v7911_v24  ;;  %1775 = vmatprep.subr.bf16.mxu1 %v7912_v26  ;;  %7914 = vst [vmem:[#allocation64_spill] sm:$0xff] %v6041_v43  ;;  %v1579_v39 = vadd.f32 %v6033_v42, %v1550_v12  ;;  %v1580_v46 = vadd.f32 %v6041_v43, %v1552_v22 }
 0x2e8   :  { %4684 = vpow2.f32 %v4310_v40  ;;  %v7920_v40 = vld [vmem:[#allocation77_spill] sm:$0xff] }
 0x2e9   :  { %v4311_v25 = vmul.f32 -1.442695, %v1579_v39  ;;  %4686 = vtanh.f32 %v1580_v46 }
 0x2ea   :  { %1735 = vmatpush1.bf16.msra.mxu0 %v7915_v52  ;;  %1776 = vmatpush1.bf16.msra.mxu1 %v7916_v11 }
 0x2eb   :  { %1736 = vmatprep.subr.bf16.mxu0 %v7917_v20  ;;  %1777 = vmatprep.subr.bf16.mxu1 %v7918_v34  ;;  %4688 = vpow2.f32 %v4311_v25  ;;  %v7930_v25 = vld [vmem:[#allocation86_spill] sm:$0xff] }
 0x2ee   :  { %1737 = vmatpush1.bf16.msra.mxu0 %v7919_v51  ;;  %1778 = vmatpush1.bf16.msra.mxu1 %v7920_v40 }
 0x2ef   :  { %1804 = vmatprep.subr.bf16.mxu0 %v7921_v30  ;;  %1845 = vmatprep.subr.bf16.mxu1 %v7922_v27 }
 0x2f1   :  { %v4683_v12 = vpop.eup %4682 }
 0x2f2   :  { %v1590_v35 = vadd.f32 1.0, %v4683_v12  ;;  %v4685_v42 = vpop.eup %4684 }
 0x2f3   :  { %v1591_v31 = vadd.f32 1.0, %v4685_v42  ;;  %v4687_v34 = vpop.eup %4686 }
 0x2f4   :  { %4690 = vrcp.f32 %v1590_v35  ;;  %v7932_v35 = vld [vmem:[#allocation88_spill] sm:$0xff] }
 0x2f5   :  { %4692 = vrcp.f32 %v1591_v31  ;;  %v4689_v20 = vpop.eup %4688  ;;  %v7924_v31 = vld [vmem:[#allocation80_spill] sm:$0xff] }
 0x2f6   :  { %v1592_v51 = vadd.f32 1.0, %v4689_v20  ;;  %v7926_v20 = vld [vmem:[#allocation82_spill] sm:$0xff] }
 0x2f8   :  { %4694 = vrcp.f32 %v1592_v51  ;;  %v7928_v51 = vld [vmem:[#allocation84_spill] sm:$0xff] }
 0x2fe   :  { %v4691_v22 = vpop.eup %4690 }
 0x2ff   :  { %v1601_v39 = vmul.f32 %v4691_v22, %v4687_v34  ;;  %v4693_v43 = vpop.eup %4692  ;;  %v7925_v34 = vld [vmem:[#allocation81_spill] sm:$0xff] }
 0x300   :  { %v1600_v11 = vmul.f32 0.0, %v4693_v43  ;;  %v7927_v43 = vld [vmem:[#allocation83_spill] sm:$0xff]  ;;  %v7933_v22 = vld [vmem:[#allocation89_spill] sm:$0xff] }
 0x302   :  { %v6053_v40 = vadd.f32 %v1601_v39, %v1600_v11  ;;  %v4695_v27 = vpop.eup %4694  ;;  %v7929_v11 = vld [vmem:[#allocation85_spill] sm:$0xff]  ;;  %v7934_v39 = vld [vmem:[#allocation90_spill] sm:$0xff] }
 0x304   :  { %4696 = vtanh.f32 %v6053_v40 }
 0x30e   :  { %v4697_v12 = vpop.eup %4696 }
 0x30f   :  { %v6056_v46 = vmul.f32 %v4697_v12, %v4695_v27  ;;  %v7931_v27 = vld [vmem:[#allocation87_spill] sm:$0xff] }
 0x310   :  { %v7935_v12 = vld [vmem:[#allocation91_spill] sm:$0xff] }
 0x311   :  { %7923 = vst [vmem:[#allocation65_spill] sm:$0xff] %v6056_v46  ;;  %v1721_v42 = vpack.c.bf16 %v6056_v46, %v6056_v46  ;;  %v7937_v46 = vld [vmem:[#allocation93_spill] sm:$0xff] }
 0x313   :  { %1755 = vmatmul.mubr.bf16.vlgmr.msra.gmra.mrb[36].mxu0 %v1721_v42  ;;  %1796 = vmatmul.mubr.bf16.vlgmr.msra.gmra.mrb[44].mxu1 %v1721_v42  ;;  %v7936_v42 = vld [vmem:[#allocation92_spill] sm:$0xff] }
 0x314   :  { %1805 = vmatpush1.bf16.msra.mxu0 %v7924_v31  ;;  %1846 = vmatpush1.bf16.msra.mxu1 %v7925_v34 }
 0x315   :  { %1806 = vmatprep.subr.bf16.mxu0 %v7926_v20  ;;  %1847 = vmatprep.subr.bf16.mxu1 %v7927_v43  ;;  %v7938_v43 = vld [vmem:[#allocation94_spill] sm:$0xff] }
 0x316   :  { %1836 = vmatprep.mubr.bf16.mxu0 %v7843_v0  ;;  %1877 = vmatprep.mubr.bf16.mxu1 %v7843_v0 }
 0x318   :  { %1807 = vmatpush1.bf16.msra.mxu0 %v7928_v51  ;;  %1848 = vmatpush1.bf16.msra.mxu1 %v7929_v11  ;;  %v7939_v51 = vld [vmem:[#allocation95_spill] sm:$0xff]  ;;  %v7940_v11 = vld [vmem:[#allocation96_spill] sm:$0xff] }
 0x319   :  { %1808 = vmatprep.subr.bf16.mxu0 %v7930_v25  ;;  %1849 = vmatprep.subr.bf16.mxu1 %v7931_v27  ;;  %v7941_v25 = vld [vmem:[#allocation97_spill] sm:$0xff]  ;;  %v7942_v27 = vld [vmem:[#allocation98_spill] sm:$0xff] }
 0x31c   :  { %1809 = vmatpush1.bf16.msra.mxu0 %v7932_v35  ;;  %1850 = vmatpush1.bf16.msra.mxu1 %v7933_v22  ;;  %v7943_v35 = vld [vmem:[#allocation99_spill] sm:$0xff]  ;;  %v7944_v22 = vld [vmem:[#allocation100_spill] sm:$0xff] }
 0x31d   :  { %1810 = vmatprep.subr.bf16.mxu0 %v7934_v39  ;;  %1851 = vmatprep.subr.bf16.mxu1 %v7935_v12 }
 0x320   :  { %1811 = vmatpush1.bf16.msra.mxu0 %v7936_v42  ;;  %1852 = vmatpush1.bf16.msra.mxu1 %v7937_v46 }
 0x321   :  { %1812 = vmatprep.subr.bf16.mxu0 %v7938_v43  ;;  %1853 = vmatprep.subr.bf16.mxu1 %v7939_v51 }
 0x324   :  { %1813 = vmatpush1.bf16.msra.mxu0 %v7940_v11  ;;  %1854 = vmatpush1.bf16.msra.mxu1 %v7941_v25 }
 0x325   :  { %1814 = vmatprep.subr.bf16.mxu0 %v7942_v27  ;;  %1855 = vmatprep.subr.bf16.mxu1 %v7943_v35  ;;  %v6092_v35 = vld [vmem:[#allocation9 + $0x4] ss:$16 sps:$4 sm:$0xff]  }
 0x328   :  { %1815 = vmatpush1.bf16.msra.mxu0 %v7944_v22  ;;  %1856 = vmatpush1.bf16.msra.mxu1 %v5912_v32  ;;  %v6095_v32 = vld [vmem:[#allocation9 + $0xc] ss:$16 sps:$4 sm:$0xff]  }
 0x329   :  { %1816 = vmatprep.subr.bf16.mxu0 %v5916_v21  ;;  %1857 = vmatprep.subr.bf16.mxu1 %v5918_v38  ;;  %7945 = vst [vmem:[#allocation66_spill] sm:$0xff] %v6095_v32 }
 0x32c   :  { %1817 = vmatpush1.bf16.msra.mxu0 %v5922_v49  ;;  %1858 = vmatpush1.bf16.msra.mxu1 %v5924_v9  ;;  %v6100_v9 = vld [vmem:[#allocation9] ss:$16 sps:$4 sm:$0xff]  }
 0x32d   :  { %1818 = vmatprep.subr.bf16.mxu0 %v5928_v17  ;;  %1859 = vmatprep.subr.bf16.mxu1 %v5930_v10 }
 0x330   :  { %1819 = vmatpush1.bf16.msra.mxu0 %v5934_v13  ;;  %1860 = vmatpush1.bf16.msra.mxu1 %v5936_v36  ;;  %v6104_v13 = vld [vmem:[#allocation9 + $0x24] ss:$16 sps:$4 sm:$0xff]  }
 0x331   :  { %1916 = vmatprep.subr.bf16.mxu0 %v6092_v35  ;;  %1957 = vmatprep.subr.bf16.mxu1 %v6095_v32  ;;  %v6110_v32 = vld [vmem:[#allocation9 + $0x20] ss:$16 sps:$4 sm:$0xff]  }
 0x332   :  { %7946 = vst [vmem:[#allocation67_spill] sm:$0xff] %v6110_v32 }
 0x333   :  { %1837 = vmatmul.mubr.bf16.vlgmr.msra.gmra.mrb[40].mxu0 %v5992_v16  ;;  %1878 = vmatmul.mubr.bf16.vlgmr.msra.gmra.mrb[48].mxu1 %v5992_v16  ;;  %v6114_v16 = vld [vmem:[#allocation9 + $0x44] ss:$16 sps:$4 sm:$0xff]  }
 0x334   :  { %1917 = vmatpush1.bf16.msra.mxu0 %v6100_v9  ;;  %1958 = vmatpush1.bf16.msra.mxu1 %v5580_v55  ;;  %7947 = vst [vmem:[#allocation68_spill] sm:$0xff] %v6114_v16  ;;  %v6118_v55 = vld [vmem:[#allocation9 + $0x40] ss:$16 sps:$4 sm:$0xff]  }
 0x335   :  { %1918 = vmatprep.subr.bf16.mxu0 %v6104_v13  ;;  %1959 = vmatprep.subr.bf16.mxu1 %v5583_v56  ;;  %7948 = vst [vmem:[#allocation69_spill] sm:$0xff] %v6118_v55  ;;  %v6122_v56 = vld [vmem:[#allocation9 + $0x64] ss:$16 sps:$4 sm:$0xff]  }
 0x336   :  { %1948 = vmatprep.mubr.bf16.mxu0 %v7843_v0  ;;  %1989 = vmatprep.mubr.bf16.mxu1 %v7843_v0  ;;  %7949 = vst [vmem:[#allocation70_spill] sm:$0xff] %v6122_v56 }
 0x338   :  { %1919 = vmatpush1.bf16.msra.mxu0 %v6110_v32  ;;  %1960 = vmatpush1.bf16.msra.mxu1 %v5591_v57  ;;  %v6126_v32 = vld [vmem:[#allocation9 + $0x60] ss:$16 sps:$4 sm:$0xff]   ;;  %v6130_v57 = vld [vmem:[#allocation9 + $0x84] ss:$16 sps:$4 sm:$0xff]  }
 0x339   :  { %1920 = vmatprep.subr.bf16.mxu0 %v6114_v16  ;;  %1961 = vmatprep.subr.bf16.mxu1 %v5595_v58  ;;  %7950 = vst [vmem:[#allocation71_spill] sm:$0xff] %v6126_v32  ;;  %7951 = vst [vmem:[#allocation72_spill] sm:$0xff] %v6130_v57  ;;  %v6134_v58 = vld [vmem:[#allocation9 + $0x80] ss:$16 sps:$4 sm:$0xff]  }
 0x33a   :  { %7952 = vst [vmem:[#allocation78_spill] sm:$0xff] %v6134_v58 }
 0x33c   :  { %1921 = vmatpush1.bf16.msra.mxu0 %v6118_v55  ;;  %1962 = vmatpush1.bf16.msra.mxu1 %v5599_v59  ;;  %v6138_v59 = vld [vmem:[#allocation9 + $0xa4] ss:$16 sps:$4 sm:$0xff]  }
 0x33d   :  { %1922 = vmatprep.subr.bf16.mxu0 %v6122_v56  ;;  %1963 = vmatprep.subr.bf16.mxu1 %v5602_v60  ;;  %7953 = vst [vmem:[#allocation80_spill] sm:$0xff] %v6138_v59  ;;  %v6142_v60 = vld [vmem:[#allocation9 + $0xa0] ss:$16 sps:$4 sm:$0xff]  }
 0x33e   :  { %7954 = vst [vmem:[#allocation81_spill] sm:$0xff] %v6142_v60 }
 0x340   :  { %1923 = vmatpush1.bf16.msra.mxu0 %v6126_v32  ;;  %1964 = vmatpush1.bf16.msra.mxu1 %v5606_v61  ;;  %v6146_v61 = vld [vmem:[#allocation9 + $0xc4] ss:$16 sps:$4 sm:$0xff]  }
 0x341   :  { %1924 = vmatprep.subr.bf16.mxu0 %v6130_v57  ;;  %1965 = vmatprep.subr.bf16.mxu1 %v5609_v62  ;;  %7955 = vst [vmem:[#allocation82_spill] sm:$0xff] %v6146_v61  ;;  %v6150_v62 = vld [vmem:[#allocation9 + $0xc0] ss:$16 sps:$4 sm:$0xff]  }
 0x342   :  { %7956 = vst [vmem:[#allocation90_spill] sm:$0xff] %v6150_v62 }
 0x344   :  { %1925 = vmatpush1.bf16.msra.mxu0 %v6134_v58  ;;  %1966 = vmatpush1.bf16.msra.mxu1 %v5612_v63  ;;  %v6154_v63 = vld [vmem:[#allocation9 + $0xe4] ss:$16 sps:$4 sm:$0xff]  }
 0x345   :  { %1926 = vmatprep.subr.bf16.mxu0 %v6138_v59  ;;  %1967 = vmatprep.subr.bf16.mxu1 %v5615_v1  ;;  %7957 = vst [vmem:[#allocation91_spill] sm:$0xff] %v6154_v63  ;;  %v6158_v1 = vld [vmem:[#allocation9 + $0xe0] ss:$16 sps:$4 sm:$0xff]  }
 0x346   :  { %7958 = vst [vmem:[#allocation92_spill] sm:$0xff] %v6158_v1 }
 0x348   :  { %1927 = vmatpush1.bf16.msra.mxu0 %v6142_v60  ;;  %1968 = vmatpush1.bf16.msra.mxu1 %v5618_v2  ;;  %v7959_v2 = vld [vmem:[#allocation25_spill] sm:$0xff] }
 0x349   :  { %1928 = vmatprep.subr.bf16.mxu0 %v6146_v61  ;;  %1969 = vmatprep.subr.bf16.mxu1 %v5621_v3  ;;  %v611_v3 = vadd.f32 %v7959_v2, %v5735_v18 }
 0x34c   :  { %1929 = vmatpush1.bf16.msra.mxu0 %v6150_v62  ;;  %1970 = vmatpush1.bf16.msra.mxu1 %v5624_v4  ;;  %v7960_v4 = vld [vmem:[#allocation39_spill] sm:$0xff] }
 0x34d   :  { %1930 = vmatprep.subr.bf16.mxu0 %v6154_v63  ;;  %1971 = vmatprep.subr.bf16.mxu1 %v5627_v5  ;;  %v530_v62 = vadd.f32 %v7960_v4, %v5699_v41  ;;  %v7961_v63 = vld [vmem:[#allocation26_spill] sm:$0xff]  ;;  %v7962_v5 = vld [vmem:[#allocation40_spill] sm:$0xff] }
 0x34e   :  { %v613_v61 = vadd.f32 %v7961_v63, %v5739_v28  ;;  %v532_v60 = vadd.f32 %v7962_v5, %v5703_v44 }
 0x350   :  { %1931 = vmatpush1.bf16.msra.mxu0 %v6158_v1  ;;  %1972 = vmatpush1.bf16.msra.mxu1 %v5630_v6 }
 0x351   :  { %2031 = vmatprep.subr.bf16.mxu0 %v5652_v7  ;;  %2072 = vmatprep.subr.bf16.mxu1 %v5654_v8 }
 0x3a4   :  { %v1641_v59 = vpop.f32.mrb[32].mxu0  ;;  %v1682_v1 = vpop.f32.mrb[40].mxu1 }
 0x3a5   :  { %v1693_v58 = vadd.f32 %v1641_v59, %v530_v62  ;;  %v1695_v6 = vadd.f32 %v1682_v1, %v611_v3  ;;  %v1643_v57 = vpop.f32.mrb[33].mxu0  ;;  %v1684_v7 = vpop.f32.mrb[41].mxu1  ;;  %v7965_v3 = vld [vmem:[#allocation55_spill] sm:$0xff] }
 0x3a6   :  { %v1694_v32 = vadd.f32 %v1643_v57, %v532_v60  ;;  %v1696_v8 = vadd.f32 %v1684_v7, %v613_v61  ;;  %v1645_v56 = vpop.f32.mrb[34].mxu0  ;;  %v1686_v55 = vpop.f32.mrb[42].mxu1  ;;  %v7971_v7 = vld [vmem:[#allocation61_spill] sm:$0xff] }
 0x3a7   :  { %v4312_v2 = vmul.f32 -1.442695, %v1693_v58  ;;  %v1646_v18 = vpop.f32.mrb[35].mxu0  ;;  %v1687_v16 = vpop.f32.mrb[43].mxu1  ;;  %v4314_v63 = vmul.f32 -1.442695, %v1695_v6 }
 0x3a8   :  { %v4313_v4 = vmul.f32 -1.442695, %v1694_v32  ;;  %v7966_v6 = vld [vmem:[#allocation56_spill] sm:$0xff] }
 0x3a9   :  { %4698 = vpow2.f32 %v4312_v2 }
 0x3aa   :  { %4700 = vpow2.f32 %v4313_v4 }
 0x3ab   :  { %4702 = vtanh.f32 %v1696_v8  ;;  %v7972_v8 = vld [vmem:[#allocation62_spill] sm:$0xff] }
 0x3ac   :  { %4704 = vpow2.f32 %v4314_v63 }
 0x3b3   :  { %v4699_v28 = vpop.eup %4698 }
 0x3b4   :  { %v1706_v41 = vadd.f32 1.0, %v4699_v28  ;;  %v4701_v5 = vpop.eup %4700 }
 0x3b5   :  { %v1707_v59 = vadd.f32 1.0, %v4701_v5  ;;  %v4703_v62 = vpop.eup %4702 }
 0x3b6   :  { %4706 = vrcp.f32 %v1706_v41  ;;  %v4705_v57 = vpop.eup %4704  ;;  %v7963_v41 = vld [vmem:[#allocation53_spill] sm:$0xff] }
 0x3b7   :  { %4708 = vrcp.f32 %v1707_v59  ;;  %v1708_v58 = vadd.f32 1.0, %v4705_v57 }
 0x3b9   :  { %4710 = vrcp.f32 %v1708_v58 }
 0x3c0   :  { %v4707_v60 = vpop.eup %4706 }
 0x3c1   :  { %v1717_v56 = vmul.f32 %v4707_v60, %v4703_v62  ;;  %v4709_v55 = vpop.eup %4708 }
 0x3c2   :  { %v1716_v18 = vmul.f32 %v4709_v55, %v5989_v48  ;;  %v7964_v48 = vld [vmem:[#allocation54_spill] sm:$0xff] }
 0x3c3   :  { %v4711_v28 = vpop.eup %4710 }
 0x3c4   :  { %v6173_v32 = vadd.f32 %v1717_v56, %v1716_v18 }
 0x3c6   :  { %4712 = vtanh.f32 %v6173_v32 }
 0x3d0   :  { %v4713_v16 = vpop.eup %4712 }
 0x3d1   :  { %v1720_v61 = vmul.f32 %v4713_v16, %v4711_v28  ;;  %v7979_v16 = vld [vmem:[#allocation36_spill] sm:$0xff] }
 0x3d3   :  { %v6176_v1 = vpack.c.bf16 %v1720_v61, %v1720_v61 }
 0x3d5   :  { %1949 = vmatmul.mubr.bf16.vlgmr.msra.gmra.mrb[44].mxu0 %v6176_v1  ;;  %1990 = vmatmul.mubr.bf16.vlgmr.msra.gmra.mrb[52].mxu1 %v6176_v1 }
 0x3d6   :  { %2032 = vmatpush1.bf16.msra.mxu0 %v5746_v54  ;;  %2073 = vmatpush1.bf16.msra.mxu1 %v5748_v15  ;;  %v7967_v54 = vld [vmem:[#allocation57_spill] sm:$0xff]  ;;  %v7968_v15 = vld [vmem:[#allocation58_spill] sm:$0xff] }
 0x3d7   :  { %2033 = vmatprep.subr.bf16.mxu0 %v5752_v37  ;;  %2074 = vmatprep.subr.bf16.mxu1 %v5754_v33  ;;  %v7969_v37 = vld [vmem:[#allocation59_spill] sm:$0xff]  ;;  %v7970_v33 = vld [vmem:[#allocation60_spill] sm:$0xff] }
 0x3d8   :  { %2063 = vmatprep.mubr.bf16.mxu0 %v7843_v0  ;;  %2104 = vmatprep.mubr.bf16.mxu1 %v7843_v0 }
 0x3da   :  { %2034 = vmatpush1.bf16.msra.mxu0 %v5760_v14  ;;  %2075 = vmatpush1.bf16.msra.mxu1 %v7963_v41 }
 0x3db   :  { %2035 = vmatprep.subr.bf16.mxu0 %v7964_v48  ;;  %2076 = vmatprep.subr.bf16.mxu1 %v7965_v3  ;;  %v7980_v3 = vld [vmem:[#allocation104_spill] sm:$0xff] }
 0x3de   :  { %2036 = vmatpush1.bf16.msra.mxu0 %v7966_v6  ;;  %2077 = vmatpush1.bf16.msra.mxu1 %v7967_v54 }
 0x3df   :  { %2037 = vmatprep.subr.bf16.mxu0 %v7968_v15  ;;  %2078 = vmatprep.subr.bf16.mxu1 %v7969_v37  ;;  %v7981_v15 = vld [vmem:[#allocation63_spill] sm:$0xff] }
 0x3e2   :  { %2038 = vmatpush1.bf16.msra.mxu0 %v7970_v33  ;;  %2079 = vmatpush1.bf16.msra.mxu1 %v7971_v7  ;;  %v7982_v33 = vld [vmem:[#allocation64_spill] sm:$0xff] }
 0x3e3   :  { %2039 = vmatprep.subr.bf16.mxu0 %v7972_v8  ;;  %2080 = vmatprep.subr.bf16.mxu1 %v7902_v53  ;;  %v7974_v53 = vld [vmem:[#allocation74_spill] sm:$0xff] }
 0x3e6   :  { %v1756_v14 = vpop.f32.mrb[36].mxu0  ;;  %v1797_v2 = vpop.f32.mrb[44].mxu1  ;;  %2040 = vmatpush1.bf16.msra.mxu0 %v7903_v23  ;;  %2081 = vmatpush1.bf16.msra.mxu1 %v7904_v47  ;;  %v7973_v23 = vld [vmem:[#allocation73_spill] sm:$0xff]  ;;  %v7975_v47 = vld [vmem:[#allocation75_spill] sm:$0xff] }
 0x3e7   :  { %v1758_v4 = vpop.f32.mrb[37].mxu0  ;;  %v1799_v63 = vpop.f32.mrb[45].mxu1  ;;  %2041 = vmatprep.subr.bf16.mxu0 %v7905_v19  ;;  %2082 = vmatprep.subr.bf16.mxu1 %v7906_v45  ;;  %v7976_v19 = vld [vmem:[#allocation76_spill] sm:$0xff]  ;;  %v7977_v45 = vld [vmem:[#allocation77_spill] sm:$0xff] }
 0x3e8   :  { %v1760_v5 = vpop.f32.mrb[38].mxu0  ;;  %v1801_v59 = vpop.f32.mrb[46].mxu1 }
 0x3e9   :  { %v1761_v62 = vpop.f32.mrb[39].mxu0  ;;  %v1802_v57 = vpop.f32.mrb[47].mxu1 }
 0x3ea   :  { %2042 = vmatpush1.bf16.msra.mxu0 %v7909_v50  ;;  %2083 = vmatpush1.bf16.msra.mxu1 %v7910_v29  ;;  %v7978_v50 = vld [vmem:[#allocation79_spill] sm:$0xff] }
 0x3eb   :  { %2043 = vmatprep.subr.bf16.mxu0 %v7911_v24  ;;  %2084 = vmatprep.subr.bf16.mxu1 %v7912_v26 }
 0x3ee   :  { %2044 = vmatpush1.bf16.msra.mxu0 %v7915_v52  ;;  %2085 = vmatpush1.bf16.msra.mxu1 %v7973_v23 }
 0x3ef   :  { %2045 = vmatprep.subr.bf16.mxu0 %v7974_v53  ;;  %2086 = vmatprep.subr.bf16.mxu1 %v7975_v47 }
 0x3f2   :  { %2046 = vmatpush1.bf16.msra.mxu0 %v7976_v19  ;;  %2087 = vmatpush1.bf16.msra.mxu1 %v7977_v45 }
 0x3f3   :  { %2113 = vmatprep.subr.bf16.mxu0 %v7921_v30  ;;  %2154 = vmatprep.subr.bf16.mxu1 %v7978_v50 }
 0x406   :  { %v1838_v29 = vpop.f32.mrb[40].mxu0  ;;  %v1879_v24 = vpop.f32.mrb[48].mxu1 }
 0x407   :  { %v1839_v60 = vadd.f32 %v1838_v29, %v1756_v14  ;;  %v1880_v26 = vadd.f32 %v1879_v24, %v1797_v2  ;;  %v1840_v56 = vpop.f32.mrb[41].mxu0  ;;  %v1881_v52 = vpop.f32.mrb[49].mxu1 }
 0x408   :  { %v1841_v55 = vadd.f32 %v1840_v56, %v1758_v4  ;;  %v1882_v58 = vadd.f32 %v1881_v52, %v1799_v63  ;;  %v1842_v18 = vpop.f32.mrb[42].mxu0  ;;  %v1883_v28 = vpop.f32.mrb[50].mxu1  ;;  %v7987_v56 = vld [vmem:[#allocation86_spill] sm:$0xff]  ;;  %v7988_v52 = vld [vmem:[#allocation87_spill] sm:$0xff] }
 0x409   :  { %v1886_v61 = vadd.f32 %v1839_v60, %v7979_v16  ;;  %v1843_v41 = vpop.f32.mrb[43].mxu0  ;;  %v1884_v48 = vpop.f32.mrb[51].mxu1  ;;  %v1888_v37 = vadd.f32 %v1880_v26, %v7981_v15  ;;  %v7985_v60 = vld [vmem:[#allocation84_spill] sm:$0xff]  ;;  %v7986_v26 = vld [vmem:[#allocation85_spill] sm:$0xff] }
 0x40a   :  { %v1887_v6 = vadd.f32 %v1841_v55, %v7980_v3  ;;  %v1889_v7 = vadd.f32 %v1882_v58, %v7982_v33  ;;  %v7989_v55 = vld [vmem:[#allocation88_spill] sm:$0xff]  ;;  %v8002_v58 = vld [vmem:[#allocation78_spill] sm:$0xff]  ;;  %v6297_v18 = vld [vmem:[#allocation9 + $0x88] ss:$16 sps:$4 sm:$0xff]  }
 0x40b   :  { %v4315_v54 = vmul.f32 -1.442695, %v1886_v61  ;;  %v4317_v8 = vmul.f32 -1.442695, %v1888_v37  ;;  %v8003_v28 = vld [vmem:[#allocation80_spill] sm:$0xff]  ;;  %v8005_v41 = vld [vmem:[#allocation81_spill] sm:$0xff] }
 0x40c   :  { %v4316_v30 = vmul.f32 -1.442695, %v1887_v6  ;;  %v6301_v61 = vld [vmem:[#allocation9 + $0xac] ss:$16 sps:$4 sm:$0xff]   ;;  %v6305_v48 = vld [vmem:[#allocation9 + $0xa8] ss:$16 sps:$4 sm:$0xff]  }
 0x40d   :  { %4714 = vpow2.f32 %v4315_v54  ;;  %8004 = vst [vmem:[#allocation94_spill] sm:$0xff] %v6301_v61  ;;  %8006 = vst [vmem:[#allocation95_spill] sm:$0xff] %v6305_v48  ;;  %v8007_v6 = vld [vmem:[#allocation82_spill] sm:$0xff]  ;;  %v6309_v54 = vld [vmem:[#allocation9 + $0xcc] ss:$16 sps:$4 sm:$0xff]  }
 0x40e   :  { %4716 = vpow2.f32 %v4316_v30  ;;  %8008 = vst [vmem:[#allocation96_spill] sm:$0xff] %v6309_v54  ;;  %v8009_v30 = vld [vmem:[#allocation90_spill] sm:$0xff]  ;;  %v6313_v37 = vld [vmem:[#allocation9 + $0xc8] ss:$16 sps:$4 sm:$0xff]  }
 0x40f   :  { %4718 = vtanh.f32 %v1889_v7  ;;  %8010 = vst [vmem:[#allocation97_spill] sm:$0xff] %v6313_v37  ;;  %v8011_v7 = vld [vmem:[#allocation91_spill] sm:$0xff] }
 0x410   :  { %4720 = vpow2.f32 %v4317_v8  ;;  %v6317_v8 = vld [vmem:[#allocation9 + $0xec] ss:$16 sps:$4 sm:$0xff]  }
 0x411   :  { %8012 = vst [vmem:[#allocation98_spill] sm:$0xff] %v6317_v8 }
 0x417   :  { %v4715_v14 = vpop.eup %4714 }
 0x418   :  { %v1899_v2 = vadd.f32 1.0, %v4715_v14  ;;  %v4717_v4 = vpop.eup %4716  ;;  %v8013_v14 = vld [vmem:[#allocation92_spill] sm:$0xff] }
 0x419   :  { %v1900_v63 = vadd.f32 1.0, %v4717_v4  ;;  %v4719_v5 = vpop.eup %4718  ;;  %v6324_v4 = vld [vmem:[#allocation12 + $0x4] ss:$16 sps:$4 sm:$0xff]  }
 0x41a   :  { %4722 = vrcp.f32 %v1899_v2  ;;  %v4721_v59 = vpop.eup %4720  ;;  %v6321_v2 = vld [vmem:[#allocation9 + $0xe8] ss:$16 sps:$4 sm:$0xff]   ;;  %8015 = vst [vmem:[#allocation25_spill] sm:$0xff] %v6324_v4 }
 0x41b   :  { %4724 = vrcp.f32 %v1900_v63  ;;  %v1901_v53 = vadd.f32 1.0, %v4721_v59  ;;  %8014 = vst [vmem:[#allocation100_spill] sm:$0xff] %v6321_v2  ;;  %v6327_v63 = vld [vmem:[#allocation12 + $0xc] ss:$16 sps:$4 sm:$0xff]  }
 0x41c   :  { %8016 = vst [vmem:[#allocation39_spill] sm:$0xff] %v6327_v63  ;;  %v8018_v59 = vld [vmem:[#allocation27_spill] sm:$0xff] }
 0x41d   :  { %4726 = vrcp.f32 %v1901_v53 }
 0x424   :  { %v4723_v62 = vpop.eup %4722 }
 0x425   :  { %v1910_v57 = vmul.f32 %v4723_v62, %v4719_v5  ;;  %v4725_v23 = vpop.eup %4724  ;;  %v8017_v5 = vld [vmem:[#allocation51_spill] sm:$0xff] }
 0x426   :  { %v1909_v47 = vmul.f32 %v4725_v23, %v6053_v40  ;;  %v7984_v40 = vld [vmem:[#allocation83_spill] sm:$0xff]  ;;  %v615_v62 = vadd.f32 %v8018_v59, %v8017_v5  ;;  %v8020_v23 = vld [vmem:[#allocation41_spill] sm:$0xff] }
 0x427   :  { %v4727_v45 = vpop.eup %4726 }
 0x428   :  { %v6219_v19 = vadd.f32 %v1910_v57, %v1909_v47  ;;  %v8019_v57 = vld [vmem:[#allocation38_spill] sm:$0xff]  ;;  %v8021_v47 = vld [vmem:[#allocation52_spill] sm:$0xff] }
 0x429   :  { %v534_v53 = vadd.f32 %v8020_v23, %v8019_v57 }
 0x42a   :  { %4728 = vtanh.f32 %v6219_v19 }
 0x434   :  { %v4729_v50 = vpop.eup %4728 }
 0x435   :  { %v6222_v29 = vmul.f32 %v4729_v50, %v4727_v45  ;;  %v8022_v45 = vld [vmem:[#allocation28_spill] sm:$0xff] }
 0x436   :  { %v617_v50 = vadd.f32 %v8022_v45, %v8021_v47 }
 0x437   :  { %7983 = vst [vmem:[#allocation93_spill] sm:$0xff] %v6222_v29  ;;  %v2030_v24 = vpack.c.bf16 %v6222_v29, %v6222_v29 }
 0x439   :  { %2064 = vmatmul.mubr.bf16.vlgmr.msra.gmra.mrb[48].mxu0 %v2030_v24  ;;  %2105 = vmatmul.mubr.bf16.vlgmr.msra.gmra.mrb[56].mxu1 %v2030_v24  ;;  %v8023_v24 = vld [vmem:[#allocation42_spill] sm:$0xff] }
 0x43a   :  { %2114 = vmatpush1.bf16.msra.mxu0 %v7924_v31  ;;  %2155 = vmatpush1.bf16.msra.mxu1 %v7925_v34  ;;  %v7990_v31 = vld [vmem:[#allocation89_spill] sm:$0xff]  ;;  %v7991_v34 = vld [vmem:[#allocation99_spill] sm:$0xff] }
 0x43b   :  { %2115 = vmatprep.subr.bf16.mxu0 %v7926_v20  ;;  %2156 = vmatprep.subr.bf16.mxu1 %v7984_v40  ;;  %v7992_v20 = vld [vmem:[#allocation101_spill] sm:$0xff]  ;;  %v536_v40 = vadd.f32 %v8023_v24, %v5703_v44 }
 0x43c   :  { %2145 = vmatprep.mubr.bf16.mxu0 %v7843_v0  ;;  %2186 = vmatprep.mubr.bf16.mxu1 %v7843_v0 }
 0x43e   :  { %2116 = vmatpush1.bf16.msra.mxu0 %v7985_v60  ;;  %2157 = vmatpush1.bf16.msra.mxu1 %v7986_v26 }
 0x43f   :  { %2117 = vmatprep.subr.bf16.mxu0 %v7987_v56  ;;  %2158 = vmatprep.subr.bf16.mxu1 %v7988_v52 }
 0x442   :  { %2118 = vmatpush1.bf16.msra.mxu0 %v7989_v55  ;;  %2159 = vmatpush1.bf16.msra.mxu1 %v7990_v31 }
 0x443   :  { %2119 = vmatprep.subr.bf16.mxu0 %v7934_v39  ;;  %2160 = vmatprep.subr.bf16.mxu1 %v7935_v12  ;;  %v8000_v39 = vld [vmem:[#allocation71_spill] sm:$0xff] }
 0x444   :  { %v6289_v12 = vld [vmem:[#allocation9 + $0x68] ss:$16 sps:$4 sm:$0xff]  }
 0x446   :  { %2120 = vmatpush1.bf16.msra.mxu0 %v7936_v42  ;;  %2161 = vmatpush1.bf16.msra.mxu1 %v7937_v46  ;;  %v7993_v46 = vld [vmem:[#allocation102_spill] sm:$0xff]  ;;  %v8001_v42 = vld [vmem:[#allocation72_spill] sm:$0xff] }
 0x447   :  { %2121 = vmatprep.subr.bf16.mxu0 %v7938_v43  ;;  %2162 = vmatprep.subr.bf16.mxu1 %v7939_v51  ;;  %v7994_v43 = vld [vmem:[#allocation103_spill] sm:$0xff]  ;;  %v7995_v51 = vld [vmem:[#allocation66_spill] sm:$0xff] }
 0x44a   :  { %2122 = vmatpush1.bf16.msra.mxu0 %v7940_v11  ;;  %2163 = vmatpush1.bf16.msra.mxu1 %v7941_v25  ;;  %v7998_v11 = vld [vmem:[#allocation69_spill] sm:$0xff] }
 0x44b   :  { %2123 = vmatprep.subr.bf16.mxu0 %v7942_v27  ;;  %2164 = vmatprep.subr.bf16.mxu1 %v7991_v34  ;;  %v6281_v25 = vld [vmem:[#allocation9 + $0x48] ss:$16 sps:$4 sm:$0xff]   ;;  %v7999_v27 = vld [vmem:[#allocation70_spill] sm:$0xff] }
 0x44e   :  { %2124 = vmatpush1.bf16.msra.mxu0 %v7944_v22  ;;  %2165 = vmatpush1.bf16.msra.mxu1 %v7992_v20  ;;  %v6285_v22 = vld [vmem:[#allocation9 + $0x6c] ss:$16 sps:$4 sm:$0xff]  }
 0x44f   :  { %2125 = vmatprep.subr.bf16.mxu0 %v5916_v21  ;;  %2166 = vmatprep.subr.bf16.mxu1 %v5918_v38  ;;  %v6263_v38 = vld [vmem:[#allocation9 + $0x8] ss:$16 sps:$4 sm:$0xff]   ;;  %v6267_v21 = vld [vmem:[#allocation9 + $0x2c] ss:$16 sps:$4 sm:$0xff]  }
 0x452   :  { %2126 = vmatpush1.bf16.msra.mxu0 %v5922_v49  ;;  %2167 = vmatpush1.bf16.msra.mxu1 %v7993_v46  ;;  %v7996_v49 = vld [vmem:[#allocation67_spill] sm:$0xff] }
 0x453   :  { %2127 = vmatprep.subr.bf16.mxu0 %v5928_v17  ;;  %2168 = vmatprep.subr.bf16.mxu1 %v5930_v10  ;;  %v6273_v10 = vld [vmem:[#allocation9 + $0x28] ss:$16 sps:$4 sm:$0xff]   ;;  %v7997_v17 = vld [vmem:[#allocation68_spill] sm:$0xff] }
 0x456   :  { %2128 = vmatpush1.bf16.msra.mxu0 %v7994_v43  ;;  %2169 = vmatpush1.bf16.msra.mxu1 %v5936_v36  ;;  %v6277_v36 = vld [vmem:[#allocation9 + $0x4c] ss:$16 sps:$4 sm:$0xff]  }
 0x457   :  { %2225 = vmatprep.subr.bf16.mxu0 %v6092_v35  ;;  %2266 = vmatprep.subr.bf16.mxu1 %v7995_v51 }
 0x459   :  { %2146 = vmatmul.mubr.bf16.vlgmr.msra.gmra.mrb[52].mxu0 %v6176_v1  ;;  %2187 = vmatmul.mubr.bf16.vlgmr.msra.gmra.mrb[60].mxu1 %v6176_v1  ;;  %v6293_v1 = vld [vmem:[#allocation9 + $0x8c] ss:$16 sps:$4 sm:$0xff]  }
 0x45a   :  { %2226 = vmatpush1.bf16.msra.mxu0 %v6100_v9  ;;  %2267 = vmatpush1.bf16.msra.mxu1 %v6263_v38 }
 0x45b   :  { %2227 = vmatprep.subr.bf16.mxu0 %v6104_v13  ;;  %2268 = vmatprep.subr.bf16.mxu1 %v6267_v21 }
 0x45c   :  { %2257 = vmatprep.mubr.bf16.mxu0 %v7843_v0  ;;  %2298 = vmatprep.mubr.bf16.mxu1 %v7843_v0 }
 0x45e   :  { %2228 = vmatpush1.bf16.msra.mxu0 %v7996_v49  ;;  %2269 = vmatpush1.bf16.msra.mxu1 %v6273_v10 }
 0x45f   :  { %2229 = vmatprep.subr.bf16.mxu0 %v7997_v17  ;;  %2270 = vmatprep.subr.bf16.mxu1 %v6277_v36 }
 0x462   :  { %2230 = vmatpush1.bf16.msra.mxu0 %v7998_v11  ;;  %2271 = vmatpush1.bf16.msra.mxu1 %v6281_v25 }
 0x463   :  { %2231 = vmatprep.subr.bf16.mxu0 %v7999_v27  ;;  %2272 = vmatprep.subr.bf16.mxu1 %v6285_v22 }
 0x466   :  { %2232 = vmatpush1.bf16.msra.mxu0 %v8000_v39  ;;  %2273 = vmatpush1.bf16.msra.mxu1 %v6289_v12 }
 0x467   :  { %2233 = vmatprep.subr.bf16.mxu0 %v8001_v42  ;;  %2274 = vmatprep.subr.bf16.mxu1 %v6293_v1 }
 0x46a   :  { %2234 = vmatpush1.bf16.msra.mxu0 %v8002_v58  ;;  %2275 = vmatpush1.bf16.msra.mxu1 %v6297_v18 }
 0x46b   :  { %2235 = vmatprep.subr.bf16.mxu0 %v8003_v28  ;;  %2276 = vmatprep.subr.bf16.mxu1 %v6301_v61 }
 0x46e   :  { %2236 = vmatpush1.bf16.msra.mxu0 %v8005_v41  ;;  %2277 = vmatpush1.bf16.msra.mxu1 %v6305_v48 }
 0x46f   :  { %2237 = vmatprep.subr.bf16.mxu0 %v8007_v6  ;;  %2278 = vmatprep.subr.bf16.mxu1 %v6309_v54 }
 0x472   :  { %2238 = vmatpush1.bf16.msra.mxu0 %v8009_v30  ;;  %2279 = vmatpush1.bf16.msra.mxu1 %v6313_v37 }
 0x473   :  { %2239 = vmatprep.subr.bf16.mxu0 %v8011_v7  ;;  %2280 = vmatprep.subr.bf16.mxu1 %v6317_v8 }
 0x476   :  { %2240 = vmatpush1.bf16.msra.mxu0 %v8013_v14  ;;  %2281 = vmatpush1.bf16.msra.mxu1 %v6321_v2 }
 0x477   :  { %2340 = vmatprep.subr.bf16.mxu0 %v6324_v4  ;;  %2381 = vmatprep.subr.bf16.mxu1 %v6327_v63 }
 0x4a8   :  { %v1950_v60 = vpop.f32.mrb[44].mxu0  ;;  %v1991_v26 = vpop.f32.mrb[52].mxu1 }
 0x4a9   :  { %v2002_v56 = vadd.f32 %v1950_v60, %v534_v53  ;;  %v2004_v52 = vadd.f32 %v1991_v26, %v615_v62  ;;  %v1952_v55 = vpop.f32.mrb[45].mxu0  ;;  %v1993_v31 = vpop.f32.mrb[53].mxu1 }
 0x4aa   :  { %v2003_v34 = vadd.f32 %v1952_v55, %v536_v40  ;;  %v2005_v20 = vadd.f32 %v1993_v31, %v617_v50  ;;  %v1954_v46 = vpop.f32.mrb[46].mxu0  ;;  %v1995_v43 = vpop.f32.mrb[54].mxu1 }
 0x4ab   :  { %v4318_v59 = vmul.f32 -1.442695, %v2002_v56  ;;  %v1955_v29 = vpop.f32.mrb[47].mxu0  ;;  %v1996_v5 = vpop.f32.mrb[55].mxu1  ;;  %v4320_v45 = vmul.f32 -1.442695, %v2004_v52 }
 0x4ac   :  { %v4319_v23 = vmul.f32 -1.442695, %v2003_v34  ;;  %v6349_v34 = vld [vmem:[#allocation12 + $0x8] ss:$16 sps:$4 sm:$0xff]   ;;  %v6360_v46 = vld [vmem:[#allocation12 + $0x20] ss:$16 sps:$4 sm:$0xff]  }
 0x4ad   :  { %4730 = vpow2.f32 %v4318_v59  ;;  %8026 = vst [vmem:[#allocation53_spill] sm:$0xff] %v6349_v34  ;;  %8029 = vst [vmem:[#allocation56_spill] sm:$0xff] %v6360_v46  ;;  %v6363_v43 = vld [vmem:[#allocation12 + $0x28] ss:$16 sps:$4 sm:$0xff]   ;;  %v6366_v59 = vld [vmem:[#allocation12 + $0x44] ss:$16 sps:$4 sm:$0xff]  }
 0x4ae   :  { %4732 = vpow2.f32 %v4319_v23  ;;  %8030 = vst [vmem:[#allocation57_spill] sm:$0xff] %v6363_v43  ;;  %8031 = vst [vmem:[#allocation58_spill] sm:$0xff] %v6366_v59  ;;  %v6369_v23 = vld [vmem:[#allocation12 + $0x4c] ss:$16 sps:$4 sm:$0xff]  }
 0x4af   :  { %4734 = vtanh.f32 %v2005_v20  ;;  %v6355_v20 = vld [vmem:[#allocation12 + $0x2c] ss:$16 sps:$4 sm:$0xff]   ;;  %8032 = vst [vmem:[#allocation59_spill] sm:$0xff] %v6369_v23 }
 0x4b0   :  { %4736 = vpow2.f32 %v4320_v45  ;;  %8028 = vst [vmem:[#allocation55_spill] sm:$0xff] %v6355_v20  ;;  %v6372_v45 = vld [vmem:[#allocation12 + $0x40] ss:$16 sps:$4 sm:$0xff]  }
 0x4b1   :  { %8033 = vst [vmem:[#allocation60_spill] sm:$0xff] %v6372_v45 }
 0x4b7   :  { %v4731_v47 = vpop.eup %4730 }
 0x4b8   :  { %v2015_v57 = vadd.f32 1.0, %v4731_v47  ;;  %v4733_v24 = vpop.eup %4732 }
 0x4b9   :  { %v2016_v62 = vadd.f32 1.0, %v4733_v24  ;;  %v4735_v53 = vpop.eup %4734  ;;  %v6375_v24 = vld [vmem:[#allocation12 + $0x48] ss:$16 sps:$4 sm:$0xff]  }
 0x4ba   :  { %4738 = vrcp.f32 %v2015_v57  ;;  %v4737_v40 = vpop.eup %4736  ;;  %v6346_v57 = vld [vmem:[#allocation12] ss:$16 sps:$4 sm:$0xff]   ;;  %8034 = vst [vmem:[#allocation61_spill] sm:$0xff] %v6375_v24 }
 0x4bb   :  { %4740 = vrcp.f32 %v2016_v62  ;;  %v2017_v56 = vadd.f32 1.0, %v4737_v40  ;;  %8025 = vst [vmem:[#allocation40_spill] sm:$0xff] %v6346_v57  ;;  %v6378_v62 = vld [vmem:[#allocation12 + $0x64] ss:$16 sps:$4 sm:$0xff]   ;;  %v6384_v40 = vld [vmem:[#allocation12 + $0x60] ss:$16 sps:$4 sm:$0xff]  }
 0x4bc   :  { %8035 = vst [vmem:[#allocation62_spill] sm:$0xff] %v6378_v62  ;;  %8037 = vst [vmem:[#allocation74_spill] sm:$0xff] %v6384_v40 }
 0x4bd   :  { %4742 = vrcp.f32 %v2017_v56  ;;  %v6396_v56 = vld [vmem:[#allocation12 + $0x80] ss:$16 sps:$4 sm:$0xff]  }
 0x4be   :  { %8041 = vst [vmem:[#allocation79_spill] sm:$0xff] %v6396_v56 }
 0x4c4   :  { %v4739_v50 = vpop.eup %4738 }
 0x4c5   :  { %v2026_v60 = vmul.f32 %v4739_v50, %v4735_v53  ;;  %v4741_v26 = vpop.eup %4740  ;;  %v6381_v53 = vld [vmem:[#allocation12 + $0x6c] ss:$16 sps:$4 sm:$0xff]   ;;  %v6387_v50 = vld [vmem:[#allocation12 + $0x68] ss:$16 sps:$4 sm:$0xff]  }
 0x4c6   :  { %v2025_v29 = vmul.f32 %v4741_v26, %v6173_v32  ;;  %v6352_v32 = vld [vmem:[#allocation12 + $0x24] ss:$16 sps:$4 sm:$0xff]   ;;  %8036 = vst [vmem:[#allocation73_spill] sm:$0xff] %v6381_v53  ;;  %8038 = vst [vmem:[#allocation75_spill] sm:$0xff] %v6387_v50  ;;  %v6393_v26 = vld [vmem:[#allocation12 + $0x8c] ss:$16 sps:$4 sm:$0xff]  }
 0x4c7   :  { %v4743_v47 = vpop.eup %4742  ;;  %8027 = vst [vmem:[#allocation54_spill] sm:$0xff] %v6352_v32  ;;  %8040 = vst [vmem:[#allocation77_spill] sm:$0xff] %v6393_v26 }
 0x4c8   :  { %v6339_v5 = vadd.f32 %v2026_v60, %v2025_v29  ;;  %v6390_v60 = vld [vmem:[#allocation12 + $0x84] ss:$16 sps:$4 sm:$0xff]   ;;  %v6399_v29 = vld [vmem:[#allocation12 + $0x88] ss:$16 sps:$4 sm:$0xff]  }
 0x4c9   :  { %8039 = vst [vmem:[#allocation76_spill] sm:$0xff] %v6390_v60  ;;  %8042 = vst [vmem:[#allocation36_spill] sm:$0xff] %v6399_v29 }
 0x4ca   :  { %8024 = vst [vmem:[#allocation26_spill] sm:$0xff] %v6339_v5  ;;  %4744 = vtanh.f32 %v6339_v5 }
 0x4d4   :  { %v4745_v52 = vpop.eup %4744 }
 0x4d5   :  { %v2029_v55 = vmul.f32 %v4745_v52, %v4743_v47  ;;  %v6402_v47 = vld [vmem:[#allocation12 + $0xa4] ss:$16 sps:$4 sm:$0xff]   ;;  %v6405_v52 = vld [vmem:[#allocation12 + $0xac] ss:$16 sps:$4 sm:$0xff]  }
 0x4d6   :  { %8043 = vst [vmem:[#allocation104_spill] sm:$0xff] %v6402_v47  ;;  %8044 = vst [vmem:[#allocation63_spill] sm:$0xff] %v6405_v52 }
 0x4d7   :  { %v6342_v31 = vpack.c.bf16 %v2029_v55, %v2029_v55  ;;  %v6408_v55 = vld [vmem:[#allocation12 + $0xa0] ss:$16 sps:$4 sm:$0xff]  }
 0x4d8   :  { %8045 = vst [vmem:[#allocation64_spill] sm:$0xff] %v6408_v55 }
 0x4d9   :  { %2258 = vmatmul.mubr.bf16.vlgmr.msra.gmra.mrb[56].mxu0 %v6342_v31  ;;  %2299 = vmatmul.mubr.bf16.vlgmr.msra.gmra.mrb[64].mxu1 %v6342_v31 }
 0x4da   :  { %2341 = vmatpush1.bf16.msra.mxu0 %v6346_v57  ;;  %2382 = vmatpush1.bf16.msra.mxu1 %v6349_v34 }
 0x4db   :  { %2342 = vmatprep.subr.bf16.mxu0 %v6352_v32  ;;  %2383 = vmatprep.subr.bf16.mxu1 %v6355_v20 }
 0x4dc   :  { %2372 = vmatprep.mubr.bf16.mxu0 %v7843_v0  ;;  %2413 = vmatprep.mubr.bf16.mxu1 %v7843_v0 }
 0x4de   :  { %2343 = vmatpush1.bf16.msra.mxu0 %v6360_v46  ;;  %2384 = vmatpush1.bf16.msra.mxu1 %v6363_v43 }
 0x4df   :  { %2344 = vmatprep.subr.bf16.mxu0 %v6366_v59  ;;  %2385 = vmatprep.subr.bf16.mxu1 %v6369_v23 }
 0x4e2   :  { %2345 = vmatpush1.bf16.msra.mxu0 %v6372_v45  ;;  %2386 = vmatpush1.bf16.msra.mxu1 %v6375_v24 }
 0x4e3   :  { %2346 = vmatprep.subr.bf16.mxu0 %v6378_v62  ;;  %2387 = vmatprep.subr.bf16.mxu1 %v6381_v53 }
 0x4e6   :  { %2347 = vmatpush1.bf16.msra.mxu0 %v6384_v40  ;;  %2388 = vmatpush1.bf16.msra.mxu1 %v6387_v50 }
 0x4e7   :  { %2348 = vmatprep.subr.bf16.mxu0 %v6390_v60  ;;  %2389 = vmatprep.subr.bf16.mxu1 %v6393_v26  ;;  %v6411_v26 = vld [vmem:[#allocation12 + $0xa8] ss:$16 sps:$4 sm:$0xff]  }
 0x4e8   :  { %8046 = vst [vmem:[#allocation83_spill] sm:$0xff] %v6411_v26 }
 0x4ea   :  { %2349 = vmatpush1.bf16.msra.mxu0 %v6396_v56  ;;  %2390 = vmatpush1.bf16.msra.mxu1 %v6399_v29  ;;  %v6414_v56 = vld [vmem:[#allocation12 + $0xc4] ss:$16 sps:$4 sm:$0xff]   ;;  %v6417_v29 = vld [vmem:[#allocation12 + $0xcc] ss:$16 sps:$4 sm:$0xff]  }
 0x4eb   :  { %2350 = vmatprep.subr.bf16.mxu0 %v6402_v47  ;;  %2391 = vmatprep.subr.bf16.mxu1 %v6405_v52  ;;  %8047 = vst [vmem:[#allocation84_spill] sm:$0xff] %v6414_v56  ;;  %8048 = vst [vmem:[#allocation85_spill] sm:$0xff] %v6417_v29  ;;  %v6420_v47 = vld [vmem:[#allocation12 + $0xc0] ss:$16 sps:$4 sm:$0xff]   ;;  %v6423_v52 = vld [vmem:[#allocation12 + $0xc8] ss:$16 sps:$4 sm:$0xff]  }
 0x4ec   :  { %8049 = vst [vmem:[#allocation86_spill] sm:$0xff] %v6420_v47  ;;  %8050 = vst [vmem:[#allocation87_spill] sm:$0xff] %v6423_v52 }
 0x4ee   :  { %2351 = vmatpush1.bf16.msra.mxu0 %v6408_v55  ;;  %2392 = vmatpush1.bf16.msra.mxu1 %v6411_v26  ;;  %v6426_v55 = vld [vmem:[#allocation12 + $0xe4] ss:$16 sps:$4 sm:$0xff]   ;;  %v6429_v26 = vld [vmem:[#allocation12 + $0xec] ss:$16 sps:$4 sm:$0xff]  }
 0x4ef   :  { %2352 = vmatprep.subr.bf16.mxu0 %v6414_v56  ;;  %2393 = vmatprep.subr.bf16.mxu1 %v6417_v29  ;;  %8051 = vst [vmem:[#allocation88_spill] sm:$0xff] %v6426_v55  ;;  %8052 = vst [vmem:[#allocation89_spill] sm:$0xff] %v6429_v26  ;;  %v6432_v56 = vld [vmem:[#allocation12 + $0xe0] ss:$16 sps:$4 sm:$0xff]   ;;  %v6435_v29 = vld [vmem:[#allocation12 + $0xe8] ss:$16 sps:$4 sm:$0xff]  }
 0x4f0   :  { %8053 = vst [vmem:[#allocation99_spill] sm:$0xff] %v6432_v56  ;;  %8054 = vst [vmem:[#allocation101_spill] sm:$0xff] %v6435_v29 }
 0x4f2   :  { %2353 = vmatpush1.bf16.msra.mxu0 %v6420_v47  ;;  %2394 = vmatpush1.bf16.msra.mxu1 %v6423_v52  ;;  %v6438_v47 = vld [vmem:[#allocation10 + $0x4] ss:$16 sps:$4 sm:$0xff]   ;;  %v6441_v52 = vld [vmem:[#allocation10 + $0xc] ss:$16 sps:$4 sm:$0xff]  }
 0x4f3   :  { %2354 = vmatprep.subr.bf16.mxu0 %v6426_v55  ;;  %2395 = vmatprep.subr.bf16.mxu1 %v6429_v26  ;;  %8055 = vst [vmem:[#allocation102_spill] sm:$0xff] %v6438_v47  ;;  %8056 = vst [vmem:[#allocation103_spill] sm:$0xff] %v6441_v52 }
 0x4f6   :  { %2355 = vmatpush1.bf16.msra.mxu0 %v6432_v56  ;;  %2396 = vmatpush1.bf16.msra.mxu1 %v6435_v29 }
 0x4f7   :  { %2422 = vmatprep.subr.bf16.mxu0 %v6438_v47  ;;  %2463 = vmatprep.subr.bf16.mxu1 %v6441_v52 }
 0x50c   :  { %v2065_v55 = vpop.f32.mrb[48].mxu0  ;;  %v2106_v60 = vpop.f32.mrb[56].mxu1 }
 0x50d   :  { %v2067_v50 = vpop.f32.mrb[49].mxu0  ;;  %v2108_v26 = vpop.f32.mrb[57].mxu1 }
 0x50e   :  { %v2069_v40 = vpop.f32.mrb[50].mxu0  ;;  %v2110_v53 = vpop.f32.mrb[58].mxu1 }
 0x50f   :  { %v2070_v62 = vpop.f32.mrb[51].mxu0  ;;  %v2111_v56 = vpop.f32.mrb[59].mxu1 }
 0x52c   :  { %v2147_v24 = vpop.f32.mrb[52].mxu0  ;;  %v2188_v45 = vpop.f32.mrb[60].mxu1 }
 0x52d   :  { %v2148_v23 = vadd.f32 %v2147_v24, %v2065_v55  ;;  %v2189_v29 = vadd.f32 %v2188_v45, %v2106_v60  ;;  %v2149_v59 = vpop.f32.mrb[53].mxu0  ;;  %v2190_v43 = vpop.f32.mrb[61].mxu1  ;;  %v6456_v55 = vld [vmem:[#allocation10] ss:$16 sps:$4 sm:$0xff]  }
 0x52e   :  { %v2150_v46 = vadd.f32 %v2149_v59, %v2067_v50  ;;  %v2191_v47 = vadd.f32 %v2190_v43, %v2108_v26  ;;  %v2151_v20 = vpop.f32.mrb[54].mxu0  ;;  %v2192_v32 = vpop.f32.mrb[62].mxu1 }
 0x52f   :  { %v2195_v52 = vadd.f32 %v2148_v23, %v7979_v16  ;;  %v2152_v34 = vpop.f32.mrb[55].mxu0  ;;  %v2193_v57 = vpop.f32.mrb[63].mxu1  ;;  %v2197_v62 = vadd.f32 %v2189_v29, %v7981_v15 }
 0x530   :  { %v2196_v5 = vadd.f32 %v2150_v46, %v7980_v3  ;;  %v2198_v45 = vadd.f32 %v2191_v47, %v7982_v33 }
 0x531   :  { %v4321_v40 = vmul.f32 -1.442695, %v2195_v52  ;;  %v4323_v24 = vmul.f32 -1.442695, %v2197_v62  ;;  %v6470_v62 = vld [vmem:[#allocation10 + $0x20] ss:$16 sps:$4 sm:$0xff]  }
 0x532   :  { %v4322_v53 = vmul.f32 -1.442695, %v2196_v5 }
 0x533   :  { %4746 = vpow2.f32 %v4321_v40  ;;  %v6459_v40 = vld [vmem:[#allocation10 + $0x8] ss:$16 sps:$4 sm:$0xff]  }
 0x534   :  { %4748 = vpow2.f32 %v4322_v53  ;;  %v6465_v53 = vld [vmem:[#allocation10 + $0x2c] ss:$16 sps:$4 sm:$0xff]  }
 0x535   :  { %4750 = vtanh.f32 %v2198_v45  ;;  %v6473_v45 = vld [vmem:[#allocation10 + $0x28] ss:$16 sps:$4 sm:$0xff]  }
 0x536   :  { %4752 = vpow2.f32 %v4323_v24  ;;  %v6476_v24 = vld [vmem:[#allocation10 + $0x44] ss:$16 sps:$4 sm:$0xff]  }
 0x53d   :  { %v4747_v60 = vpop.eup %4746 }
 0x53e   :  { %v2208_v59 = vadd.f32 1.0, %v4747_v60  ;;  %v4749_v20 = vpop.eup %4748  ;;  %v6479_v60 = vld [vmem:[#allocation10 + $0x4c] ss:$16 sps:$4 sm:$0xff]  }
 0x53f   :  { %v2209_v32 = vadd.f32 1.0, %v4749_v20  ;;  %v4751_v57 = vpop.eup %4750  ;;  %v6485_v20 = vld [vmem:[#allocation10 + $0x48] ss:$16 sps:$4 sm:$0xff]  }
 0x540   :  { %4754 = vrcp.f32 %v2208_v59  ;;  %v4753_v34 = vpop.eup %4752  ;;  %v6482_v59 = vld [vmem:[#allocation10 + $0x40] ss:$16 sps:$4 sm:$0xff]  }
 0x541   :  { %4756 = vrcp.f32 %v2209_v32  ;;  %v2210_v23 = vadd.f32 1.0, %v4753_v34  ;;  %v6488_v32 = vld [vmem:[#allocation10 + $0x64] ss:$16 sps:$4 sm:$0xff]   ;;  %v6494_v34 = vld [vmem:[#allocation10 + $0x60] ss:$16 sps:$4 sm:$0xff]  }
 0x543   :  { %4758 = vrcp.f32 %v2210_v23  ;;  %v6506_v23 = vld [vmem:[#allocation10 + $0x80] ss:$16 sps:$4 sm:$0xff]  }
 0x544   :  { %8058 = vst [vmem:[#allocation67_spill] sm:$0xff] %v6506_v23 }
 0x54a   :  { %v4755_v46 = vpop.eup %4754 }
 0x54b   :  { %v2219_v43 = vmul.f32 %v4755_v46, %v4751_v57  ;;  %v4757_v5 = vpop.eup %4756  ;;  %v6491_v57 = vld [vmem:[#allocation10 + $0x6c] ss:$16 sps:$4 sm:$0xff]   ;;  %v6497_v46 = vld [vmem:[#allocation10 + $0x68] ss:$16 sps:$4 sm:$0xff]  }
 0x54c   :  { %v2218_v50 = vmul.f32 %v4757_v5, %v6219_v19  ;;  %v6462_v19 = vld [vmem:[#allocation10 + $0x24] ss:$16 sps:$4 sm:$0xff]   ;;  %v6503_v5 = vld [vmem:[#allocation10 + $0x8c] ss:$16 sps:$4 sm:$0xff]  }
 0x54d   :  { %v4759_v56 = vpop.eup %4758 }
 0x54e   :  { %v6449_v26 = vadd.f32 %v2219_v43, %v2218_v50  ;;  %v6500_v43 = vld [vmem:[#allocation10 + $0x84] ss:$16 sps:$4 sm:$0xff]   ;;  %v6509_v50 = vld [vmem:[#allocation10 + $0x88] ss:$16 sps:$4 sm:$0xff]  }
 0x54f   :  { %8059 = vst [vmem:[#allocation68_spill] sm:$0xff] %v6509_v50 }
 0x550   :  { %4760 = vtanh.f32 %v6449_v26 }
 0x55a   :  { %v4761_v29 = vpop.eup %4760 }
 0x55b   :  { %v6452_v47 = vmul.f32 %v4761_v29, %v4759_v56  ;;  %v6512_v56 = vld [vmem:[#allocation10 + $0xa4] ss:$16 sps:$4 sm:$0xff]   ;;  %v6515_v29 = vld [vmem:[#allocation10 + $0xac] ss:$16 sps:$4 sm:$0xff]  }
 0x55c   :  { %8060 = vst [vmem:[#allocation69_spill] sm:$0xff] %v6512_v56  ;;  %8061 = vst [vmem:[#allocation70_spill] sm:$0xff] %v6515_v29 }
 0x55d   :  { %8057 = vst [vmem:[#allocation66_spill] sm:$0xff] %v6452_v47  ;;  %v2339_v52 = vpack.c.bf16 %v6452_v47, %v6452_v47  ;;  %v6521_v47 = vld [vmem:[#allocation10 + $0xa8] ss:$16 sps:$4 sm:$0xff]  }
 0x55e   :  { %8063 = vst [vmem:[#allocation72_spill] sm:$0xff] %v6521_v47 }
 0x55f   :  { %2373 = vmatmul.mubr.bf16.vlgmr.msra.gmra.mrb[60].mxu0 %v2339_v52  ;;  %2414 = vmatmul.mubr.bf16.vlgmr.msra.gmra.mrb[68].mxu1 %v2339_v52  ;;  %v6518_v52 = vld [vmem:[#allocation10 + $0xa0] ss:$16 sps:$4 sm:$0xff]  }
 0x560   :  { %2423 = vmatpush1.bf16.msra.mxu0 %v6456_v55  ;;  %2464 = vmatpush1.bf16.msra.mxu1 %v6459_v40  ;;  %8062 = vst [vmem:[#allocation71_spill] sm:$0xff] %v6518_v52 }
 0x561   :  { %2424 = vmatprep.subr.bf16.mxu0 %v6462_v19  ;;  %2465 = vmatprep.subr.bf16.mxu1 %v6465_v53 }
 0x562   :  { %2454 = vmatprep.mubr.bf16.mxu0 %v7843_v0  ;;  %2495 = vmatprep.mubr.bf16.mxu1 %v7843_v0 }
 0x564   :  { %2425 = vmatpush1.bf16.msra.mxu0 %v6470_v62  ;;  %2466 = vmatpush1.bf16.msra.mxu1 %v6473_v45 }
 0x565   :  { %2426 = vmatprep.subr.bf16.mxu0 %v6476_v24  ;;  %2467 = vmatprep.subr.bf16.mxu1 %v6479_v60 }
 0x568   :  { %2427 = vmatpush1.bf16.msra.mxu0 %v6482_v59  ;;  %2468 = vmatpush1.bf16.msra.mxu1 %v6485_v20 }
 0x569   :  { %2428 = vmatprep.subr.bf16.mxu0 %v6488_v32  ;;  %2469 = vmatprep.subr.bf16.mxu1 %v6491_v57 }
 0x56c   :  { %2429 = vmatpush1.bf16.msra.mxu0 %v6494_v34  ;;  %2470 = vmatpush1.bf16.msra.mxu1 %v6497_v46 }
 0x56d   :  { %2430 = vmatprep.subr.bf16.mxu0 %v6500_v43  ;;  %2471 = vmatprep.subr.bf16.mxu1 %v6503_v5 }
 0x570   :  { %2431 = vmatpush1.bf16.msra.mxu0 %v6506_v23  ;;  %2472 = vmatpush1.bf16.msra.mxu1 %v6509_v50  ;;  %v6524_v23 = vld [vmem:[#allocation10 + $0xc4] ss:$16 sps:$4 sm:$0xff]   ;;  %v6527_v50 = vld [vmem:[#allocation10 + $0xcc] ss:$16 sps:$4 sm:$0xff]  }
 0x571   :  { %2432 = vmatprep.subr.bf16.mxu0 %v6512_v56  ;;  %2473 = vmatprep.subr.bf16.mxu1 %v6515_v29  ;;  %8064 = vst [vmem:[#allocation78_spill] sm:$0xff] %v6524_v23  ;;  %8065 = vst [vmem:[#allocation80_spill] sm:$0xff] %v6527_v50  ;;  %v6530_v56 = vld [vmem:[#allocation10 + $0xc0] ss:$16 sps:$4 sm:$0xff]   ;;  %v6533_v29 = vld [vmem:[#allocation10 + $0xc8] ss:$16 sps:$4 sm:$0xff]  }
 0x574   :  { %2433 = vmatpush1.bf16.msra.mxu0 %v6518_v52  ;;  %2474 = vmatpush1.bf16.msra.mxu1 %v6521_v47  ;;  %v6536_v52 = vld [vmem:[#allocation10 + $0xe4] ss:$16 sps:$4 sm:$0xff]   ;;  %v6539_v47 = vld [vmem:[#allocation10 + $0xec] ss:$16 sps:$4 sm:$0xff]  }
 0x575   :  { %2434 = vmatprep.subr.bf16.mxu0 %v6524_v23  ;;  %2475 = vmatprep.subr.bf16.mxu1 %v6527_v50  ;;  %v6542_v23 = vld [vmem:[#allocation10 + $0xe0] ss:$16 sps:$4 sm:$0xff]   ;;  %v6545_v50 = vld [vmem:[#allocation10 + $0xe8] ss:$16 sps:$4 sm:$0xff]  }
 0x578   :  { %2435 = vmatpush1.bf16.msra.mxu0 %v6530_v56  ;;  %2476 = vmatpush1.bf16.msra.mxu1 %v6533_v29 }
 0x579   :  { %2436 = vmatprep.subr.bf16.mxu0 %v6536_v52  ;;  %2477 = vmatprep.subr.bf16.mxu1 %v6539_v47 }
 0x57c   :  { %2437 = vmatpush1.bf16.msra.mxu0 %v6542_v23  ;;  %2478 = vmatpush1.bf16.msra.mxu1 %v6545_v50 }
 0x57d   :  { %2534 = vmatprep.subr.bf16.mxu0 %v6092_v35  ;;  %2575 = vmatprep.subr.bf16.mxu1 %v7995_v51  ;;  %v8068_v51 = vld [vmem:[#allocation38_spill] sm:$0xff] }
 0x57f   :  { %2455 = vmatmul.mubr.bf16.vlgmr.msra.gmra.mrb[64].mxu0 %v6342_v31  ;;  %2496 = vmatmul.mubr.bf16.vlgmr.msra.gmra.mrb[72].mxu1 %v6342_v31 }
 0x580   :  { %2535 = vmatpush1.bf16.msra.mxu0 %v6100_v9  ;;  %2576 = vmatpush1.bf16.msra.mxu1 %v6263_v38  ;;  %v8067_v9 = vld [vmem:[#allocation29_spill] sm:$0xff] }
 0x581   :  { %2536 = vmatprep.subr.bf16.mxu0 %v6104_v13  ;;  %2577 = vmatprep.subr.bf16.mxu1 %v6267_v21  ;;  %v8066_v13 = vld [vmem:[#allocation51_spill] sm:$0xff] }
 0x582   :  { %2566 = vmatprep.mubr.bf16.mxu0 %v7843_v0  ;;  %2607 = vmatprep.mubr.bf16.mxu1 %v7843_v0  ;;  %v621_v35 = vadd.f32 %v8067_v9, %v8066_v13 }
 0x584   :  { %2537 = vmatpush1.bf16.msra.mxu0 %v7996_v49  ;;  %2578 = vmatpush1.bf16.msra.mxu1 %v6273_v10  ;;  %v8069_v49 = vld [vmem:[#allocation43_spill] sm:$0xff] }
 0x585   :  { %2538 = vmatprep.subr.bf16.mxu0 %v7997_v17  ;;  %2579 = vmatprep.subr.bf16.mxu1 %v6277_v36  ;;  %v540_v17 = vadd.f32 %v8069_v49, %v8068_v51 }
 0x588   :  { %2539 = vmatpush1.bf16.msra.mxu0 %v7998_v11  ;;  %2580 = vmatpush1.bf16.msra.mxu1 %v6281_v25  ;;  %v8070_v11 = vld [vmem:[#allocation52_spill] sm:$0xff] }
 0x589   :  { %2540 = vmatprep.subr.bf16.mxu0 %v7999_v27  ;;  %2581 = vmatprep.subr.bf16.mxu1 %v6285_v22  ;;  %v8071_v27 = vld [vmem:[#allocation30_spill] sm:$0xff] }
 0x58c   :  { %2541 = vmatpush1.bf16.msra.mxu0 %v8000_v39  ;;  %2582 = vmatpush1.bf16.msra.mxu1 %v6289_v12  ;;  %v623_v39 = vadd.f32 %v8071_v27, %v8070_v11 }
 0x58d   :  { %2542 = vmatprep.subr.bf16.mxu0 %v8001_v42  ;;  %2583 = vmatprep.subr.bf16.mxu1 %v6293_v1  ;;  %v8072_v42 = vld [vmem:[#allocation44_spill] sm:$0xff] }
 0x590   :  { %2543 = vmatpush1.bf16.msra.mxu0 %v8002_v58  ;;  %2584 = vmatpush1.bf16.msra.mxu1 %v6297_v18  ;;  %v542_v58 = vadd.f32 %v8072_v42, %v5703_v44 }
 0x591   :  { %2544 = vmatprep.subr.bf16.mxu0 %v8003_v28  ;;  %2585 = vmatprep.subr.bf16.mxu1 %v6301_v61 }
 0x594   :  { %2545 = vmatpush1.bf16.msra.mxu0 %v8005_v41  ;;  %2586 = vmatpush1.bf16.msra.mxu1 %v6305_v48 }
 0x595   :  { %2546 = vmatprep.subr.bf16.mxu0 %v8007_v6  ;;  %2587 = vmatprep.subr.bf16.mxu1 %v6309_v54 }
 0x598   :  { %2547 = vmatpush1.bf16.msra.mxu0 %v8009_v30  ;;  %2588 = vmatpush1.bf16.msra.mxu1 %v6313_v37 }
 0x599   :  { %2548 = vmatprep.subr.bf16.mxu0 %v8011_v7  ;;  %2589 = vmatprep.subr.bf16.mxu1 %v6317_v8 }
 0x59c   :  { %2549 = vmatpush1.bf16.msra.mxu0 %v8013_v14  ;;  %2590 = vmatpush1.bf16.msra.mxu1 %v6321_v2 }
 0x59d   :  { %2649 = vmatprep.subr.bf16.mxu0 %v6324_v4  ;;  %2690 = vmatprep.subr.bf16.mxu1 %v6327_v63 }
 0x5ac   :  { %v2259_v28 = vpop.f32.mrb[56].mxu0  ;;  %v2300_v41 = vpop.f32.mrb[64].mxu1 }
 0x5ad   :  { %v2311_v6 = vadd.f32 %v2259_v28, %v540_v17  ;;  %v2313_v30 = vadd.f32 %v2300_v41, %v621_v35  ;;  %v2261_v7 = vpop.f32.mrb[57].mxu0  ;;  %v2302_v14 = vpop.f32.mrb[65].mxu1 }
 0x5ae   :  { %v2312_v31 = vadd.f32 %v2261_v7, %v542_v58  ;;  %v2314_v63 = vadd.f32 %v2302_v14, %v623_v39  ;;  %v2263_v4 = vpop.f32.mrb[58].mxu0  ;;  %v2304_v2 = vpop.f32.mrb[66].mxu1  ;;  %v8076_v7 = vld [vmem:[#allocation53_spill] sm:$0xff]  ;;  %v8077_v14 = vld [vmem:[#allocation54_spill] sm:$0xff] }
 0x5af   :  { %v4324_v9 = vmul.f32 -1.442695, %v2311_v6  ;;  %v2264_v8 = vpop.f32.mrb[59].mxu0  ;;  %v2305_v37 = vpop.f32.mrb[67].mxu1  ;;  %v4326_v27 = vmul.f32 -1.442695, %v2313_v30 }
 0x5b0   :  { %v4325_v49 = vmul.f32 -1.442695, %v2312_v31  ;;  %v8073_v8 = vld [vmem:[#allocation26_spill] sm:$0xff]  ;;  %v8078_v31 = vld [vmem:[#allocation55_spill] sm:$0xff] }
 0x5b1   :  { %4762 = vpow2.f32 %v4324_v9  ;;  %v8079_v9 = vld [vmem:[#allocation56_spill] sm:$0xff] }
 0x5b2   :  { %4764 = vpow2.f32 %v4325_v49  ;;  %v8080_v49 = vld [vmem:[#allocation57_spill] sm:$0xff] }
 0x5b3   :  { %4766 = vtanh.f32 %v2314_v63 }
 0x5b4   :  { %4768 = vpow2.f32 %v4326_v27  ;;  %v8081_v27 = vld [vmem:[#allocation58_spill] sm:$0xff] }
 0x5bb   :  { %v4763_v54 = vpop.eup %4762 }
 0x5bc   :  { %v2324_v48 = vadd.f32 1.0, %v4763_v54  ;;  %v4765_v42 = vpop.eup %4764 }
 0x5bd   :  { %v2325_v35 = vadd.f32 1.0, %v4765_v42  ;;  %v4767_v17 = vpop.eup %4766  ;;  %v8082_v42 = vld [vmem:[#allocation59_spill] sm:$0xff] }
 0x5be   :  { %4770 = vrcp.f32 %v2324_v48  ;;  %v4769_v58 = vpop.eup %4768  ;;  %v8075_v48 = vld [vmem:[#allocation40_spill] sm:$0xff] }
 0x5bf   :  { %4772 = vrcp.f32 %v2325_v35  ;;  %v2326_v28 = vadd.f32 1.0, %v4769_v58  ;;  %v8083_v35 = vld [vmem:[#allocation60_spill] sm:$0xff]  ;;  %v8085_v58 = vld [vmem:[#allocation62_spill] sm:$0xff] }
 0x5c1   :  { %4774 = vrcp.f32 %v2326_v28  ;;  %v8089_v28 = vld [vmem:[#allocation76_spill] sm:$0xff] }
 0x5c8   :  { %v4771_v39 = vpop.eup %4770 }
 0x5c9   :  { %v2335_v4 = vmul.f32 %v4771_v39, %v4767_v17  ;;  %v4773_v2 = vpop.eup %4772  ;;  %v8084_v17 = vld [vmem:[#allocation61_spill] sm:$0xff] }
 0x5ca   :  { %v2334_v37 = vmul.f32 %v4773_v2, %v8073_v8  ;;  %v8086_v39 = vld [vmem:[#allocation73_spill] sm:$0xff]  ;;  %v8088_v2 = vld [vmem:[#allocation75_spill] sm:$0xff] }
 0x5cb   :  { %v4775_v54 = vpop.eup %4774  ;;  %v8090_v8 = vld [vmem:[#allocation77_spill] sm:$0xff] }
 0x5cc   :  { %v6595_v41 = vadd.f32 %v2335_v4, %v2334_v37  ;;  %v8087_v4 = vld [vmem:[#allocation74_spill] sm:$0xff]  ;;  %v8091_v37 = vld [vmem:[#allocation79_spill] sm:$0xff] }
 0x5ce   :  { %8074 = vst [vmem:[#allocation81_spill] sm:$0xff] %v6595_v41  ;;  %4776 = vtanh.f32 %v6595_v41 }
 0x5d8   :  { %v4777_v63 = vpop.eup %4776 }
 0x5d9   :  { %v2338_v6 = vmul.f32 %v4777_v63, %v4775_v54  ;;  %v8092_v54 = vld [vmem:[#allocation36_spill] sm:$0xff] }
 0x5da   :  { %v8093_v63 = vld [vmem:[#allocation104_spill] sm:$0xff] }
 0x5db   :  { %v6598_v30 = vpack.c.bf16 %v2338_v6, %v2338_v6  ;;  %v8094_v6 = vld [vmem:[#allocation63_spill] sm:$0xff] }
 0x5dd   :  { %2567 = vmatmul.mubr.bf16.vlgmr.msra.gmra.mrb[68].mxu0 %v6598_v30  ;;  %2608 = vmatmul.mubr.bf16.vlgmr.msra.gmra.mrb[76].mxu1 %v6598_v30 }
 0x5de   :  { %2650 = vmatpush1.bf16.msra.mxu0 %v8075_v48  ;;  %2691 = vmatpush1.bf16.msra.mxu1 %v8076_v7 }
 0x5df   :  { %2651 = vmatprep.subr.bf16.mxu0 %v8077_v14  ;;  %2692 = vmatprep.subr.bf16.mxu1 %v8078_v31 }
 0x5e0   :  { %2681 = vmatprep.mubr.bf16.mxu0 %v7843_v0  ;;  %2722 = vmatprep.mubr.bf16.mxu1 %v7843_v0 }
 0x5e2   :  { %2652 = vmatpush1.bf16.msra.mxu0 %v8079_v9  ;;  %2693 = vmatpush1.bf16.msra.mxu1 %v8080_v49 }
 0x5e3   :  { %2653 = vmatprep.subr.bf16.mxu0 %v8081_v27  ;;  %2694 = vmatprep.subr.bf16.mxu1 %v8082_v42 }
 0x5e6   :  { %2654 = vmatpush1.bf16.msra.mxu0 %v8083_v35  ;;  %2695 = vmatpush1.bf16.msra.mxu1 %v8084_v17  ;;  %v8095_v17 = vld [vmem:[#allocation64_spill] sm:$0xff] }
 0x5e7   :  { %2655 = vmatprep.subr.bf16.mxu0 %v8085_v58  ;;  %2696 = vmatprep.subr.bf16.mxu1 %v8086_v39  ;;  %v8096_v58 = vld [vmem:[#allocation83_spill] sm:$0xff]  ;;  %v8097_v39 = vld [vmem:[#allocation84_spill] sm:$0xff] }
 0x5ea   :  { %2656 = vmatpush1.bf16.msra.mxu0 %v8087_v4  ;;  %2697 = vmatpush1.bf16.msra.mxu1 %v8088_v2  ;;  %v8098_v4 = vld [vmem:[#allocation85_spill] sm:$0xff]  ;;  %v8099_v2 = vld [vmem:[#allocation86_spill] sm:$0xff] }
 0x5eb   :  { %2657 = vmatprep.subr.bf16.mxu0 %v8089_v28  ;;  %2698 = vmatprep.subr.bf16.mxu1 %v8090_v8  ;;  %v8100_v28 = vld [vmem:[#allocation87_spill] sm:$0xff]  ;;  %v8101_v8 = vld [vmem:[#allocation88_spill] sm:$0xff] }
 0x5ee   :  { %2658 = vmatpush1.bf16.msra.mxu0 %v8091_v37  ;;  %2699 = vmatpush1.bf16.msra.mxu1 %v8092_v54  ;;  %v8102_v37 = vld [vmem:[#allocation89_spill] sm:$0xff]  ;;  %v8103_v54 = vld [vmem:[#allocation99_spill] sm:$0xff] }
 0x5ef   :  { %2659 = vmatprep.subr.bf16.mxu0 %v8093_v63  ;;  %2700 = vmatprep.subr.bf16.mxu1 %v8094_v6  ;;  %v8104_v63 = vld [vmem:[#allocation101_spill] sm:$0xff]  ;;  %v8105_v6 = vld [vmem:[#allocation102_spill] sm:$0xff] }
 0x5f2   :  { %2660 = vmatpush1.bf16.msra.mxu0 %v8095_v17  ;;  %2701 = vmatpush1.bf16.msra.mxu1 %v8096_v58  ;;  %v8106_v17 = vld [vmem:[#allocation103_spill] sm:$0xff] }
 0x5f3   :  { %2661 = vmatprep.subr.bf16.mxu0 %v8097_v39  ;;  %2702 = vmatprep.subr.bf16.mxu1 %v8098_v4 }
 0x5f6   :  { %2662 = vmatpush1.bf16.msra.mxu0 %v8099_v2  ;;  %2703 = vmatpush1.bf16.msra.mxu1 %v8100_v28 }
 0x5f7   :  { %2663 = vmatprep.subr.bf16.mxu0 %v8101_v8  ;;  %2704 = vmatprep.subr.bf16.mxu1 %v8102_v37 }
 0x5fa   :  { %2664 = vmatpush1.bf16.msra.mxu0 %v8103_v54  ;;  %2705 = vmatpush1.bf16.msra.mxu1 %v8104_v63 }
 0x5fb   :  { %2731 = vmatprep.subr.bf16.mxu0 %v8105_v6  ;;  %2772 = vmatprep.subr.bf16.mxu1 %v8106_v17 }
 0x632   :  { %v2374_v58 = vpop.f32.mrb[60].mxu0  ;;  %v2415_v39 = vpop.f32.mrb[68].mxu1 }
 0x633   :  { %v2376_v35 = vpop.f32.mrb[61].mxu0  ;;  %v2417_v4 = vpop.f32.mrb[69].mxu1 }
 0x634   :  { %v2378_v42 = vpop.f32.mrb[62].mxu0  ;;  %v2419_v2 = vpop.f32.mrb[70].mxu1 }
 0x635   :  { %v2379_v27 = vpop.f32.mrb[63].mxu0  ;;  %v2420_v28 = vpop.f32.mrb[71].mxu1 }
 0x652   :  { %v2456_v49 = vpop.f32.mrb[64].mxu0  ;;  %v2497_v8 = vpop.f32.mrb[72].mxu1 }
 0x653   :  { %v2457_v9 = vadd.f32 %v2456_v49, %v2374_v58  ;;  %v2498_v37 = vadd.f32 %v2497_v8, %v2415_v39  ;;  %v2458_v31 = vpop.f32.mrb[65].mxu0  ;;  %v2499_v54 = vpop.f32.mrb[73].mxu1 }
 0x654   :  { %v2459_v14 = vadd.f32 %v2458_v31, %v2376_v35  ;;  %v2500_v63 = vadd.f32 %v2499_v54, %v2417_v4  ;;  %v2460_v7 = vpop.f32.mrb[66].mxu0  ;;  %v2501_v6 = vpop.f32.mrb[74].mxu1 }
 0x655   :  { %v2504_v17 = vadd.f32 %v2457_v9, %v7979_v16  ;;  %v2461_v48 = vpop.f32.mrb[67].mxu0  ;;  %v2502_v41 = vpop.f32.mrb[75].mxu1  ;;  %v2506_v27 = vadd.f32 %v2498_v37, %v7981_v15  ;;  %v8109_v6 = vld [vmem:[#allocation68_spill] sm:$0xff] }
 0x656   :  { %v2505_v61 = vadd.f32 %v2459_v14, %v7980_v3  ;;  %v2507_v49 = vadd.f32 %v2500_v63, %v7982_v33 }
 0x657   :  { %v4327_v42 = vmul.f32 -1.442695, %v2504_v17  ;;  %v4329_v58 = vmul.f32 -1.442695, %v2506_v27  ;;  %v8112_v27 = vld [vmem:[#allocation71_spill] sm:$0xff] }
 0x658   :  { %v4328_v2 = vmul.f32 -1.442695, %v2505_v61 }
 0x659   :  { %4778 = vpow2.f32 %v4327_v42  ;;  %v8110_v42 = vld [vmem:[#allocation69_spill] sm:$0xff] }
 0x65a   :  { %4780 = vpow2.f32 %v4328_v2  ;;  %v8111_v2 = vld [vmem:[#allocation70_spill] sm:$0xff] }
 0x65b   :  { %4782 = vtanh.f32 %v2507_v49  ;;  %v8113_v49 = vld [vmem:[#allocation72_spill] sm:$0xff] }
 0x65c   :  { %4784 = vpow2.f32 %v4329_v58  ;;  %v8114_v58 = vld [vmem:[#allocation78_spill] sm:$0xff] }
 0x663   :  { %v4779_v39 = vpop.eup %4778 }
 0x664   :  { %v2517_v31 = vadd.f32 1.0, %v4779_v39  ;;  %v4781_v7 = vpop.eup %4780  ;;  %v8115_v39 = vld [vmem:[#allocation80_spill] sm:$0xff] }
 0x665   :  { %v2518_v9 = vadd.f32 1.0, %v4781_v7  ;;  %v4783_v41 = vpop.eup %4782  ;;  %v6683_v7 = vld [vmem:[#allocation9 + $0xc] ss:$16 sps:$4 sm:$0xff]  }
 0x666   :  { %4786 = vrcp.f32 %v2517_v31  ;;  %v4785_v48 = vpop.eup %4784  ;;  %v6680_v31 = vld [vmem:[#allocation9 + $0x4] ss:$16 sps:$4 sm:$0xff]  }
 0x667   :  { %4788 = vrcp.f32 %v2518_v9  ;;  %v2519_v17 = vadd.f32 1.0, %v4785_v48  ;;  %v6688_v9 = vld [vmem:[#allocation9] ss:$16 sps:$4 sm:$0xff]  }
 0x668   :  { %8116 = vst [vmem:[#allocation90_spill] sm:$0xff] %v6688_v9  ;;  %v6698_v48 = vld [vmem:[#allocation9 + $0x20] ss:$16 sps:$4 sm:$0xff]  }
 0x669   :  { %4790 = vrcp.f32 %v2519_v17  ;;  %8118 = vst [vmem:[#allocation92_spill] sm:$0xff] %v6698_v48  ;;  %v6714_v17 = vld [vmem:[#allocation9 + $0x64] ss:$16 sps:$4 sm:$0xff]  }
 0x66a   :  { %8123 = vst [vmem:[#allocation28_spill] sm:$0xff] %v6714_v17 }
 0x670   :  { %v4787_v14 = vpop.eup %4786 }
 0x671   :  { %v2528_v35 = vmul.f32 %v4787_v14, %v4783_v41  ;;  %v4789_v61 = vpop.eup %4788  ;;  %v6692_v41 = vld [vmem:[#allocation9 + $0x24] ss:$16 sps:$4 sm:$0xff]  }
 0x672   :  { %v2527_v4 = vmul.f32 %v4789_v61, %v6449_v26  ;;  %v8108_v26 = vld [vmem:[#allocation67_spill] sm:$0xff]  ;;  %8117 = vst [vmem:[#allocation91_spill] sm:$0xff] %v6692_v41 }
 0x673   :  { %v4791_v8 = vpop.eup %4790 }
 0x674   :  { %v6641_v28 = vadd.f32 %v2528_v35, %v2527_v4  ;;  %v8122_v35 = vld [vmem:[#allocation45_spill] sm:$0xff]  ;;  %v8125_v4 = vld [vmem:[#allocation46_spill] sm:$0xff] }
 0x675   :  { %v544_v61 = vadd.f32 %v8122_v35, %v8068_v51 }
 0x676   :  { %4792 = vtanh.f32 %v6641_v28 }
 0x680   :  { %v4793_v37 = vpop.eup %4792 }
 0x681   :  { %v6644_v54 = vmul.f32 %v4793_v37, %v4791_v8  ;;  %v546_v8 = vadd.f32 %v8125_v4, %v5703_v44  ;;  %v6726_v4 = vld [vmem:[#allocation9 + $0x84] ss:$16 sps:$4 sm:$0xff]  }
 0x682   :  { %8127 = vst [vmem:[#allocation29_spill] sm:$0xff] %v6726_v4 }
 0x683   :  { %8107 = vst [vmem:[#allocation82_spill] sm:$0xff] %v6644_v54  ;;  %v2648_v63 = vpack.c.bf16 %v6644_v54, %v6644_v54 }
 0x685   :  { %2682 = vmatmul.mubr.bf16.vlgmr.msra.gmra.mrb[72].mxu0 %v2648_v63  ;;  %2723 = vmatmul.mubr.bf16.vlgmr.msra.gmra.mrb[80].mxu1 %v2648_v63 }
 0x686   :  { %2732 = vmatpush1.bf16.msra.mxu0 %v6456_v55  ;;  %2773 = vmatpush1.bf16.msra.mxu1 %v6459_v40 }
 0x687   :  { %2733 = vmatprep.subr.bf16.mxu0 %v6462_v19  ;;  %2774 = vmatprep.subr.bf16.mxu1 %v6465_v53 }
 0x688   :  { %2763 = vmatprep.mubr.bf16.mxu0 %v7843_v0  ;;  %2804 = vmatprep.mubr.bf16.mxu1 %v7843_v0 }
 0x68a   :  { %2734 = vmatpush1.bf16.msra.mxu0 %v6470_v62  ;;  %2775 = vmatpush1.bf16.msra.mxu1 %v6473_v45 }
 0x68b   :  { %2735 = vmatprep.subr.bf16.mxu0 %v6476_v24  ;;  %2776 = vmatprep.subr.bf16.mxu1 %v6479_v60 }
 0x68e   :  { %2736 = vmatpush1.bf16.msra.mxu0 %v6482_v59  ;;  %2777 = vmatpush1.bf16.msra.mxu1 %v6485_v20 }
 0x68f   :  { %2737 = vmatprep.subr.bf16.mxu0 %v6488_v32  ;;  %2778 = vmatprep.subr.bf16.mxu1 %v6491_v57 }
 0x692   :  { %2738 = vmatpush1.bf16.msra.mxu0 %v6494_v34  ;;  %2779 = vmatpush1.bf16.msra.mxu1 %v6497_v46 }
 0x693   :  { %2739 = vmatprep.subr.bf16.mxu0 %v6500_v43  ;;  %2780 = vmatprep.subr.bf16.mxu1 %v6503_v5 }
 0x696   :  { %2740 = vmatpush1.bf16.msra.mxu0 %v8108_v26  ;;  %2781 = vmatpush1.bf16.msra.mxu1 %v8109_v6 }
 0x697   :  { %2741 = vmatprep.subr.bf16.mxu0 %v8110_v42  ;;  %2782 = vmatprep.subr.bf16.mxu1 %v8111_v2 }
 0x69a   :  { %2742 = vmatpush1.bf16.msra.mxu0 %v8112_v27  ;;  %2783 = vmatpush1.bf16.msra.mxu1 %v8113_v49 }
 0x69b   :  { %2743 = vmatprep.subr.bf16.mxu0 %v8114_v58  ;;  %2784 = vmatprep.subr.bf16.mxu1 %v8115_v39 }
 0x69e   :  { %2744 = vmatpush1.bf16.msra.mxu0 %v6530_v56  ;;  %2785 = vmatpush1.bf16.msra.mxu1 %v6533_v29 }
 0x69f   :  { %2745 = vmatprep.subr.bf16.mxu0 %v6536_v52  ;;  %2786 = vmatprep.subr.bf16.mxu1 %v6539_v47 }
 0x6a2   :  { %2746 = vmatpush1.bf16.msra.mxu0 %v6542_v23  ;;  %2787 = vmatpush1.bf16.msra.mxu1 %v6545_v50 }
 0x6a3   :  { %2843 = vmatprep.subr.bf16.mxu0 %v6680_v31  ;;  %2884 = vmatprep.subr.bf16.mxu1 %v6683_v7 }
 0x6a5   :  { %2764 = vmatmul.mubr.bf16.vlgmr.msra.gmra.mrb[76].mxu0 %v6598_v30  ;;  %2805 = vmatmul.mubr.bf16.vlgmr.msra.gmra.mrb[84].mxu1 %v6598_v30  ;;  %v6702_v30 = vld [vmem:[#allocation9 + $0x44] ss:$16 sps:$4 sm:$0xff]  }
 0x6a6   :  { %2844 = vmatpush1.bf16.msra.mxu0 %v6688_v9  ;;  %2885 = vmatpush1.bf16.msra.mxu1 %v6263_v38  ;;  %8119 = vst [vmem:[#allocation27_spill] sm:$0xff] %v6702_v30  ;;  %v6706_v38 = vld [vmem:[#allocation9 + $0x40] ss:$16 sps:$4 sm:$0xff]  }
 0x6a7   :  { %2845 = vmatprep.subr.bf16.mxu0 %v6692_v41  ;;  %2886 = vmatprep.subr.bf16.mxu1 %v6267_v21  ;;  %8120 = vst [vmem:[#allocation41_spill] sm:$0xff] %v6706_v38  ;;  %v8121_v21 = vld [vmem:[#allocation31_spill] sm:$0xff]  ;;  %v6722_v9 = vld [vmem:[#allocation9 + $0x60] ss:$16 sps:$4 sm:$0xff]  }
 0x6a8   :  { %2875 = vmatprep.mubr.bf16.mxu0 %v7843_v0  ;;  %2916 = vmatprep.mubr.bf16.mxu1 %v7843_v0  ;;  %v625_v14 = vadd.f32 %v8121_v21, %v8066_v13  ;;  %8126 = vst [vmem:[#allocation42_spill] sm:$0xff] %v6722_v9 }
 0x6aa   :  { %2846 = vmatpush1.bf16.msra.mxu0 %v6698_v48  ;;  %2887 = vmatpush1.bf16.msra.mxu1 %v6273_v10  ;;  %v8124_v10 = vld [vmem:[#allocation32_spill] sm:$0xff] }
 0x6ab   :  { %2847 = vmatprep.subr.bf16.mxu0 %v6702_v30  ;;  %2888 = vmatprep.subr.bf16.mxu1 %v6277_v36  ;;  %v627_v36 = vadd.f32 %v8124_v10, %v8070_v11 }
 0x6ae   :  { %2848 = vmatpush1.bf16.msra.mxu0 %v6706_v38  ;;  %2889 = vmatpush1.bf16.msra.mxu1 %v6281_v25 }
 0x6af   :  { %2849 = vmatprep.subr.bf16.mxu0 %v6714_v17  ;;  %2890 = vmatprep.subr.bf16.mxu1 %v6285_v22 }
 0x6b0   :  { %v2568_v37 = vpop.f32.mrb[68].mxu0  ;;  %v2609_v25 = vpop.f32.mrb[76].mxu1 }
 0x6b1   :  { %v2620_v63 = vadd.f32 %v2568_v37, %v544_v61  ;;  %v2622_v54 = vadd.f32 %v2609_v25, %v625_v14  ;;  %v2570_v21 = vpop.f32.mrb[69].mxu0  ;;  %v2611_v38 = vpop.f32.mrb[77].mxu1  ;;  %v8134_v61 = vld [vmem:[#allocation96_spill] sm:$0xff]  ;;  %v8138_v25 = vld [vmem:[#allocation98_spill] sm:$0xff] }
 0x6b2   :  { %v2621_v30 = vadd.f32 %v2570_v21, %v546_v8  ;;  %v2623_v35 = vadd.f32 %v2611_v38, %v627_v36  ;;  %v2572_v48 = vpop.f32.mrb[70].mxu0  ;;  %v2613_v41 = vpop.f32.mrb[78].mxu1  ;;  %2850 = vmatpush1.bf16.msra.mxu0 %v6722_v9  ;;  %2891 = vmatpush1.bf16.msra.mxu1 %v6289_v12  ;;  %v6730_v38 = vld [vmem:[#allocation9 + $0x80] ss:$16 sps:$4 sm:$0xff]   ;;  %v8136_v36 = vld [vmem:[#allocation97_spill] sm:$0xff] }
 0x6b3   :  { %v4330_v22 = vmul.f32 -1.442695, %v2620_v63  ;;  %v2573_v10 = vpop.f32.mrb[71].mxu0  ;;  %v2614_v17 = vpop.f32.mrb[79].mxu1  ;;  %2851 = vmatprep.subr.bf16.mxu0 %v6726_v4  ;;  %2892 = vmatprep.subr.bf16.mxu1 %v6293_v1  ;;  %8128 = vst [vmem:[#allocation38_spill] sm:$0xff] %v6730_v38  ;;  %v8130_v12 = vld [vmem:[#allocation94_spill] sm:$0xff] }
 0x6b4   :  { %v4331_v14 = vmul.f32 -1.442695, %v2621_v30  ;;  %v6734_v41 = vld [vmem:[#allocation9 + $0xa4] ss:$16 sps:$4 sm:$0xff]   ;;  %v6738_v48 = vld [vmem:[#allocation9 + $0xa0] ss:$16 sps:$4 sm:$0xff]  }
 0x6b5   :  { %4794 = vpow2.f32 %v4330_v22  ;;  %8129 = vst [vmem:[#allocation43_spill] sm:$0xff] %v6734_v41  ;;  %8131 = vst [vmem:[#allocation30_spill] sm:$0xff] %v6738_v48  ;;  %v8132_v1 = vld [vmem:[#allocation95_spill] sm:$0xff]  ;;  %v6742_v30 = vld [vmem:[#allocation9 + $0xc4] ss:$16 sps:$4 sm:$0xff]  }
 0x6b6   :  { %2852 = vmatpush1.bf16.msra.mxu0 %v6730_v38  ;;  %2893 = vmatpush1.bf16.msra.mxu1 %v6297_v18  ;;  %4796 = vpow2.f32 %v4331_v14  ;;  %8133 = vst [vmem:[#allocation44_spill] sm:$0xff] %v6742_v30  ;;  %v4332_v18 = vmul.f32 -1.442695, %v2622_v54  ;;  %v6746_v17 = vld [vmem:[#allocation9 + $0xc0] ss:$16 sps:$4 sm:$0xff]   ;;  %v8141_v14 = vld [vmem:[#allocation25_spill] sm:$0xff] }
 0x6b7   :  { %2853 = vmatprep.subr.bf16.mxu0 %v6734_v41  ;;  %2894 = vmatprep.subr.bf16.mxu1 %v8130_v12  ;;  %8135 = vst [vmem:[#allocation26_spill] sm:$0xff] %v6746_v17  ;;  %v6750_v37 = vld [vmem:[#allocation9 + $0xe4] ss:$16 sps:$4 sm:$0xff]   ;;  %4798 = vtanh.f32 %v2623_v35  ;;  %v6754_v54 = vld [vmem:[#allocation9 + $0xe0] ss:$16 sps:$4 sm:$0xff]   ;;  %v8142_v12 = vld [vmem:[#allocation39_spill] sm:$0xff] }
 0x6b8   :  { %8137 = vst [vmem:[#allocation67_spill] sm:$0xff] %v6750_v37  ;;  %4800 = vpow2.f32 %v4332_v18  ;;  %8139 = vst [vmem:[#allocation68_spill] sm:$0xff] %v6754_v54  ;;  %v8140_v10 = vld [vmem:[#allocation100_spill] sm:$0xff]  ;;  %v8143_v18 = vld [vmem:[#allocation81_spill] sm:$0xff] }
 0x6ba   :  { %2854 = vmatpush1.bf16.msra.mxu0 %v6738_v48  ;;  %2895 = vmatpush1.bf16.msra.mxu1 %v8132_v1 }
 0x6bb   :  { %2855 = vmatprep.subr.bf16.mxu0 %v6742_v30  ;;  %2896 = vmatprep.subr.bf16.mxu1 %v8134_v61 }
 0x6be   :  { %2856 = vmatpush1.bf16.msra.mxu0 %v6746_v17  ;;  %2897 = vmatpush1.bf16.msra.mxu1 %v8136_v36 }
 0x6bf   :  { %v4795_v8 = vpop.eup %4794  ;;  %2857 = vmatprep.subr.bf16.mxu0 %v6750_v37  ;;  %2898 = vmatprep.subr.bf16.mxu1 %v8138_v25 }
 0x6c0   :  { %v2633_v63 = vadd.f32 1.0, %v4795_v8  ;;  %v4797_v21 = vpop.eup %4796 }
 0x6c1   :  { %v2634_v22 = vadd.f32 1.0, %v4797_v21  ;;  %v4799_v1 = vpop.eup %4798 }
 0x6c2   :  { %4802 = vrcp.f32 %v2633_v63  ;;  %2858 = vmatpush1.bf16.msra.mxu0 %v6754_v54  ;;  %2899 = vmatpush1.bf16.msra.mxu1 %v8140_v10  ;;  %v4801_v61 = vpop.eup %4800 }
 0x6c3   :  { %2958 = vmatprep.subr.bf16.mxu0 %v8141_v14  ;;  %2999 = vmatprep.subr.bf16.mxu1 %v8142_v12  ;;  %4804 = vrcp.f32 %v2634_v22  ;;  %v2635_v25 = vadd.f32 1.0, %v4801_v61  ;;  %v8146_v22 = vld [vmem:[#allocation40_spill] sm:$0xff]  ;;  %v8147_v12 = vld [vmem:[#allocation53_spill] sm:$0xff]  ;;  %v8149_v61 = vld [vmem:[#allocation55_spill] sm:$0xff] }
 0x6c5   :  { %4806 = vrcp.f32 %v2635_v25  ;;  %v8155_v25 = vld [vmem:[#allocation61_spill] sm:$0xff] }
 0x6cc   :  { %v4803_v36 = vpop.eup %4802 }
 0x6cd   :  { %v2644_v8 = vmul.f32 %v4803_v36, %v4799_v1  ;;  %v4805_v35 = vpop.eup %4804  ;;  %v8148_v1 = vld [vmem:[#allocation54_spill] sm:$0xff]  ;;  %v8150_v36 = vld [vmem:[#allocation56_spill] sm:$0xff] }
 0x6ce   :  { %v2643_v63 = vmul.f32 %v4805_v35, %v8143_v18  ;;  %v8154_v35 = vld [vmem:[#allocation60_spill] sm:$0xff]  ;;  %v8156_v18 = vld [vmem:[#allocation62_spill] sm:$0xff] }
 0x6cf   :  { %v4807_v54 = vpop.eup %4806 }
 0x6d0   :  { %v6761_v21 = vadd.f32 %v2644_v8, %v2643_v63  ;;  %v8153_v8 = vld [vmem:[#allocation59_spill] sm:$0xff]  ;;  %v8157_v63 = vld [vmem:[#allocation73_spill] sm:$0xff] }
 0x6d2   :  { %8144 = vst [vmem:[#allocation69_spill] sm:$0xff] %v6761_v21  ;;  %4808 = vtanh.f32 %v6761_v21 }
 0x6dc   :  { %v4809_v10 = vpop.eup %4808 }
 0x6dd   :  { %v2647_v37 = vmul.f32 %v4809_v10, %v4807_v54  ;;  %v8152_v54 = vld [vmem:[#allocation58_spill] sm:$0xff] }
 0x6de   :  { %v8158_v10 = vld [vmem:[#allocation74_spill] sm:$0xff] }
 0x6df   :  { %v6764_v14 = vpack.c.bf16 %v2647_v37, %v2647_v37  ;;  %v8151_v37 = vld [vmem:[#allocation57_spill] sm:$0xff] }
 0x6e1   :  { %8145 = vst [vmem:[#allocation70_spill] sm:$0xff] %v6764_v14  ;;  %2876 = vmatmul.mubr.bf16.vlgmr.msra.gmra.mrb[80].mxu0 %v6764_v14  ;;  %2917 = vmatmul.mubr.bf16.vlgmr.msra.gmra.mrb[88].mxu1 %v6764_v14 }
 0x6e2   :  { %2959 = vmatpush1.bf16.msra.mxu0 %v8146_v22  ;;  %3000 = vmatpush1.bf16.msra.mxu1 %v8147_v12  ;;  %v8159_v22 = vld [vmem:[#allocation75_spill] sm:$0xff]  ;;  %v8160_v12 = vld [vmem:[#allocation76_spill] sm:$0xff] }
 0x6e3   :  { %2960 = vmatprep.subr.bf16.mxu0 %v8148_v1  ;;  %3001 = vmatprep.subr.bf16.mxu1 %v8149_v61  ;;  %v8161_v1 = vld [vmem:[#allocation77_spill] sm:$0xff]  ;;  %v8162_v61 = vld [vmem:[#allocation79_spill] sm:$0xff] }
 0x6e4   :  { %2990 = vmatprep.mubr.bf16.mxu0 %v7843_v0  ;;  %3031 = vmatprep.mubr.bf16.mxu1 %v7843_v0 }
 0x6e6   :  { %2961 = vmatpush1.bf16.msra.mxu0 %v8150_v36  ;;  %3002 = vmatpush1.bf16.msra.mxu1 %v8151_v37  ;;  %v8163_v36 = vld [vmem:[#allocation36_spill] sm:$0xff] }
 0x6e7   :  { %2962 = vmatprep.subr.bf16.mxu0 %v8152_v54  ;;  %3003 = vmatprep.subr.bf16.mxu1 %v8153_v8  ;;  %v8164_v37 = vld [vmem:[#allocation104_spill] sm:$0xff]  ;;  %v8165_v54 = vld [vmem:[#allocation63_spill] sm:$0xff] }
 0x6e8   :  { %v8166_v8 = vld [vmem:[#allocation64_spill] sm:$0xff] }
 0x6ea   :  { %2963 = vmatpush1.bf16.msra.mxu0 %v8154_v35  ;;  %3004 = vmatpush1.bf16.msra.mxu1 %v8155_v25  ;;  %v8167_v35 = vld [vmem:[#allocation83_spill] sm:$0xff]  ;;  %v8168_v25 = vld [vmem:[#allocation84_spill] sm:$0xff] }
 0x6eb   :  { %2964 = vmatprep.subr.bf16.mxu0 %v8156_v18  ;;  %3005 = vmatprep.subr.bf16.mxu1 %v8157_v63  ;;  %v8169_v18 = vld [vmem:[#allocation85_spill] sm:$0xff]  ;;  %v8170_v63 = vld [vmem:[#allocation86_spill] sm:$0xff] }
 0x6ee   :  { %2965 = vmatpush1.bf16.msra.mxu0 %v8158_v10  ;;  %3006 = vmatpush1.bf16.msra.mxu1 %v8159_v22  ;;  %v8171_v10 = vld [vmem:[#allocation87_spill] sm:$0xff]  ;;  %v8172_v22 = vld [vmem:[#allocation88_spill] sm:$0xff] }
 0x6ef   :  { %2966 = vmatprep.subr.bf16.mxu0 %v8160_v12  ;;  %3007 = vmatprep.subr.bf16.mxu1 %v8161_v1  ;;  %v8173_v12 = vld [vmem:[#allocation89_spill] sm:$0xff]  ;;  %v8174_v1 = vld [vmem:[#allocation99_spill] sm:$0xff] }
 0x6f2   :  { %2967 = vmatpush1.bf16.msra.mxu0 %v8162_v61  ;;  %3008 = vmatpush1.bf16.msra.mxu1 %v8163_v36  ;;  %v8175_v61 = vld [vmem:[#allocation101_spill] sm:$0xff]  ;;  %v8176_v36 = vld [vmem:[#allocation102_spill] sm:$0xff] }
 0x6f3   :  { %2968 = vmatprep.subr.bf16.mxu0 %v8164_v37  ;;  %3009 = vmatprep.subr.bf16.mxu1 %v8165_v54  ;;  %v8177_v37 = vld [vmem:[#allocation103_spill] sm:$0xff] }
 0x6f6   :  { %2969 = vmatpush1.bf16.msra.mxu0 %v8166_v8  ;;  %3010 = vmatpush1.bf16.msra.mxu1 %v8167_v35 }
 0x6f7   :  { %2970 = vmatprep.subr.bf16.mxu0 %v8168_v25  ;;  %3011 = vmatprep.subr.bf16.mxu1 %v8169_v18 }
 0x6fa   :  { %2971 = vmatpush1.bf16.msra.mxu0 %v8170_v63  ;;  %3012 = vmatpush1.bf16.msra.mxu1 %v8171_v10 }
 0x6fb   :  { %2972 = vmatprep.subr.bf16.mxu0 %v8172_v22  ;;  %3013 = vmatprep.subr.bf16.mxu1 %v8173_v12 }
 0x6fe   :  { %2973 = vmatpush1.bf16.msra.mxu0 %v8174_v1  ;;  %3014 = vmatpush1.bf16.msra.mxu1 %v8175_v61 }
 0x6ff   :  { %3040 = vmatprep.subr.bf16.mxu0 %v8176_v36  ;;  %3081 = vmatprep.subr.bf16.mxu1 %v8177_v37 }
 0x758   :  { %v2683_v54 = vpop.f32.mrb[72].mxu0  ;;  %v2724_v8 = vpop.f32.mrb[80].mxu1 }
 0x759   :  { %v2685_v35 = vpop.f32.mrb[73].mxu0  ;;  %v2726_v25 = vpop.f32.mrb[81].mxu1 }
 0x75a   :  { %v2687_v18 = vpop.f32.mrb[74].mxu0  ;;  %v2728_v63 = vpop.f32.mrb[82].mxu1 }
 0x75b   :  { %v2688_v17 = vpop.f32.mrb[75].mxu0  ;;  %v2729_v10 = vpop.f32.mrb[83].mxu1 }
 0x778   :  { %v2765_v30 = vpop.f32.mrb[76].mxu0  ;;  %v2806_v22 = vpop.f32.mrb[84].mxu1 }
 0x779   :  { %v2766_v48 = vadd.f32 %v2765_v30, %v2683_v54  ;;  %v2807_v12 = vadd.f32 %v2806_v22, %v2724_v8  ;;  %v2767_v41 = vpop.f32.mrb[77].mxu0  ;;  %v2808_v1 = vpop.f32.mrb[85].mxu1 }
 0x77a   :  { %v2768_v38 = vadd.f32 %v2767_v41, %v2685_v35  ;;  %v2809_v61 = vadd.f32 %v2808_v1, %v2726_v25  ;;  %v2769_v4 = vpop.f32.mrb[78].mxu0  ;;  %v2810_v36 = vpop.f32.mrb[86].mxu1 }
 0x77b   :  { %v2813_v37 = vadd.f32 %v2766_v48, %v7979_v16  ;;  %v2770_v9 = vpop.f32.mrb[79].mxu0  ;;  %v2811_v21 = vpop.f32.mrb[87].mxu1  ;;  %v2815_v17 = vadd.f32 %v2807_v12, %v7981_v15 }
 0x77c   :  { %v2814_v14 = vadd.f32 %v2768_v38, %v7980_v3  ;;  %v2816_v30 = vadd.f32 %v2809_v61, %v7982_v33 }
 0x77d   :  { %v4333_v18 = vmul.f32 -1.442695, %v2813_v37  ;;  %v4335_v54 = vmul.f32 -1.442695, %v2815_v17 }
 0x77e   :  { %v4334_v63 = vmul.f32 -1.442695, %v2814_v14 }
 0x77f   :  { %4810 = vpow2.f32 %v4333_v18  ;;  %v8182_v18 = vld [vmem:[#allocation48_spill] sm:$0xff] }
 0x780   :  { %4812 = vpow2.f32 %v4334_v63  ;;  %v552_v63 = vadd.f32 %v8182_v18, %v5703_v44  ;;  %v8195_v18 = vld [vmem:[#allocation30_spill] sm:$0xff] }
 0x781   :  { %4814 = vtanh.f32 %v2816_v30 }
 0x782   :  { %4816 = vpow2.f32 %v4335_v54 }
 0x789   :  { %v4811_v8 = vpop.eup %4810 }
 0x78a   :  { %v2826_v41 = vadd.f32 1.0, %v4811_v8  ;;  %v4813_v4 = vpop.eup %4812 }
 0x78b   :  { %v2827_v48 = vadd.f32 1.0, %v4813_v4  ;;  %v4815_v9 = vpop.eup %4814 }
 0x78c   :  { %4818 = vrcp.f32 %v2826_v41  ;;  %v4817_v21 = vpop.eup %4816 }
 0x78d   :  { %4820 = vrcp.f32 %v2827_v48  ;;  %v2828_v25 = vadd.f32 1.0, %v4817_v21 }
 0x78f   :  { %4822 = vrcp.f32 %v2828_v25 }
 0x796   :  { %v4819_v38 = vpop.eup %4818 }
 0x797   :  { %v2837_v35 = vmul.f32 %v4819_v38, %v4815_v9  ;;  %v4821_v14 = vpop.eup %4820 }
 0x798   :  { %v2836_v10 = vmul.f32 %v4821_v14, %v6641_v28  ;;  %v6878_v14 = vld [vmem:[#allocation9 + $0x48] ss:$16 sps:$4 sm:$0xff]  }
 0x799   :  { %v4823_v12 = vpop.eup %4822 }
 0x79a   :  { %v6807_v22 = vadd.f32 %v2837_v35, %v2836_v10  ;;  %v8189_v35 = vld [vmem:[#allocation41_spill] sm:$0xff]  ;;  %v8190_v10 = vld [vmem:[#allocation28_spill] sm:$0xff] }
 0x79c   :  { %4824 = vtanh.f32 %v6807_v22 }
 0x7a6   :  { %v4825_v1 = vpop.eup %4824 }
 0x7a7   :  { %v6810_v61 = vmul.f32 %v4825_v1, %v4823_v12  ;;  %v6884_v12 = vld [vmem:[#allocation9 + $0x6c] ss:$16 sps:$4 sm:$0xff]   ;;  %v8191_v1 = vld [vmem:[#allocation42_spill] sm:$0xff] }
 0x7a9   :  { %8178 = vst [vmem:[#allocation71_spill] sm:$0xff] %v6810_v61  ;;  %v2957_v36 = vpack.c.bf16 %v6810_v61, %v6810_v61  ;;  %v6987_v61 = vld [vmem:[#allocation12 + $0x88] ss:$16 sps:$4 sm:$0xff]  }
 0x7aa   :  { %8220 = vst [vmem:[#allocation56_spill] sm:$0xff] %v6987_v61 }
 0x7ab   :  { %2991 = vmatmul.mubr.bf16.vlgmr.msra.gmra.mrb[84].mxu0 %v2957_v36  ;;  %3032 = vmatmul.mubr.bf16.vlgmr.msra.gmra.mrb[92].mxu1 %v2957_v36  ;;  %v6889_v36 = vld [vmem:[#allocation9 + $0x68] ss:$16 sps:$4 sm:$0xff]  }
 0x7ac   :  { %3041 = vmatpush1.bf16.msra.mxu0 %v6456_v55  ;;  %3082 = vmatpush1.bf16.msra.mxu1 %v6459_v40  ;;  %v8179_v55 = vld [vmem:[#allocation33_spill] sm:$0xff]  ;;  %v8180_v40 = vld [vmem:[#allocation47_spill] sm:$0xff] }
 0x7ad   :  { %3042 = vmatprep.subr.bf16.mxu0 %v6462_v19  ;;  %3083 = vmatprep.subr.bf16.mxu1 %v6465_v53  ;;  %v631_v28 = vadd.f32 %v8179_v55, %v8066_v13  ;;  %v550_v19 = vadd.f32 %v8180_v40, %v8068_v51  ;;  %v8181_v53 = vld [vmem:[#allocation34_spill] sm:$0xff]  ;;  %v8192_v55 = vld [vmem:[#allocation29_spill] sm:$0xff] }
 0x7ae   :  { %3072 = vmatprep.mubr.bf16.mxu0 %v7843_v0  ;;  %3113 = vmatprep.mubr.bf16.mxu1 %v7843_v0  ;;  %v633_v37 = vadd.f32 %v8181_v53, %v8070_v11  ;;  %v8193_v40 = vld [vmem:[#allocation38_spill] sm:$0xff]  ;;  %v8194_v53 = vld [vmem:[#allocation43_spill] sm:$0xff] }
 0x7b0   :  { %3043 = vmatpush1.bf16.msra.mxu0 %v6470_v62  ;;  %3084 = vmatpush1.bf16.msra.mxu1 %v6473_v45 }
 0x7b1   :  { %3044 = vmatprep.subr.bf16.mxu0 %v6476_v24  ;;  %3085 = vmatprep.subr.bf16.mxu1 %v6479_v60 }
 0x7b4   :  { %3045 = vmatpush1.bf16.msra.mxu0 %v6482_v59  ;;  %3086 = vmatpush1.bf16.msra.mxu1 %v6485_v20  ;;  %v2877_v62 = vpop.f32.mrb[80].mxu0  ;;  %v2918_v45 = vpop.f32.mrb[88].mxu1 }
 0x7b5   :  { %3046 = vmatprep.subr.bf16.mxu0 %v6488_v32  ;;  %3087 = vmatprep.subr.bf16.mxu1 %v6491_v57  ;;  %v2929_v24 = vadd.f32 %v2877_v62, %v550_v19  ;;  %v2931_v60 = vadd.f32 %v2918_v45, %v631_v28  ;;  %v2879_v17 = vpop.f32.mrb[81].mxu0  ;;  %v2920_v30 = vpop.f32.mrb[89].mxu1  ;;  %v6893_v28 = vld [vmem:[#allocation9 + $0x8c] ss:$16 sps:$4 sm:$0xff]   ;;  %v6897_v19 = vld [vmem:[#allocation9 + $0x88] ss:$16 sps:$4 sm:$0xff]  }
 0x7b6   :  { %v2930_v54 = vadd.f32 %v2879_v17, %v552_v63  ;;  %v2932_v8 = vadd.f32 %v2920_v30, %v633_v37  ;;  %v2881_v41 = vpop.f32.mrb[82].mxu0  ;;  %v2922_v4 = vpop.f32.mrb[90].mxu1  ;;  %v6901_v37 = vld [vmem:[#allocation9 + $0xac] ss:$16 sps:$4 sm:$0xff]   ;;  %v6905_v63 = vld [vmem:[#allocation9 + $0xa8] ss:$16 sps:$4 sm:$0xff]  }
 0x7b7   :  { %v4336_v48 = vmul.f32 -1.442695, %v2929_v24  ;;  %v2882_v9 = vpop.f32.mrb[83].mxu0  ;;  %v2923_v21 = vpop.f32.mrb[91].mxu1  ;;  %v4338_v32 = vmul.f32 -1.442695, %v2931_v60 }
 0x7b8   :  { %3047 = vmatpush1.bf16.msra.mxu0 %v6494_v34  ;;  %3088 = vmatpush1.bf16.msra.mxu1 %v6497_v46  ;;  %v4337_v59 = vmul.f32 -1.442695, %v2930_v54  ;;  %v8196_v45 = vld [vmem:[#allocation44_spill] sm:$0xff]  ;;  %v6909_v24 = vld [vmem:[#allocation9 + $0xcc] ss:$16 sps:$4 sm:$0xff]   ;;  %v8197_v30 = vld [vmem:[#allocation26_spill] sm:$0xff] }
 0x7b9   :  { %4826 = vpow2.f32 %v4336_v48  ;;  %3048 = vmatprep.subr.bf16.mxu0 %v6500_v43  ;;  %3089 = vmatprep.subr.bf16.mxu1 %v6503_v5  ;;  %v8183_v43 = vld [vmem:[#allocation70_spill] sm:$0xff]  ;;  %v6913_v54 = vld [vmem:[#allocation9 + $0xc8] ss:$16 sps:$4 sm:$0xff]   ;;  %v6917_v41 = vld [vmem:[#allocation9 + $0xec] ss:$16 sps:$4 sm:$0xff]  }
 0x7ba   :  { %4828 = vpow2.f32 %v4337_v59  ;;  %v8184_v5 = vld [vmem:[#allocation90_spill] sm:$0xff]  ;;  %v8199_v48 = vld [vmem:[#allocation68_spill] sm:$0xff]  ;;  %v6923_v9 = vld [vmem:[#allocation9 + $0xe8] ss:$16 sps:$4 sm:$0xff]  }
 0x7bb   :  { %4830 = vtanh.f32 %v2932_v8  ;;  %v8198_v8 = vld [vmem:[#allocation67_spill] sm:$0xff]  ;;  %8200 = vst [vmem:[#allocation72_spill] sm:$0xff] %v6923_v9  ;;  %v6926_v21 = vld [vmem:[#allocation12 + $0x4] ss:$16 sps:$4 sm:$0xff]  }
 0x7bc   :  { %3049 = vmatpush1.bf16.msra.mxu0 %v8108_v26  ;;  %3090 = vmatpush1.bf16.msra.mxu1 %v8109_v6  ;;  %v6869_v26 = vld [vmem:[#allocation9 + $0x28] ss:$16 sps:$4 sm:$0xff]   ;;  %8201 = vst [vmem:[#allocation78_spill] sm:$0xff] %v6926_v21  ;;  %v6929_v59 = vld [vmem:[#allocation12 + $0xc] ss:$16 sps:$4 sm:$0xff]  }
 0x7bd   :  { %3050 = vmatprep.subr.bf16.mxu0 %v8110_v42  ;;  %3091 = vmatprep.subr.bf16.mxu1 %v8111_v2  ;;  %v8187_v2 = vld [vmem:[#allocation27_spill] sm:$0xff]  ;;  %8202 = vst [vmem:[#allocation80_spill] sm:$0xff] %v6929_v59 }
 0x7c0   :  { %3051 = vmatpush1.bf16.msra.mxu0 %v8112_v27  ;;  %3092 = vmatpush1.bf16.msra.mxu1 %v8113_v49  ;;  %v6873_v27 = vld [vmem:[#allocation9 + $0x4c] ss:$16 sps:$4 sm:$0xff]  }
 0x7c1   :  { %3052 = vmatprep.subr.bf16.mxu0 %v8114_v58  ;;  %3093 = vmatprep.subr.bf16.mxu1 %v8115_v39  ;;  %v8188_v58 = vld [vmem:[#allocation69_spill] sm:$0xff] }
 0x7c3   :  { %v4827_v20 = vpop.eup %4826 }
 0x7c4   :  { %v2942_v57 = vadd.f32 1.0, %v4827_v20  ;;  %3053 = vmatpush1.bf16.msra.mxu0 %v6530_v56  ;;  %3094 = vmatpush1.bf16.msra.mxu1 %v6533_v29  ;;  %v4829_v34 = vpop.eup %4828  ;;  %v6859_v56 = vld [vmem:[#allocation9 + $0x8] ss:$16 sps:$4 sm:$0xff]   ;;  %v6863_v29 = vld [vmem:[#allocation9 + $0x2c] ss:$16 sps:$4 sm:$0xff]  }
 0x7c5   :  { %3054 = vmatprep.subr.bf16.mxu0 %v6536_v52  ;;  %3095 = vmatprep.subr.bf16.mxu1 %v6539_v47  ;;  %v2943_v46 = vadd.f32 1.0, %v4829_v34  ;;  %v8185_v47 = vld [vmem:[#allocation91_spill] sm:$0xff]  ;;  %v8186_v52 = vld [vmem:[#allocation92_spill] sm:$0xff] }
 0x7c6   :  { %4832 = vrcp.f32 %v2942_v57  ;;  %v6934_v20 = vld [vmem:[#allocation12] ss:$16 sps:$4 sm:$0xff]   ;;  %v6940_v57 = vld [vmem:[#allocation12 + $0x24] ss:$16 sps:$4 sm:$0xff]   ;;  %v6943_v34 = vld [vmem:[#allocation12 + $0x2c] ss:$16 sps:$4 sm:$0xff]  }
 0x7c7   :  { %4834 = vpow2.f32 %v4338_v32  ;;  %8203 = vst [vmem:[#allocation31_spill] sm:$0xff] %v6934_v20  ;;  %v6937_v32 = vld [vmem:[#allocation12 + $0x8] ss:$16 sps:$4 sm:$0xff]   ;;  %8205 = vst [vmem:[#allocation32_spill] sm:$0xff] %v6940_v57 }
 0x7c8   :  { %4836 = vrcp.f32 %v2943_v46  ;;  %3055 = vmatpush1.bf16.msra.mxu0 %v6542_v23  ;;  %3096 = vmatpush1.bf16.msra.mxu1 %v6545_v50  ;;  %v4831_v23 = vpop.eup %4830  ;;  %8204 = vst [vmem:[#allocation45_spill] sm:$0xff] %v6937_v32  ;;  %8206 = vst [vmem:[#allocation46_spill] sm:$0xff] %v6943_v34  ;;  %v6948_v46 = vld [vmem:[#allocation12 + $0x20] ss:$16 sps:$4 sm:$0xff]  }
 0x7c9   :  { %3152 = vmatprep.subr.bf16.mxu0 %v6680_v31  ;;  %3193 = vmatprep.subr.bf16.mxu1 %v6683_v7  ;;  %8207 = vst [vmem:[#allocation94_spill] sm:$0xff] %v6948_v46 }
 0x7cb   :  { %3073 = vmatmul.mubr.bf16.vlgmr.msra.gmra.mrb[88].mxu0 %v8183_v43  ;;  %3114 = vmatmul.mubr.bf16.vlgmr.msra.gmra.mrb[96].mxu1 %v8183_v43  ;;  %v6951_v43 = vld [vmem:[#allocation12 + $0x28] ss:$16 sps:$4 sm:$0xff]  }
 0x7cc   :  { %3153 = vmatpush1.bf16.msra.mxu0 %v8184_v5  ;;  %3194 = vmatpush1.bf16.msra.mxu1 %v6859_v56  ;;  %8208 = vst [vmem:[#allocation95_spill] sm:$0xff] %v6951_v43 }
 0x7cd   :  { %3154 = vmatprep.subr.bf16.mxu0 %v8185_v47  ;;  %3195 = vmatprep.subr.bf16.mxu1 %v6863_v29 }
 0x7ce   :  { %3184 = vmatprep.mubr.bf16.mxu0 %v7843_v0  ;;  %3225 = vmatprep.mubr.bf16.mxu1 %v7843_v0 }
 0x7d0   :  { %v4833_v50 = vpop.eup %4832  ;;  %3155 = vmatpush1.bf16.msra.mxu0 %v8186_v52  ;;  %3196 = vmatpush1.bf16.msra.mxu1 %v6869_v26 }
 0x7d1   :  { %v4835_v6 = vpop.eup %4834  ;;  %v2953_v42 = vmul.f32 %v4833_v50, %v4831_v23  ;;  %3156 = vmatprep.subr.bf16.mxu0 %v8187_v2  ;;  %3197 = vmatprep.subr.bf16.mxu1 %v6873_v27  ;;  %v6954_v23 = vld [vmem:[#allocation12 + $0x44] ss:$16 sps:$4 sm:$0xff]   ;;  %v6957_v50 = vld [vmem:[#allocation12 + $0x4c] ss:$16 sps:$4 sm:$0xff]  }
 0x7d2   :  { %v4837_v49 = vpop.eup %4836  ;;  %v2944_v38 = vadd.f32 1.0, %v4835_v6  ;;  %8209 = vst [vmem:[#allocation96_spill] sm:$0xff] %v6954_v23  ;;  %8210 = vst [vmem:[#allocation97_spill] sm:$0xff] %v6957_v50  ;;  %v6960_v6 = vld [vmem:[#allocation12 + $0x40] ss:$16 sps:$4 sm:$0xff]  }
 0x7d3   :  { %v2952_v39 = vmul.f32 %v4837_v49, %v8188_v58  ;;  %8211 = vst [vmem:[#allocation98_spill] sm:$0xff] %v6960_v6  ;;  %v6966_v49 = vld [vmem:[#allocation12 + $0x64] ss:$16 sps:$4 sm:$0xff]   ;;  %v6969_v58 = vld [vmem:[#allocation12 + $0x6c] ss:$16 sps:$4 sm:$0xff]  }
 0x7d4   :  { %3157 = vmatpush1.bf16.msra.mxu0 %v8189_v35  ;;  %3198 = vmatpush1.bf16.msra.mxu1 %v6878_v14  ;;  %8213 = vst [vmem:[#allocation25_spill] sm:$0xff] %v6966_v49  ;;  %8214 = vst [vmem:[#allocation39_spill] sm:$0xff] %v6969_v58 }
 0x7d5   :  { %v6881_v25 = vadd.f32 %v2953_v42, %v2952_v39  ;;  %3158 = vmatprep.subr.bf16.mxu0 %v8190_v10  ;;  %3199 = vmatprep.subr.bf16.mxu1 %v6884_v12  ;;  %v6963_v42 = vld [vmem:[#allocation12 + $0x48] ss:$16 sps:$4 sm:$0xff]   ;;  %v6972_v39 = vld [vmem:[#allocation12 + $0x60] ss:$16 sps:$4 sm:$0xff]  }
 0x7d6   :  { %8212 = vst [vmem:[#allocation100_spill] sm:$0xff] %v6963_v42  ;;  %8215 = vst [vmem:[#allocation81_spill] sm:$0xff] %v6972_v39 }
 0x7d7   :  { %4838 = vtanh.f32 %v6881_v25 }
 0x7d8   :  { %4840 = vrcp.f32 %v2944_v38  ;;  %3159 = vmatpush1.bf16.msra.mxu0 %v8191_v1  ;;  %3200 = vmatpush1.bf16.msra.mxu1 %v6889_v36  ;;  %v6975_v38 = vld [vmem:[#allocation12 + $0x68] ss:$16 sps:$4 sm:$0xff]  }
 0x7d9   :  { %3160 = vmatprep.subr.bf16.mxu0 %v8192_v55  ;;  %3201 = vmatprep.subr.bf16.mxu1 %v6893_v28  ;;  %8216 = vst [vmem:[#allocation40_spill] sm:$0xff] %v6975_v38 }
 0x7dc   :  { %3161 = vmatpush1.bf16.msra.mxu0 %v8193_v40  ;;  %3202 = vmatpush1.bf16.msra.mxu1 %v6897_v19 }
 0x7dd   :  { %3162 = vmatprep.subr.bf16.mxu0 %v8194_v53  ;;  %3203 = vmatprep.subr.bf16.mxu1 %v6901_v37 }
 0x7e0   :  { %3163 = vmatpush1.bf16.msra.mxu0 %v8195_v18  ;;  %3204 = vmatpush1.bf16.msra.mxu1 %v6905_v63 }
 0x7e1   :  { %v4839_v62 = vpop.eup %4838  ;;  %3164 = vmatprep.subr.bf16.mxu0 %v8196_v45  ;;  %3205 = vmatprep.subr.bf16.mxu1 %v6909_v24 }
 0x7e2   :  { %v4841_v60 = vpop.eup %4840 }
 0x7e3   :  { %v2956_v17 = vmul.f32 %v4841_v60, %v4839_v62  ;;  %v6978_v62 = vld [vmem:[#allocation12 + $0x84] ss:$16 sps:$4 sm:$0xff]   ;;  %v6981_v60 = vld [vmem:[#allocation12 + $0x8c] ss:$16 sps:$4 sm:$0xff]  }
 0x7e4   :  { %3165 = vmatpush1.bf16.msra.mxu0 %v8197_v30  ;;  %3206 = vmatpush1.bf16.msra.mxu1 %v6913_v54  ;;  %8217 = vst [vmem:[#allocation53_spill] sm:$0xff] %v6978_v62  ;;  %8218 = vst [vmem:[#allocation54_spill] sm:$0xff] %v6981_v60 }
 0x7e5   :  { %3166 = vmatprep.subr.bf16.mxu0 %v8198_v8  ;;  %3207 = vmatprep.subr.bf16.mxu1 %v6917_v41  ;;  %v6920_v4 = vpack.c.bf16 %v2956_v17, %v2956_v17  ;;  %v6984_v17 = vld [vmem:[#allocation12 + $0x80] ss:$16 sps:$4 sm:$0xff]  }
 0x7e6   :  { %8219 = vst [vmem:[#allocation55_spill] sm:$0xff] %v6984_v17 }
 0x7e8   :  { %3167 = vmatpush1.bf16.msra.mxu0 %v8199_v48  ;;  %3208 = vmatpush1.bf16.msra.mxu1 %v6923_v9 }
 0x7e9   :  { %3267 = vmatprep.subr.bf16.mxu0 %v6926_v21  ;;  %3308 = vmatprep.subr.bf16.mxu1 %v6929_v59 }
 0x7eb   :  { %3185 = vmatmul.mubr.bf16.vlgmr.msra.gmra.mrb[92].mxu0 %v6920_v4  ;;  %3226 = vmatmul.mubr.bf16.vlgmr.msra.gmra.mrb[100].mxu1 %v6920_v4 }
 0x7ec   :  { %3268 = vmatpush1.bf16.msra.mxu0 %v6934_v20  ;;  %3309 = vmatpush1.bf16.msra.mxu1 %v6937_v32 }
 0x7ed   :  { %3269 = vmatprep.subr.bf16.mxu0 %v6940_v57  ;;  %3310 = vmatprep.subr.bf16.mxu1 %v6943_v34 }
 0x7ee   :  { %3299 = vmatprep.mubr.bf16.mxu0 %v7843_v0  ;;  %3340 = vmatprep.mubr.bf16.mxu1 %v7843_v0 }
 0x7f0   :  { %3270 = vmatpush1.bf16.msra.mxu0 %v6948_v46  ;;  %3311 = vmatpush1.bf16.msra.mxu1 %v6951_v43 }
 0x7f1   :  { %3271 = vmatprep.subr.bf16.mxu0 %v6954_v23  ;;  %3312 = vmatprep.subr.bf16.mxu1 %v6957_v50 }
 0x7f4   :  { %3272 = vmatpush1.bf16.msra.mxu0 %v6960_v6  ;;  %3313 = vmatpush1.bf16.msra.mxu1 %v6963_v42 }
 0x7f5   :  { %3273 = vmatprep.subr.bf16.mxu0 %v6966_v49  ;;  %3314 = vmatprep.subr.bf16.mxu1 %v6969_v58 }
 0x7f8   :  { %3274 = vmatpush1.bf16.msra.mxu0 %v6972_v39  ;;  %3315 = vmatpush1.bf16.msra.mxu1 %v6975_v38  ;;  %v6990_v39 = vld [vmem:[#allocation12 + $0xa4] ss:$16 sps:$4 sm:$0xff]   ;;  %v6993_v38 = vld [vmem:[#allocation12 + $0xac] ss:$16 sps:$4 sm:$0xff]  }
 0x7f9   :  { %3275 = vmatprep.subr.bf16.mxu0 %v6978_v62  ;;  %3316 = vmatprep.subr.bf16.mxu1 %v6981_v60  ;;  %8221 = vst [vmem:[#allocation57_spill] sm:$0xff] %v6990_v39  ;;  %8222 = vst [vmem:[#allocation58_spill] sm:$0xff] %v6993_v38  ;;  %v6996_v62 = vld [vmem:[#allocation12 + $0xa0] ss:$16 sps:$4 sm:$0xff]   ;;  %v6999_v60 = vld [vmem:[#allocation12 + $0xa8] ss:$16 sps:$4 sm:$0xff]  }
 0x7fa   :  { %8223 = vst [vmem:[#allocation59_spill] sm:$0xff] %v6996_v62  ;;  %8224 = vst [vmem:[#allocation60_spill] sm:$0xff] %v6999_v60 }
 0x7fc   :  { %3276 = vmatpush1.bf16.msra.mxu0 %v6984_v17  ;;  %3317 = vmatpush1.bf16.msra.mxu1 %v6987_v61  ;;  %v7002_v17 = vld [vmem:[#allocation12 + $0xc4] ss:$16 sps:$4 sm:$0xff]   ;;  %v7005_v61 = vld [vmem:[#allocation12 + $0xcc] ss:$16 sps:$4 sm:$0xff]  }
 0x7fd   :  { %3277 = vmatprep.subr.bf16.mxu0 %v6990_v39  ;;  %3318 = vmatprep.subr.bf16.mxu1 %v6993_v38  ;;  %8225 = vst [vmem:[#allocation61_spill] sm:$0xff] %v7002_v17  ;;  %8226 = vst [vmem:[#allocation62_spill] sm:$0xff] %v7005_v61  ;;  %v7008_v39 = vld [vmem:[#allocation12 + $0xc0] ss:$16 sps:$4 sm:$0xff]   ;;  %v7011_v38 = vld [vmem:[#allocation12 + $0xc8] ss:$16 sps:$4 sm:$0xff]  }
 0x7fe   :  { %8227 = vst [vmem:[#allocation73_spill] sm:$0xff] %v7008_v39  ;;  %8228 = vst [vmem:[#allocation74_spill] sm:$0xff] %v7011_v38 }
 0x800   :  { %3278 = vmatpush1.bf16.msra.mxu0 %v6996_v62  ;;  %3319 = vmatpush1.bf16.msra.mxu1 %v6999_v60  ;;  %v7014_v62 = vld [vmem:[#allocation12 + $0xe4] ss:$16 sps:$4 sm:$0xff]   ;;  %v7017_v60 = vld [vmem:[#allocation12 + $0xec] ss:$16 sps:$4 sm:$0xff]  }
 0x801   :  { %3279 = vmatprep.subr.bf16.mxu0 %v7002_v17  ;;  %3320 = vmatprep.subr.bf16.mxu1 %v7005_v61  ;;  %8229 = vst [vmem:[#allocation75_spill] sm:$0xff] %v7014_v62  ;;  %8230 = vst [vmem:[#allocation76_spill] sm:$0xff] %v7017_v60  ;;  %v7020_v17 = vld [vmem:[#allocation12 + $0xe0] ss:$16 sps:$4 sm:$0xff]   ;;  %v7023_v61 = vld [vmem:[#allocation12 + $0xe8] ss:$16 sps:$4 sm:$0xff]  }
 0x802   :  { %8231 = vst [vmem:[#allocation77_spill] sm:$0xff] %v7020_v17  ;;  %8232 = vst [vmem:[#allocation79_spill] sm:$0xff] %v7023_v61 }
 0x804   :  { %3280 = vmatpush1.bf16.msra.mxu0 %v7008_v39  ;;  %3321 = vmatpush1.bf16.msra.mxu1 %v7011_v38  ;;  %v7026_v39 = vld [vmem:[#allocation10 + $0x4] ss:$16 sps:$4 sm:$0xff]   ;;  %v7029_v38 = vld [vmem:[#allocation10 + $0xc] ss:$16 sps:$4 sm:$0xff]  }
 0x805   :  { %3281 = vmatprep.subr.bf16.mxu0 %v7014_v62  ;;  %3322 = vmatprep.subr.bf16.mxu1 %v7017_v60  ;;  %8233 = vst [vmem:[#allocation36_spill] sm:$0xff] %v7026_v39  ;;  %8234 = vst [vmem:[#allocation104_spill] sm:$0xff] %v7029_v38 }
 0x808   :  { %3282 = vmatpush1.bf16.msra.mxu0 %v7020_v17  ;;  %3323 = vmatpush1.bf16.msra.mxu1 %v7023_v61 }
 0x809   :  { %3349 = vmatprep.subr.bf16.mxu0 %v7026_v39  ;;  %3390 = vmatprep.subr.bf16.mxu1 %v7029_v38 }
 0x87e   :  { %v2992_v62 = vpop.f32.mrb[84].mxu0  ;;  %v3033_v58 = vpop.f32.mrb[92].mxu1 }
 0x87f   :  { %v2994_v49 = vpop.f32.mrb[85].mxu0  ;;  %v3035_v60 = vpop.f32.mrb[93].mxu1 }
 0x880   :  { %v2996_v42 = vpop.f32.mrb[86].mxu0  ;;  %v3037_v6 = vpop.f32.mrb[94].mxu1 }
 0x881   :  { %v2997_v50 = vpop.f32.mrb[87].mxu0  ;;  %v3038_v17 = vpop.f32.mrb[95].mxu1 }
 0x89e   :  { %v3074_v23 = vpop.f32.mrb[88].mxu0  ;;  %v3115_v43 = vpop.f32.mrb[96].mxu1 }
 0x89f   :  { %v3075_v46 = vadd.f32 %v3074_v23, %v2992_v62  ;;  %v3116_v61 = vadd.f32 %v3115_v43, %v3033_v58  ;;  %v3076_v34 = vpop.f32.mrb[89].mxu0  ;;  %v3117_v57 = vpop.f32.mrb[97].mxu1 }
 0x8a0   :  { %v3077_v32 = vadd.f32 %v3076_v34, %v2994_v49  ;;  %v3118_v39 = vadd.f32 %v3117_v57, %v3035_v60  ;;  %v3078_v20 = vpop.f32.mrb[90].mxu0  ;;  %v3119_v59 = vpop.f32.mrb[98].mxu1  ;;  %v8238_v60 = vld [vmem:[#allocation50_spill] sm:$0xff] }
 0x8a1   :  { %v3122_v38 = vadd.f32 %v3075_v46, %v7979_v16  ;;  %v3079_v21 = vpop.f32.mrb[91].mxu0  ;;  %v3120_v9 = vpop.f32.mrb[99].mxu1  ;;  %v3124_v50 = vadd.f32 %v3116_v61, %v7981_v15  ;;  %v8236_v46 = vld [vmem:[#allocation49_spill] sm:$0xff]  ;;  %v556_v17 = vadd.f32 %v8238_v60, %v5703_v44 }
 0x8a2   :  { %v3123_v48 = vadd.f32 %v3077_v32, %v7980_v3  ;;  %v3125_v43 = vadd.f32 %v3118_v39, %v7982_v33  ;;  %v554_v61 = vadd.f32 %v8236_v46, %v8068_v51 }
 0x8a3   :  { %v4339_v42 = vmul.f32 -1.442695, %v3122_v38  ;;  %v4341_v23 = vmul.f32 -1.442695, %v3124_v50  ;;  %v8237_v38 = vld [vmem:[#allocation37_spill] sm:$0xff] }
 0x8a4   :  { %v4340_v6 = vmul.f32 -1.442695, %v3123_v48  ;;  %v8235_v48 = vld [vmem:[#allocation35_spill] sm:$0xff]  ;;  %v637_v62 = vadd.f32 %v8237_v38, %v8070_v11 }
 0x8a5   :  { %4842 = vpow2.f32 %v4339_v42  ;;  %v635_v57 = vadd.f32 %v8235_v48, %v8066_v13 }
 0x8a6   :  { %4844 = vpow2.f32 %v4340_v6 }
 0x8a7   :  { %4846 = vtanh.f32 %v3125_v43 }
 0x8a8   :  { %4848 = vpow2.f32 %v4341_v23 }
 0x8af   :  { %v4843_v58 = vpop.eup %4842 }
 0x8b0   :  { %v3135_v34 = vadd.f32 1.0, %v4843_v58  ;;  %v4845_v20 = vpop.eup %4844 }
 0x8b1   :  { %v3136_v59 = vadd.f32 1.0, %v4845_v20  ;;  %v4847_v9 = vpop.eup %4846 }
 0x8b2   :  { %4850 = vrcp.f32 %v3135_v34  ;;  %v4849_v21 = vpop.eup %4848 }
 0x8b3   :  { %4852 = vrcp.f32 %v3136_v59  ;;  %v3137_v42 = vadd.f32 1.0, %v4849_v21 }
 0x8b5   :  { %4854 = vrcp.f32 %v3137_v42  ;;  %v7060_v42 = vld [vmem:[#allocation10 + $0x24] ss:$16 sps:$4 sm:$0xff]  }
 0x8bc   :  { %v4851_v32 = vpop.eup %4850 }
 0x8bd   :  { %v3146_v49 = vmul.f32 %v4851_v32, %v4847_v9  ;;  %v4853_v39 = vpop.eup %4852 }
 0x8be   :  { %v3186_v6 = vpop.f32.mrb[92].mxu0  ;;  %v3227_v50 = vpop.f32.mrb[100].mxu1  ;;  %v3145_v43 = vmul.f32 %v4853_v39, %v6807_v22 }
 0x8bf   :  { %v3238_v23 = vadd.f32 %v3186_v6, %v554_v61  ;;  %v7045_v58 = vadd.f32 %v3227_v50, %v635_v57  ;;  %v3188_v34 = vpop.f32.mrb[93].mxu0  ;;  %v3229_v20 = vpop.f32.mrb[101].mxu1  ;;  %v7063_v6 = vld [vmem:[#allocation10 + $0x2c] ss:$16 sps:$4 sm:$0xff]   ;;  %v7068_v50 = vld [vmem:[#allocation10 + $0x20] ss:$16 sps:$4 sm:$0xff]  }
 0x8c0   :  { %v3239_v59 = vadd.f32 %v3188_v34, %v556_v17  ;;  %v3241_v48 = vadd.f32 %v3229_v20, %v637_v62  ;;  %v3190_v9 = vpop.f32.mrb[94].mxu0  ;;  %v3231_v32 = vpop.f32.mrb[102].mxu1  ;;  %v7047_v46 = vadd.f32 %v3146_v49, %v3145_v43  ;;  %v7057_v17 = vld [vmem:[#allocation10 + $0x8] ss:$16 sps:$4 sm:$0xff]   ;;  %v7077_v34 = vld [vmem:[#allocation10 + $0x4c] ss:$16 sps:$4 sm:$0xff]  }
 0x8c1   :  { %v4342_v38 = vmul.f32 -1.442695, %v3238_v23  ;;  %v3191_v11 = vpop.f32.mrb[95].mxu0  ;;  %v3232_v13 = vpop.f32.mrb[103].mxu1  ;;  %v7071_v43 = vld [vmem:[#allocation10 + $0x28] ss:$16 sps:$4 sm:$0xff]  }
 0x8c2   :  { %v4343_v21 = vmul.f32 -1.442695, %v3239_v59  ;;  %4856 = vtanh.f32 %v7047_v46  ;;  %v4855_v22 = vpop.eup %4854  ;;  %v7054_v13 = vld [vmem:[#allocation10] ss:$16 sps:$4 sm:$0xff]   ;;  %v7074_v23 = vld [vmem:[#allocation10 + $0x44] ss:$16 sps:$4 sm:$0xff]  }
 0x8c3   :  { %4858 = vpow2.f32 %v4342_v38  ;;  %v7083_v9 = vld [vmem:[#allocation10 + $0x48] ss:$16 sps:$4 sm:$0xff]   ;;  %v7086_v38 = vld [vmem:[#allocation10 + $0x64] ss:$16 sps:$4 sm:$0xff]  }
 0x8c4   :  { %4860 = vpow2.f32 %v4343_v21  ;;  %v7089_v21 = vld [vmem:[#allocation10 + $0x6c] ss:$16 sps:$4 sm:$0xff]  }
 0x8c5   :  { %4862 = vtanh.f32 %v3241_v48  ;;  %v7080_v48 = vld [vmem:[#allocation10 + $0x40] ss:$16 sps:$4 sm:$0xff]  }
 0x8cc   :  { %v4857_v57 = vpop.eup %4856 }
 0x8cd   :  { %v4859_v61 = vpop.eup %4858  ;;  %v7050_v39 = vmul.f32 %v4857_v57, %v4855_v22 }
 0x8ce   :  { %v3251_v60 = vadd.f32 1.0, %v4859_v61  ;;  %v4861_v62 = vpop.eup %4860  ;;  %v7093_v61 = vld [vmem:[#allocation10 + $0x60] ss:$16 sps:$4 sm:$0xff]  }
 0x8cf   :  { %8239 = vst [vmem:[#allocation63_spill] sm:$0xff] %v7050_v39  ;;  %v3266_v49 = vpack.c.bf16 %v7050_v39, %v7050_v39  ;;  %v3252_v11 = vadd.f32 1.0, %v4861_v62  ;;  %v4863_v20 = vpop.eup %4862  ;;  %v7125_v39 = vld [vmem:[#allocation10 + $0xc4] ss:$16 sps:$4 sm:$0xff]  }
 0x8d0   :  { %4864 = vrcp.f32 %v3251_v60  ;;  %v7096_v60 = vld [vmem:[#allocation10 + $0x68] ss:$16 sps:$4 sm:$0xff]   ;;  %8246 = vst [vmem:[#allocation88_spill] sm:$0xff] %v7125_v39 }
 0x8d1   :  { %3300 = vmatmul.mubr.bf16.vlgmr.msra.gmra.mrb[96].mxu0 %v3266_v49  ;;  %3341 = vmatmul.mubr.bf16.vlgmr.msra.gmra.mrb[104].mxu1 %v3266_v49  ;;  %4866 = vrcp.f32 %v3252_v11  ;;  %v7101_v49 = vld [vmem:[#allocation10 + $0x84] ss:$16 sps:$4 sm:$0xff]   ;;  %v7104_v11 = vld [vmem:[#allocation10 + $0x8c] ss:$16 sps:$4 sm:$0xff]  }
 0x8d2   :  { %3350 = vmatpush1.bf16.msra.mxu0 %v7054_v13  ;;  %3391 = vmatpush1.bf16.msra.mxu1 %v7057_v17 }
 0x8d3   :  { %3351 = vmatprep.subr.bf16.mxu0 %v7060_v42  ;;  %3392 = vmatprep.subr.bf16.mxu1 %v7063_v6 }
 0x8d4   :  { %3381 = vmatprep.mubr.bf16.mxu0 %v7843_v0  ;;  %3422 = vmatprep.mubr.bf16.mxu1 %v7843_v0 }
 0x8d6   :  { %3352 = vmatpush1.bf16.msra.mxu0 %v7068_v50  ;;  %3393 = vmatpush1.bf16.msra.mxu1 %v7071_v43 }
 0x8d7   :  { %3353 = vmatprep.subr.bf16.mxu0 %v7074_v23  ;;  %3394 = vmatprep.subr.bf16.mxu1 %v7077_v34 }
 0x8da   :  { %v4865_v59 = vpop.eup %4864  ;;  %3354 = vmatpush1.bf16.msra.mxu0 %v7080_v48  ;;  %3395 = vmatpush1.bf16.msra.mxu1 %v7083_v9 }
 0x8db   :  { %v3262_v32 = vmul.f32 %v4865_v59, %v4863_v20  ;;  %3355 = vmatprep.subr.bf16.mxu0 %v7086_v38  ;;  %3396 = vmatprep.subr.bf16.mxu1 %v7089_v21  ;;  %v4867_v22 = vpop.eup %4866  ;;  %v7107_v20 = vld [vmem:[#allocation10 + $0x80] ss:$16 sps:$4 sm:$0xff]   ;;  %v7113_v59 = vld [vmem:[#allocation10 + $0xa4] ss:$16 sps:$4 sm:$0xff]  }
 0x8dc   :  { %v3261_v57 = vmul.f32 %v4867_v22, %v6881_v25  ;;  %8240 = vst [vmem:[#allocation64_spill] sm:$0xff] %v7107_v20  ;;  %v7110_v25 = vld [vmem:[#allocation10 + $0x88] ss:$16 sps:$4 sm:$0xff]   ;;  %8242 = vst [vmem:[#allocation84_spill] sm:$0xff] %v7113_v59  ;;  %v7119_v22 = vld [vmem:[#allocation10 + $0xa0] ss:$16 sps:$4 sm:$0xff]  }
 0x8dd   :  { %8241 = vst [vmem:[#allocation83_spill] sm:$0xff] %v7110_v25  ;;  %8244 = vst [vmem:[#allocation86_spill] sm:$0xff] %v7119_v22 }
 0x8de   :  { %3356 = vmatpush1.bf16.msra.mxu0 %v7093_v61  ;;  %3397 = vmatpush1.bf16.msra.mxu1 %v7096_v60  ;;  %v7099_v62 = vadd.f32 %v3262_v32, %v3261_v57  ;;  %v7116_v32 = vld [vmem:[#allocation10 + $0xac] ss:$16 sps:$4 sm:$0xff]   ;;  %v7122_v57 = vld [vmem:[#allocation10 + $0xa8] ss:$16 sps:$4 sm:$0xff]  }
 0x8df   :  { %3357 = vmatprep.subr.bf16.mxu0 %v7101_v49  ;;  %3398 = vmatprep.subr.bf16.mxu1 %v7104_v11  ;;  %8243 = vst [vmem:[#allocation85_spill] sm:$0xff] %v7116_v32  ;;  %8245 = vst [vmem:[#allocation87_spill] sm:$0xff] %v7122_v57 }
 0x8e2   :  { %3358 = vmatpush1.bf16.msra.mxu0 %v7107_v20  ;;  %3399 = vmatpush1.bf16.msra.mxu1 %v7110_v25  ;;  %v7128_v25 = vld [vmem:[#allocation10 + $0xcc] ss:$16 sps:$4 sm:$0xff]   ;;  %v7138_v20 = vld [vmem:[#allocation10 + $0xe4] ss:$16 sps:$4 sm:$0xff]  }
 0x8e3   :  { %3359 = vmatprep.subr.bf16.mxu0 %v7113_v59  ;;  %3400 = vmatprep.subr.bf16.mxu1 %v7116_v32  ;;  %8247 = vst [vmem:[#allocation89_spill] sm:$0xff] %v7128_v25  ;;  %v7131_v59 = vld [vmem:[#allocation10 + $0xc0] ss:$16 sps:$4 sm:$0xff]   ;;  %v7134_v32 = vld [vmem:[#allocation10 + $0xc8] ss:$16 sps:$4 sm:$0xff]  }
 0x8e6   :  { %3360 = vmatpush1.bf16.msra.mxu0 %v7119_v22  ;;  %3401 = vmatpush1.bf16.msra.mxu1 %v7122_v57  ;;  %v4344_v22 = vmul.f32 -1.442695, %v7045_v58  ;;  %v7141_v57 = vld [vmem:[#allocation10 + $0xec] ss:$16 sps:$4 sm:$0xff]   ;;  %v8273_v58 = vld [vmem:[#allocation60_spill] sm:$0xff] }
 0x8e7   :  { %3361 = vmatprep.subr.bf16.mxu0 %v7125_v39  ;;  %3402 = vmatprep.subr.bf16.mxu1 %v7128_v25  ;;  %v7144_v39 = vld [vmem:[#allocation10 + $0xe0] ss:$16 sps:$4 sm:$0xff]   ;;  %v7147_v25 = vld [vmem:[#allocation10 + $0xe8] ss:$16 sps:$4 sm:$0xff]  }
 0x8e8   :  { %4868 = vpow2.f32 %v4344_v22  ;;  %v8274_v22 = vld [vmem:[#allocation61_spill] sm:$0xff] }
 0x8e9   :  { %4870 = vtanh.f32 %v7099_v62 }
 0x8ea   :  { %3362 = vmatpush1.bf16.msra.mxu0 %v7131_v59  ;;  %3403 = vmatpush1.bf16.msra.mxu1 %v7134_v32 }
 0x8eb   :  { %3363 = vmatprep.subr.bf16.mxu0 %v7138_v20  ;;  %3404 = vmatprep.subr.bf16.mxu1 %v7141_v57 }
 0x8ee   :  { %3364 = vmatpush1.bf16.msra.mxu0 %v7144_v39  ;;  %3405 = vmatpush1.bf16.msra.mxu1 %v7147_v25 }
 0x8ef   :  { %3461 = vmatprep.subr.bf16.mxu0 %v6680_v31  ;;  %3502 = vmatprep.subr.bf16.mxu1 %v6683_v7 }
 0x8f1   :  { %3382 = vmatmul.mubr.bf16.vlgmr.msra.gmra.mrb[100].mxu0 %v6920_v4  ;;  %3423 = vmatmul.mubr.bf16.vlgmr.msra.gmra.mrb[108].mxu1 %v6920_v4  ;;  %v8272_v4 = vld [vmem:[#allocation59_spill] sm:$0xff] }
 0x8f2   :  { %3462 = vmatpush1.bf16.msra.mxu0 %v8184_v5  ;;  %3503 = vmatpush1.bf16.msra.mxu1 %v6859_v56  ;;  %v4869_v31 = vpop.eup %4868 }
 0x8f3   :  { %3463 = vmatprep.subr.bf16.mxu0 %v8185_v47  ;;  %3504 = vmatprep.subr.bf16.mxu1 %v6863_v29  ;;  %v3253_v7 = vadd.f32 1.0, %v4869_v31  ;;  %v4871_v5 = vpop.eup %4870  ;;  %v8248_v29 = vld [vmem:[#allocation68_spill] sm:$0xff]  ;;  %v8275_v31 = vld [vmem:[#allocation62_spill] sm:$0xff] }
 0x8f4   :  { %3493 = vmatprep.mubr.bf16.mxu0 %v7843_v0  ;;  %3534 = vmatprep.mubr.bf16.mxu1 %v7843_v0 }
 0x8f5   :  { %4872 = vrcp.f32 %v3253_v7  ;;  %v8276_v7 = vld [vmem:[#allocation73_spill] sm:$0xff] }
 0x8f6   :  { %3464 = vmatpush1.bf16.msra.mxu0 %v8186_v52  ;;  %3505 = vmatpush1.bf16.msra.mxu1 %v6869_v26  ;;  %v8249_v52 = vld [vmem:[#allocation72_spill] sm:$0xff] }
 0x8f7   :  { %3465 = vmatprep.subr.bf16.mxu0 %v8187_v2  ;;  %3506 = vmatprep.subr.bf16.mxu1 %v6873_v27  ;;  %v8250_v2 = vld [vmem:[#allocation78_spill] sm:$0xff]  ;;  %v8251_v27 = vld [vmem:[#allocation80_spill] sm:$0xff] }
 0x8fa   :  { %3466 = vmatpush1.bf16.msra.mxu0 %v8189_v35  ;;  %3507 = vmatpush1.bf16.msra.mxu1 %v6878_v14  ;;  %v8252_v35 = vld [vmem:[#allocation31_spill] sm:$0xff]  ;;  %v8253_v14 = vld [vmem:[#allocation45_spill] sm:$0xff] }
 0x8fb   :  { %3467 = vmatprep.subr.bf16.mxu0 %v8190_v10  ;;  %3508 = vmatprep.subr.bf16.mxu1 %v6884_v12  ;;  %v8254_v10 = vld [vmem:[#allocation32_spill] sm:$0xff]  ;;  %v8255_v12 = vld [vmem:[#allocation46_spill] sm:$0xff] }
 0x8fe   :  { %3468 = vmatpush1.bf16.msra.mxu0 %v8191_v1  ;;  %3509 = vmatpush1.bf16.msra.mxu1 %v6889_v36  ;;  %v8256_v1 = vld [vmem:[#allocation94_spill] sm:$0xff]  ;;  %v8257_v36 = vld [vmem:[#allocation95_spill] sm:$0xff] }
 0x8ff   :  { %3469 = vmatprep.subr.bf16.mxu0 %v8192_v55  ;;  %3510 = vmatprep.subr.bf16.mxu1 %v6893_v28  ;;  %v4873_v56 = vpop.eup %4872  ;;  %v8258_v55 = vld [vmem:[#allocation96_spill] sm:$0xff]  ;;  %v8259_v28 = vld [vmem:[#allocation97_spill] sm:$0xff] }
 0x900   :  { %v3265_v47 = vmul.f32 %v4873_v56, %v4871_v5  ;;  %v8277_v5 = vld [vmem:[#allocation74_spill] sm:$0xff]  ;;  %v8278_v56 = vld [vmem:[#allocation75_spill] sm:$0xff] }
 0x902   :  { %3470 = vmatpush1.bf16.msra.mxu0 %v8193_v40  ;;  %3511 = vmatpush1.bf16.msra.mxu1 %v6897_v19  ;;  %v7187_v26 = vpack.c.bf16 %v3265_v47, %v3265_v47  ;;  %v8260_v40 = vld [vmem:[#allocation98_spill] sm:$0xff]  ;;  %v8261_v19 = vld [vmem:[#allocation100_spill] sm:$0xff] }
 0x903   :  { %3471 = vmatprep.subr.bf16.mxu0 %v8194_v53  ;;  %3512 = vmatprep.subr.bf16.mxu1 %v6901_v37  ;;  %v8262_v53 = vld [vmem:[#allocation25_spill] sm:$0xff]  ;;  %v8263_v37 = vld [vmem:[#allocation39_spill] sm:$0xff]  ;;  %v8279_v47 = vld [vmem:[#allocation76_spill] sm:$0xff] }
 0x906   :  { %3472 = vmatpush1.bf16.msra.mxu0 %v8195_v18  ;;  %3513 = vmatpush1.bf16.msra.mxu1 %v6905_v63  ;;  %v8264_v18 = vld [vmem:[#allocation81_spill] sm:$0xff]  ;;  %v8265_v63 = vld [vmem:[#allocation40_spill] sm:$0xff] }
 0x907   :  { %3473 = vmatprep.subr.bf16.mxu0 %v8196_v45  ;;  %3514 = vmatprep.subr.bf16.mxu1 %v6909_v24  ;;  %v8266_v45 = vld [vmem:[#allocation53_spill] sm:$0xff]  ;;  %v8267_v24 = vld [vmem:[#allocation54_spill] sm:$0xff] }
 0x90a   :  { %3474 = vmatpush1.bf16.msra.mxu0 %v8197_v30  ;;  %3515 = vmatpush1.bf16.msra.mxu1 %v6913_v54  ;;  %v8268_v30 = vld [vmem:[#allocation55_spill] sm:$0xff]  ;;  %v8269_v54 = vld [vmem:[#allocation56_spill] sm:$0xff] }
 0x90b   :  { %3475 = vmatprep.subr.bf16.mxu0 %v8198_v8  ;;  %3516 = vmatprep.subr.bf16.mxu1 %v6917_v41  ;;  %v8270_v8 = vld [vmem:[#allocation57_spill] sm:$0xff]  ;;  %v8271_v41 = vld [vmem:[#allocation58_spill] sm:$0xff] }
 0x90e   :  { %3476 = vmatpush1.bf16.msra.mxu0 %v8248_v29  ;;  %3517 = vmatpush1.bf16.msra.mxu1 %v8249_v52  ;;  %v8280_v29 = vld [vmem:[#allocation77_spill] sm:$0xff]  ;;  %v8281_v52 = vld [vmem:[#allocation79_spill] sm:$0xff] }
 0x90f   :  { %3576 = vmatprep.subr.bf16.mxu0 %v8250_v2  ;;  %3617 = vmatprep.subr.bf16.mxu1 %v8251_v27 }
 0x911   :  { %3494 = vmatmul.mubr.bf16.vlgmr.msra.gmra.mrb[16].mxu0 %v7187_v26  ;;  %3535 = vmatmul.mubr.bf16.vlgmr.msra.gmra.mrb[16].mxu1 %v7187_v26 }
 0x912   :  { %3577 = vmatpush1.bf16.msra.mxu0 %v8252_v35  ;;  %3618 = vmatpush1.bf16.msra.mxu1 %v8253_v14 }
 0x913   :  { %3578 = vmatprep.subr.bf16.mxu0 %v8254_v10  ;;  %3619 = vmatprep.subr.bf16.mxu1 %v8255_v12 }
 0x914   :  { %3608 = vmatprep.mubr.bf16.mxu0 %v7843_v0  ;;  %3649 = vmatprep.mubr.bf16.mxu1 %v7843_v0 }
 0x916   :  { %3579 = vmatpush1.bf16.msra.mxu0 %v8256_v1  ;;  %3620 = vmatpush1.bf16.msra.mxu1 %v8257_v36 }
 0x917   :  { %3580 = vmatprep.subr.bf16.mxu0 %v8258_v55  ;;  %3621 = vmatprep.subr.bf16.mxu1 %v8259_v28 }
 0x91a   :  { %3581 = vmatpush1.bf16.msra.mxu0 %v8260_v40  ;;  %3622 = vmatpush1.bf16.msra.mxu1 %v8261_v19 }
 0x91b   :  { %3582 = vmatprep.subr.bf16.mxu0 %v8262_v53  ;;  %3623 = vmatprep.subr.bf16.mxu1 %v8263_v37 }
 0x91e   :  { %3583 = vmatpush1.bf16.msra.mxu0 %v8264_v18  ;;  %3624 = vmatpush1.bf16.msra.mxu1 %v8265_v63 }
 0x91f   :  { %3584 = vmatprep.subr.bf16.mxu0 %v8266_v45  ;;  %3625 = vmatprep.subr.bf16.mxu1 %v8267_v24 }
 0x922   :  { %3585 = vmatpush1.bf16.msra.mxu0 %v8268_v30  ;;  %3626 = vmatpush1.bf16.msra.mxu1 %v8269_v54 }
 0x923   :  { %3586 = vmatprep.subr.bf16.mxu0 %v8270_v8  ;;  %3627 = vmatprep.subr.bf16.mxu1 %v8271_v41  ;;  %v8282_v41 = vld [vmem:[#allocation36_spill] sm:$0xff] }
 0x926   :  { %3587 = vmatpush1.bf16.msra.mxu0 %v8272_v4  ;;  %3628 = vmatpush1.bf16.msra.mxu1 %v8273_v58  ;;  %v8283_v4 = vld [vmem:[#allocation104_spill] sm:$0xff] }
 0x927   :  { %3588 = vmatprep.subr.bf16.mxu0 %v8274_v22  ;;  %3629 = vmatprep.subr.bf16.mxu1 %v8275_v31 }
 0x92a   :  { %3589 = vmatpush1.bf16.msra.mxu0 %v8276_v7  ;;  %3630 = vmatpush1.bf16.msra.mxu1 %v8277_v5 }
 0x92b   :  { %3590 = vmatprep.subr.bf16.mxu0 %v8278_v56  ;;  %3631 = vmatprep.subr.bf16.mxu1 %v8279_v47 }
 0x92e   :  { %3591 = vmatpush1.bf16.msra.mxu0 %v8280_v29  ;;  %3632 = vmatpush1.bf16.msra.mxu1 %v8281_v52 }
 0x92f   :  { %3658 = vmatprep.subr.bf16.mxu0 %v8282_v41  ;;  %3699 = vmatprep.subr.bf16.mxu1 %v8283_v4 }
 0x9a4   :  { %v3301_v58 = vpop.f32.mrb[96].mxu0  ;;  %v3342_v22 = vpop.f32.mrb[104].mxu1 }
 0x9a5   :  { %v3303_v8 = vpop.f32.mrb[97].mxu0  ;;  %v3344_v31 = vpop.f32.mrb[105].mxu1 }
 0x9a6   :  { %v3305_v54 = vpop.f32.mrb[98].mxu0  ;;  %v3346_v7 = vpop.f32.mrb[106].mxu1 }
 0x9a7   :  { %v3306_v30 = vpop.f32.mrb[99].mxu0  ;;  %v3347_v5 = vpop.f32.mrb[107].mxu1 }
 0x9c4   :  { %v3383_v24 = vpop.f32.mrb[100].mxu0  ;;  %v3424_v56 = vpop.f32.mrb[108].mxu1 }
 0x9c5   :  { %v3384_v45 = vadd.f32 %v3383_v24, %v3301_v58  ;;  %v3425_v47 = vadd.f32 %v3424_v56, %v3342_v22  ;;  %v3385_v63 = vpop.f32.mrb[101].mxu0  ;;  %v3426_v29 = vpop.f32.mrb[109].mxu1 }
 0x9c6   :  { %v3386_v18 = vadd.f32 %v3385_v63, %v3303_v8  ;;  %v3427_v52 = vadd.f32 %v3426_v29, %v3344_v31  ;;  %v3387_v37 = vpop.f32.mrb[102].mxu0  ;;  %v3428_v41 = vpop.f32.mrb[110].mxu1 }
 0x9c7   :  { %v3431_v4 = vadd.f32 %v3384_v45, %v7979_v16  ;;  %v3388_v53 = vpop.f32.mrb[103].mxu0  ;;  %v3429_v19 = vpop.f32.mrb[111].mxu1  ;;  %v3433_v30 = vadd.f32 %v3425_v47, %v7981_v15 }
 0x9c8   :  { %v3432_v40 = vadd.f32 %v3386_v18, %v7980_v3  ;;  %v3434_v24 = vadd.f32 %v3427_v52, %v7982_v33 }
 0x9c9   :  { %v4345_v54 = vmul.f32 -1.442695, %v3431_v4  ;;  %v4347_v58 = vmul.f32 -1.442695, %v3433_v30 }
 0x9ca   :  { %v4346_v7 = vmul.f32 -1.442695, %v3432_v40 }
 0x9cb   :  { %4874 = vpow2.f32 %v4345_v54 }
 0x9cc   :  { %4876 = vpow2.f32 %v4346_v7 }
 0x9cd   :  { %4878 = vtanh.f32 %v3434_v24 }
 0x9ce   :  { %4880 = vpow2.f32 %v4347_v58 }
 0x9d5   :  { %v4875_v22 = vpop.eup %4874 }
 0x9d6   :  { %v3444_v63 = vadd.f32 1.0, %v4875_v22  ;;  %v4877_v37 = vpop.eup %4876 }
 0x9d7   :  { %v3445_v45 = vadd.f32 1.0, %v4877_v37  ;;  %v4879_v19 = vpop.eup %4878 }
 0x9d8   :  { %4882 = vrcp.f32 %v3444_v63  ;;  %v4881_v53 = vpop.eup %4880 }
 0x9d9   :  { %4884 = vrcp.f32 %v3445_v45  ;;  %v3446_v41 = vadd.f32 1.0, %v4881_v53 }
 0x9db   :  { %4886 = vrcp.f32 %v3446_v41 }
 0x9e2   :  { %v4883_v18 = vpop.eup %4882 }
 0x9e3   :  { %v3455_v8 = vmul.f32 %v4883_v18, %v4879_v19  ;;  %v4885_v40 = vpop.eup %4884 }
 0x9e4   :  { %v3495_v4 = vpop.f32.mrb[16].mxu0  ;;  %v3536_v31 = vpop.f32.mrb[16].mxu1  ;;  %v3454_v5 = vmul.f32 %v4885_v40, %v7047_v46  ;;  %v8284_v46 = vld [vmem:[#allocation51_spill] sm:$0xff] }
 0x9e5   :  { %v4415_v56 = vadd.f32 %v3495_v4, %v8068_v51  ;;  %v3497_v47 = vpop.f32.mrb[17].mxu0  ;;  %v3538_v29 = vpop.f32.mrb[17].mxu1  ;;  %v4417_v37 = vadd.f32 %v3536_v31, %v8284_v46  ;;  %v8285_v51 = vld [vmem:[#allocation52_spill] sm:$0xff]  ;;  %v8289_v46 = vld [vmem:[#allocation85_spill] sm:$0xff] }
 0x9e6   :  { %v4416_v52 = vadd.f32 %v3497_v47, %v5703_v44  ;;  %v3499_v54 = vpop.f32.mrb[18].mxu0  ;;  %v3540_v7 = vpop.f32.mrb[18].mxu1  ;;  %v7234_v30 = vadd.f32 %v3455_v8, %v3454_v5  ;;  %v4418_v45 = vadd.f32 %v3538_v29, %v8285_v51  ;;  %v8292_v51 = vld [vmem:[#allocation88_spill] sm:$0xff] }
 0x9e7   :  { %v4348_v24 = vmul.f32 -1.442695, %v4415_v56  ;;  %v3500_v58 = vpop.f32.mrb[19].mxu0  ;;  %v3541_v22 = vpop.f32.mrb[19].mxu1  ;;  %v4350_v53 = vmul.f32 -1.442695, %v4417_v37 }
 0x9e8   :  { %v4349_v63 = vmul.f32 -1.442695, %v4416_v52  ;;  %4888 = vtanh.f32 %v7234_v30  ;;  %v4887_v19 = vpop.eup %4886  ;;  %v8286_v58 = vld [vmem:[#allocation64_spill] sm:$0xff]  ;;  %v8287_v22 = vld [vmem:[#allocation83_spill] sm:$0xff] }
 0x9e9   :  { %4890 = vpow2.f32 %v4348_v24  ;;  %v8291_v37 = vld [vmem:[#allocation87_spill] sm:$0xff] }
 0x9ea   :  { %4892 = vpow2.f32 %v4349_v63  ;;  %v8288_v63 = vld [vmem:[#allocation84_spill] sm:$0xff] }
 0x9eb   :  { %4894 = vtanh.f32 %v4418_v45  ;;  %v8293_v45 = vld [vmem:[#allocation89_spill] sm:$0xff] }
 0x9ec   :  { %4896 = vpow2.f32 %v4350_v53 }
 0x9f2   :  { %v4889_v44 = vpop.eup %4888 }
 0x9f3   :  { %v4891_v18 = vpop.eup %4890  ;;  %v7239_v40 = vmul.f32 %v4889_v44, %v4887_v19 }
 0x9f4   :  { %v3560_v8 = vadd.f32 1.0, %v4891_v18  ;;  %v4893_v4 = vpop.eup %4892  ;;  %v8305_v18 = vld [vmem:[#allocation58_spill] sm:$0xff] }
 0x9f5   :  { %v3575_v41 = vpack.c.bf16 %v7239_v40, %v7239_v40  ;;  %v3561_v5 = vadd.f32 1.0, %v4893_v4  ;;  %v4895_v31 = vpop.eup %4894  ;;  %v8307_v4 = vld [vmem:[#allocation60_spill] sm:$0xff] }
 0x9f6   :  { %4898 = vrcp.f32 %v3560_v8  ;;  %v4897_v56 = vpop.eup %4896  ;;  %v8306_v8 = vld [vmem:[#allocation59_spill] sm:$0xff] }
 0x9f7   :  { %3609 = vmatmul.mubr.bf16.vlgmr.msra.gmra.mrb[104].mxu0 %v3575_v41  ;;  %3650 = vmatmul.mubr.bf16.vlgmr.msra.gmra.mrb[112].mxu1 %v3575_v41  ;;  %4900 = vrcp.f32 %v3561_v5  ;;  %v3562_v54 = vadd.f32 1.0, %v4897_v56  ;;  %v8308_v41 = vld [vmem:[#allocation61_spill] sm:$0xff]  ;;  %v8309_v5 = vld [vmem:[#allocation62_spill] sm:$0xff] }
 0x9f8   :  { %3659 = vmatpush1.bf16.msra.mxu0 %v7054_v13  ;;  %3700 = vmatpush1.bf16.msra.mxu1 %v7057_v17  ;;  %v8311_v56 = vld [vmem:[#allocation74_spill] sm:$0xff] }
 0x9f9   :  { %3660 = vmatprep.subr.bf16.mxu0 %v7060_v42  ;;  %3701 = vmatprep.subr.bf16.mxu1 %v7063_v6  ;;  %4902 = vrcp.f32 %v3562_v54  ;;  %v8315_v54 = vld [vmem:[#allocation79_spill] sm:$0xff] }
 0x9fa   :  { %3690 = vmatprep.mubr.bf16.mxu0 %v7843_v0  ;;  %3731 = vmatprep.mubr.bf16.mxu1 %v7843_v0 }
 0x9fc   :  { %3661 = vmatpush1.bf16.msra.mxu0 %v7068_v50  ;;  %3702 = vmatpush1.bf16.msra.mxu1 %v7071_v43 }
 0x9fd   :  { %3662 = vmatprep.subr.bf16.mxu0 %v7074_v23  ;;  %3703 = vmatprep.subr.bf16.mxu1 %v7077_v34 }
 0xa00   :  { %v4899_v47 = vpop.eup %4898  ;;  %3663 = vmatpush1.bf16.msra.mxu0 %v7080_v48  ;;  %3704 = vmatpush1.bf16.msra.mxu1 %v7083_v9 }
 0xa01   :  { %v3571_v29 = vmul.f32 %v4899_v47, %v4895_v31  ;;  %3664 = vmatprep.subr.bf16.mxu0 %v7086_v38  ;;  %3705 = vmatprep.subr.bf16.mxu1 %v7089_v21  ;;  %v4901_v52 = vpop.eup %4900  ;;  %v8310_v31 = vld [vmem:[#allocation73_spill] sm:$0xff]  ;;  %v8312_v47 = vld [vmem:[#allocation75_spill] sm:$0xff] }
 0xa02   :  { %v3570_v7 = vmul.f32 %v4901_v52, %v7099_v62  ;;  %v8290_v62 = vld [vmem:[#allocation86_spill] sm:$0xff]  ;;  %v8314_v52 = vld [vmem:[#allocation77_spill] sm:$0xff] }
 0xa03   :  { %v4903_v19 = vpop.eup %4902 }
 0xa04   :  { %3665 = vmatpush1.bf16.msra.mxu0 %v7093_v61  ;;  %3706 = vmatpush1.bf16.msra.mxu1 %v7096_v60  ;;  %v3572_v24 = vadd.f32 %v3571_v29, %v3570_v7  ;;  %v8313_v29 = vld [vmem:[#allocation76_spill] sm:$0xff] }
 0xa05   :  { %3666 = vmatprep.subr.bf16.mxu0 %v7101_v49  ;;  %3707 = vmatprep.subr.bf16.mxu1 %v7104_v11  ;;  %v8316_v7 = vld [vmem:[#allocation36_spill] sm:$0xff] }
 0xa06   :  { %4904 = vtanh.f32 %v3572_v24  ;;  %3965 = vst [vmem:[#allocation18] sm:$0xff] %v3572_v24  ;;  %v8317_v24 = vld [vmem:[#allocation104_spill] sm:$0xff] }
 0xa08   :  { %3667 = vmatpush1.bf16.msra.mxu0 %v8286_v58  ;;  %3708 = vmatpush1.bf16.msra.mxu1 %v8287_v22 }
 0xa09   :  { %3668 = vmatprep.subr.bf16.mxu0 %v8288_v63  ;;  %3709 = vmatprep.subr.bf16.mxu1 %v8289_v46 }
 0xa0c   :  { %3669 = vmatpush1.bf16.msra.mxu0 %v8290_v62  ;;  %3710 = vmatpush1.bf16.msra.mxu1 %v8291_v37 }
 0xa0d   :  { %3670 = vmatprep.subr.bf16.mxu0 %v8292_v51  ;;  %3711 = vmatprep.subr.bf16.mxu1 %v8293_v45 }
 0xa10   :  { %3671 = vmatpush1.bf16.msra.mxu0 %v7131_v59  ;;  %3712 = vmatpush1.bf16.msra.mxu1 %v7134_v32  ;;  %v4905_v53 = vpop.eup %4904 }
 0xa11   :  { %3672 = vmatprep.subr.bf16.mxu0 %v7138_v20  ;;  %3713 = vmatprep.subr.bf16.mxu1 %v7141_v57  ;;  %v7274_v44 = vmul.f32 %v4905_v53, %v4903_v19 }
 0xa13   :  { %3964 = vst [vmem:[#allocation16] sm:$0xff] %v7274_v44 }
 0xa14   :  { %3673 = vmatpush1.bf16.msra.mxu0 %v7144_v39  ;;  %3714 = vmatpush1.bf16.msra.mxu1 %v7147_v25 }
 0xa15   :  { %3770 = vmatprep.subr.bf16.mxu0 %v8250_v2  ;;  %3811 = vmatprep.subr.bf16.mxu1 %v8251_v27  ;;  %v8295_v2 = vld [vmem:[#allocation100_spill] sm:$0xff]  ;;  %v8296_v27 = vld [vmem:[#allocation25_spill] sm:$0xff] }
 0xa17   :  { %3691 = vmatmul.mubr.bf16.vlgmr.msra.gmra.mrb[108].mxu0 %v7187_v26  ;;  %3732 = vmatmul.mubr.bf16.vlgmr.msra.gmra.mrb[116].mxu1 %v7187_v26  ;;  %v8294_v26 = vld [vmem:[#allocation98_spill] sm:$0xff] }
 0xa18   :  { %3771 = vmatpush1.bf16.msra.mxu0 %v8252_v35  ;;  %3812 = vmatpush1.bf16.msra.mxu1 %v8253_v14  ;;  %v8297_v35 = vld [vmem:[#allocation39_spill] sm:$0xff]  ;;  %v8298_v14 = vld [vmem:[#allocation81_spill] sm:$0xff] }
 0xa19   :  { %3772 = vmatprep.subr.bf16.mxu0 %v8254_v10  ;;  %3813 = vmatprep.subr.bf16.mxu1 %v8255_v12  ;;  %v8299_v10 = vld [vmem:[#allocation40_spill] sm:$0xff]  ;;  %v8300_v12 = vld [vmem:[#allocation53_spill] sm:$0xff] }
 0xa1a   :  { %3802 = vmatprep.mubr.bf16.mxu0 %v7843_v0  ;;  %3843 = vmatprep.mubr.bf16.mxu1 %v7843_v0 }
 0xa1c   :  { %3773 = vmatpush1.bf16.msra.mxu0 %v8256_v1  ;;  %3814 = vmatpush1.bf16.msra.mxu1 %v8257_v36  ;;  %v8301_v1 = vld [vmem:[#allocation54_spill] sm:$0xff]  ;;  %v8302_v36 = vld [vmem:[#allocation55_spill] sm:$0xff] }
 0xa1d   :  { %3774 = vmatprep.subr.bf16.mxu0 %v8258_v55  ;;  %3815 = vmatprep.subr.bf16.mxu1 %v8259_v28  ;;  %v8303_v55 = vld [vmem:[#allocation56_spill] sm:$0xff]  ;;  %v8304_v28 = vld [vmem:[#allocation57_spill] sm:$0xff] }
 0xa20   :  { %3775 = vmatpush1.bf16.msra.mxu0 %v8294_v26  ;;  %3816 = vmatpush1.bf16.msra.mxu1 %v8295_v2 }
 0xa21   :  { %3776 = vmatprep.subr.bf16.mxu0 %v8296_v27  ;;  %3817 = vmatprep.subr.bf16.mxu1 %v8297_v35 }
 0xa24   :  { %3777 = vmatpush1.bf16.msra.mxu0 %v8298_v14  ;;  %3818 = vmatpush1.bf16.msra.mxu1 %v8299_v10 }
 0xa25   :  { %3778 = vmatprep.subr.bf16.mxu0 %v8300_v12  ;;  %3819 = vmatprep.subr.bf16.mxu1 %v8301_v1 }
 0xa28   :  { %3779 = vmatpush1.bf16.msra.mxu0 %v8302_v36  ;;  %3820 = vmatpush1.bf16.msra.mxu1 %v8303_v55 }
 0xa29   :  { %3780 = vmatprep.subr.bf16.mxu0 %v8304_v28  ;;  %3821 = vmatprep.subr.bf16.mxu1 %v8305_v18 }
 0xa2c   :  { %3781 = vmatpush1.bf16.msra.mxu0 %v8306_v8  ;;  %3822 = vmatpush1.bf16.msra.mxu1 %v8307_v4 }
 0xa2d   :  { %3782 = vmatprep.subr.bf16.mxu0 %v8308_v41  ;;  %3823 = vmatprep.subr.bf16.mxu1 %v8309_v5 }
 0xa30   :  { %3783 = vmatpush1.bf16.msra.mxu0 %v8310_v31  ;;  %3824 = vmatpush1.bf16.msra.mxu1 %v8311_v56 }
 0xa31   :  { %3784 = vmatprep.subr.bf16.mxu0 %v8312_v47  ;;  %3825 = vmatprep.subr.bf16.mxu1 %v8313_v29 }
 0xa34   :  { %3785 = vmatpush1.bf16.msra.mxu0 %v8314_v52  ;;  %3826 = vmatpush1.bf16.msra.mxu1 %v8315_v54 }
 0xa35   :  { %3853 = vmatprep.subr.bf16.mxu0 %v8316_v7  ;;  %3894 = vmatprep.subr.bf16.mxu1 %v8317_v24 }
 0xaca   :  { %v3610_v19 = vpop.f32.mrb[104].mxu0  ;;  %v3651_v53 = vpop.f32.mrb[112].mxu1 }
 0xacb   :  { %v3612_v26 = vpop.f32.mrb[105].mxu0  ;;  %v3653_v2 = vpop.f32.mrb[113].mxu1 }
 0xacc   :  { %v3614_v27 = vpop.f32.mrb[106].mxu0  ;;  %v3655_v35 = vpop.f32.mrb[114].mxu1 }
 0xacd   :  { %v3615_v14 = vpop.f32.mrb[107].mxu0  ;;  %v3656_v10 = vpop.f32.mrb[115].mxu1 }
 0xaea   :  { %v3692_v12 = vpop.f32.mrb[108].mxu0  ;;  %v3733_v1 = vpop.f32.mrb[116].mxu1 }
 0xaeb   :  { %v3693_v36 = vadd.f32 %v3692_v12, %v3610_v19  ;;  %v3734_v55 = vadd.f32 %v3733_v1, %v3651_v53  ;;  %v3694_v28 = vpop.f32.mrb[109].mxu0  ;;  %v3735_v18 = vpop.f32.mrb[117].mxu1 }
 0xaec   :  { %v3695_v8 = vadd.f32 %v3694_v28, %v3612_v26  ;;  %v3736_v4 = vadd.f32 %v3735_v18, %v3653_v2  ;;  %v3696_v41 = vpop.f32.mrb[110].mxu0  ;;  %v3737_v5 = vpop.f32.mrb[118].mxu1 }
 0xaed   :  { %v3740_v31 = vadd.f32 %v3693_v36, %v7979_v16  ;;  %v3697_v56 = vpop.f32.mrb[111].mxu0  ;;  %v3738_v47 = vpop.f32.mrb[119].mxu1  ;;  %v3742_v7 = vadd.f32 %v3734_v55, %v7981_v15 }
 0xaee   :  { %v3741_v29 = vadd.f32 %v3695_v8, %v7980_v3  ;;  %v3743_v24 = vadd.f32 %v3736_v4, %v7982_v33 }
 0xaef   :  { %v4351_v52 = vmul.f32 -1.442695, %v3740_v31  ;;  %v4353_v19 = vmul.f32 -1.442695, %v3742_v7 }
 0xaf0   :  { %v4352_v54 = vmul.f32 -1.442695, %v3741_v29 }
 0xaf1   :  { %4906 = vpow2.f32 %v4351_v52 }
 0xaf2   :  { %4908 = vpow2.f32 %v4352_v54 }
 0xaf3   :  { %4910 = vtanh.f32 %v3743_v24 }
 0xaf4   :  { %4912 = vpow2.f32 %v4353_v19 }
 0xafb   :  { %v4907_v53 = vpop.eup %4906 }
 0xafc   :  { %v3753_v26 = vadd.f32 1.0, %v4907_v53  ;;  %v4909_v2 = vpop.eup %4908 }
 0xafd   :  { %v3754_v27 = vadd.f32 1.0, %v4909_v2  ;;  %v4911_v35 = vpop.eup %4910 }
 0xafe   :  { %4914 = vrcp.f32 %v3753_v26  ;;  %v4913_v14 = vpop.eup %4912 }
 0xaff   :  { %4916 = vrcp.f32 %v3754_v27  ;;  %v3755_v36 = vadd.f32 1.0, %v4913_v14 }
 0xb01   :  { %4918 = vrcp.f32 %v3755_v36 }
 0xb08   :  { %v4915_v10 = vpop.eup %4914 }
 0xb09   :  { %v3764_v12 = vmul.f32 %v4915_v10, %v4911_v35  ;;  %v4917_v1 = vpop.eup %4916 }
 0xb0a   :  { %v3763_v28 = vmul.f32 %v4917_v1, %v7234_v30  ;;  %v7383_v1 = vld [vmem:[%s7448_s8] ss:$0 sm:$0xff]  ;;  %s5353_s8 = smov [#allocation16]  }
 0xb0b   :  { %v4919_v18 = vpop.eup %4918  ;;  %s4136_s1 = sshll.u32 %s5353_s8, 4  ;;  %s4137_s1 = int_to_ptr.vmem [resolvable:$true] %s4136_s1 }
 0xb0c   :  { %v7322_v55 = vadd.f32 %v3764_v12, %v3763_v28  ;;  %s5262_s19 = scalar_lea.vmem %s4137_s1, 256  ;;  %p5267_p7 = scmp.lt.s32.totalorder %s4137_s1, %s4137_s1 }
 0xb0d   :  { %p5263_p6 = scmp.ne.s32.totalorder %s4137_s1, %s5262_s19  ;;  %p5268_p8 = scmp.lt.s32.totalorder %s5262_s19, %s5262_s19 }
 0xb0e   :  { %4920 = vtanh.f32 %v7322_v55 }
 0xb0f   :  { %p5269_p9 = por %p5268_p8, %p5267_p7 }
 0xb11   :  { %p5270_p10 = pnand %p5269_p9, %p5263_p6 }
 0xb18   :  { %v4921_v8 = vpop.eup %4920 }
 0xb19   :  { %v7325_v4 = vmul.f32 %v4921_v8, %v4919_v18 }
 0xb1b   :  { %v3769_v41 = vpack.c.bf16 %v7325_v4, %v7325_v4 }
 0xb1d   :  { %3803 = vmatmul.mubr.bf16.vlgmr.msra.gmra.mrb[112].mxu0 %v3769_v41  ;;  %3844 = vmatmul.mubr.bf16.vlgmr.msra.gmra.mrb[120].mxu1 %v3769_v41 }
 0xb1e   :  { %3854 = vmatpush1.bf16.msra.mxu0 %v7054_v13  ;;  %3895 = vmatpush1.bf16.msra.mxu1 %v7057_v17  ;;  %v3852_v13 = vpack.c.bf16 %v7274_v44, %v7274_v44  ;;  %v5351_v17 = vmov 0.0  }
 0xb1f   :  { %3855 = vmatprep.subr.bf16.mxu0 %v7060_v42  ;;  %3896 = vmatprep.subr.bf16.mxu1 %v7063_v6  ;;  %v4643_v42 = vld [vmem:[#allocation13 + $0x8] sm:$0xff]   ;;  %v4644_v6 = vld [vmem:[#allocation13 + $0x10] sm:$0xff]  }
 0xb20   :  { %3885 = vmatprep.mubr.bf16.mxu0 %v7843_v0  ;;  %3926 = vmatprep.mubr.bf16.mxu1 %v7843_v0  ;;  %v4642_v0 = vld [vmem:[#allocation13] sm:$0xff]  }
 0xb22   :  { %3856 = vmatpush1.bf16.msra.mxu0 %v7068_v50  ;;  %3897 = vmatpush1.bf16.msra.mxu1 %v7071_v43  ;;  %v4646_v50 = vld [vmem:[#allocation13 + $0x20] sm:$0xff]   ;;  %v4647_v43 = vld [vmem:[#allocation13 + $0x28] sm:$0xff]  }
 0xb23   :  { %3857 = vmatprep.subr.bf16.mxu0 %v7074_v23  ;;  %3898 = vmatprep.subr.bf16.mxu1 %v7077_v34  ;;  %v4648_v23 = vld [vmem:[#allocation13 + $0x30] sm:$0xff]   ;;  %v4649_v34 = vld [vmem:[#allocation13 + $0x38] sm:$0xff]  }
 0xb26   :  { %3858 = vmatpush1.bf16.msra.mxu0 %v7080_v48  ;;  %3899 = vmatpush1.bf16.msra.mxu1 %v7083_v9  ;;  %v8318_v48 = vld [vmem:[#allocation65_spill] sm:$0xff] }
 0xb27   :  { %3859 = vmatprep.subr.bf16.mxu0 %v7086_v38  ;;  %3900 = vmatprep.subr.bf16.mxu1 %v7089_v21  ;;  %v8319_v9 = vld [vmem:[#allocation93_spill] sm:$0xff]  ;;  %v8320_v21 = vld [vmem:[#allocation66_spill] sm:$0xff] }
 0xb28   :  { %v3979_v38 = vpack.c.bf16 %v8319_v9, %v8318_v48 }
 0xb2a   :  { %3860 = vmatpush1.bf16.msra.mxu0 %v7093_v61  ;;  %3901 = vmatpush1.bf16.msra.mxu1 %v7096_v60  ;;  %v8321_v61 = vld [vmem:[#allocation82_spill] sm:$0xff] }
 0xb2b   :  { %3861 = vmatprep.subr.bf16.mxu0 %v7101_v49  ;;  %3902 = vmatprep.subr.bf16.mxu1 %v7104_v11  ;;  %v3980_v60 = vpack.c.bf16 %v8321_v61, %v8320_v21  ;;  %v8322_v49 = vld [vmem:[#allocation71_spill] sm:$0xff] }
 0xb2c   :  { %v8323_v11 = vld [vmem:[#allocation63_spill] sm:$0xff] }
 0xb2e   :  { %3862 = vmatpush1.bf16.msra.mxu0 %v8286_v58  ;;  %3903 = vmatpush1.bf16.msra.mxu1 %v8287_v22 }
 0xb2f   :  { %3863 = vmatprep.subr.bf16.mxu0 %v8288_v63  ;;  %3904 = vmatprep.subr.bf16.mxu1 %v8289_v46 }
 0xb32   :  { %3864 = vmatpush1.bf16.msra.mxu0 %v8290_v62  ;;  %3905 = vmatpush1.bf16.msra.mxu1 %v8291_v37 }
 0xb33   :  { %3865 = vmatprep.subr.bf16.mxu0 %v8292_v51  ;;  %3906 = vmatprep.subr.bf16.mxu1 %v8293_v45 }
 0xb36   :  { %3866 = vmatpush1.bf16.msra.mxu0 %v7131_v59  ;;  %3907 = vmatpush1.bf16.msra.mxu1 %v7134_v32 }
 0xb37   :  { %3867 = vmatprep.subr.bf16.mxu0 %v7138_v20  ;;  %3908 = vmatprep.subr.bf16.mxu1 %v7141_v57  ;;  %v3981_v20 = vpack.c.bf16 %v8323_v11, %v8322_v49 }
 0xb3a   :  { %3868 = vmatpush1.bf16.msra.mxu0 %v7144_v39  ;;  %3909 = vmatpush1.bf16.msra.mxu1 %v7147_v25  ;;  %v4645_v39 = vld [vmem:[#allocation13 + $0x18] sm:$0xff]   ;;  %v3982_v25 = vpack.c.bf16 %v7325_v4, %v7239_v40 }
 0xb3b   :  { %4379 = vmatprep.subr.bf16.mxu0 %v5351_v17 }
 0xb3d   :  { %3886 = vmatmul.mubr.bf16.vlgmr.msra.gmra.mrb[116].mxu0 %v3852_v13  ;;  %3927 = vmatmul.mubr.bf16.vlgmr.msra.gmra.mrb[124].mxu1 %v3852_v13 }
 0xb3e   :  { %4380 = vmatpush3.bf16.msra.mxu0 %v4642_v0  ;;  %4395 = vmatprep.mubr.msk.bf16.mxu0 %vm5352_vm0, %v5351_v17 }
 0xb3f   :  { %4381 = vmatprep.subr.bf16.mxu0 %v5351_v17 }
 0xb42   :  { %4382 = vmatpush3.bf16.msra.mxu0 %v4643_v42 }
 0xb43   :  { %4383 = vmatprep.subr.bf16.mxu0 %v5351_v17 }
 0xb46   :  { %4384 = vmatpush3.bf16.msra.mxu0 %v4644_v6 }
 0xb47   :  { %4385 = vmatprep.subr.bf16.mxu0 %v5351_v17 }
 0xb4a   :  { %4386 = vmatpush3.bf16.msra.mxu0 %v4645_v39 }
 0xb4b   :  { %4387 = vmatprep.subr.bf16.mxu0 %v5351_v17 }
 0xb4e   :  { %4388 = vmatpush3.bf16.msra.mxu0 %v4646_v50 }
 0xb4f   :  { %4389 = vmatprep.subr.bf16.mxu0 %v5351_v17 }
 0xb52   :  { %4390 = vmatpush3.bf16.msra.mxu0 %v4647_v43 }
 0xb53   :  { %4391 = vmatprep.subr.bf16.mxu0 %v5351_v17 }
 0xb56   :  { %4392 = vmatpush3.bf16.msra.mxu0 %v4648_v23 }
 0xb57   :  { %4393 = vmatprep.subr.bf16.mxu0 %v5351_v17 }
 0xb5a   :  { %4394 = vmatpush3.bf16.msra.mxu0 %v4649_v34 }
 0xb5d   :  { %4396 = vmatmul.mubr.bf16.vlgmr.msra.gmra.mrb[120].mxu0 %v3979_v38 }
 0xb5e   :  { %4399 = vmatprep.mubr.msk.bf16.mxu0 %vm5352_vm0, %v5351_v17 }
 0xb65   :  { %4400 = vmatmul.mubr.bf16.gmra.mrb[124].mxu0 %v3980_v60 }
 0xb66   :  { %4403 = vmatprep.mubr.msk.bf16.mxu0 %vm5352_vm0, %v5351_v17 }
 0xb6d   :  { %4404 = vmatmul.mubr.bf16.gmra.mrb[128].mxu0 %v3981_v20 }
 0xb6e   :  { %4407 = vmatprep.mubr.msk.bf16.mxu0 %vm5352_vm0, %v5351_v17 }
 0xb75   :  { %4408 = vmatmul.mubr.bf16.gmra.mrb[132].mxu0 %v3982_v25 }
 0xb76   :  { %4411 = vmatprep.mubr.msk.bf16.mxu0 %vm5352_vm0, %v5351_v17 }
 0xbf0   :  { %v3804_v59 = vpop.f32.mrb[112].mxu0  ;;  %v3845_v32 = vpop.f32.mrb[120].mxu1 }
 0xbf1   :  { %v3806_v57 = vpop.f32.mrb[113].mxu0  ;;  %v3847_v30 = vpop.f32.mrb[121].mxu1 }
 0xbf2   :  { %v3808_v58 = vpop.f32.mrb[114].mxu0  ;;  %v3849_v22 = vpop.f32.mrb[122].mxu1 }
 0xbf3   :  { %v3809_v63 = vpop.f32.mrb[115].mxu0  ;;  %v3850_v46 = vpop.f32.mrb[123].mxu1 }
 0xc10   :  { %v3887_v62 = vpop.f32.mrb[116].mxu0  ;;  %v3928_v37 = vpop.f32.mrb[124].mxu1 }
 0xc11   :  { %v3888_v51 = vadd.f32 %v3887_v62, %v3804_v59  ;;  %v3929_v45 = vadd.f32 %v3928_v37, %v3845_v32  ;;  %v3889_v44 = vpop.f32.mrb[117].mxu0  ;;  %v3930_v5 = vpop.f32.mrb[125].mxu1 }
 0xc12   :  { %v3890_v31 = vadd.f32 %v3889_v44, %v3806_v57  ;;  %v3931_v56 = vadd.f32 %v3930_v5, %v3847_v30  ;;  %v3891_v40 = vpop.f32.mrb[118].mxu0  ;;  %v3932_v47 = vpop.f32.mrb[126].mxu1 }
 0xc13   :  { %v3935_v29 = vadd.f32 %v3888_v51, %v7979_v16  ;;  %v3892_v52 = vpop.f32.mrb[119].mxu0  ;;  %v3933_v54 = vpop.f32.mrb[127].mxu1  ;;  %v3937_v53 = vadd.f32 %v3929_v45, %v7981_v15 }
 0xc14   :  { %v3936_v7 = vadd.f32 %v3890_v31, %v7980_v3  ;;  %v3938_v26 = vadd.f32 %v3931_v56, %v7982_v33 }
 0xc15   :  { %v4354_v24 = vmul.f32 -1.442695, %v3935_v29  ;;  %v4356_v2 = vmul.f32 -1.442695, %v3937_v53 }
 0xc16   :  { %v4355_v19 = vmul.f32 -1.442695, %v3936_v7 }
 0xc17   :  { %4922 = vpow2.f32 %v4354_v24 }
 0xc18   :  { %4924 = vpow2.f32 %v4355_v19 }
 0xc19   :  { %4926 = vtanh.f32 %v3938_v26 }
 0xc1a   :  { %4928 = vpow2.f32 %v4356_v2 }
 0xc21   :  { %v4923_v27 = vpop.eup %4922 }
 0xc22   :  { %v3948_v35 = vadd.f32 1.0, %v4923_v27  ;;  %v4925_v14 = vpop.eup %4924 }
 0xc23   :  { %v3949_v16 = vadd.f32 1.0, %v4925_v14  ;;  %v4927_v10 = vpop.eup %4926 }
 0xc24   :  { %4930 = vrcp.f32 %v3948_v35  ;;  %v4929_v12 = vpop.eup %4928 }
 0xc25   :  { %4932 = vrcp.f32 %v3949_v16  ;;  %v3950_v33 = vadd.f32 1.0, %v4929_v12 }
 0xc27   :  { %4934 = vrcp.f32 %v3950_v33 }
 0xc2e   :  { %v4931_v3 = vpop.eup %4930 }
 0xc2f   :  { %v3959_v15 = vmul.f32 %v4931_v3, %v4927_v10  ;;  %v4933_v36 = vpop.eup %4932 }
 0xc30   :  { %v4072_v28 = vpop.f32.mrb[120].mxu0  ;;  %v3958_v18 = vmul.f32 %v4933_v36, %v7322_v55 }
 0xc31   :  { %v4073_v8 = vadd.f32 %v7383_v1, %v4072_v28  ;;  %v4397_v4 = vpop.f32.mrb[121].mxu0  ;;  %v4935_v23 = vpop.eup %4934 }
 0xc32   :  { %v4075_v41 = vpop.f32.mrb[122].mxu0  ;;  %v3960_v0 = vadd.f32 %v3959_v15, %v3958_v18 }
 0xc33   :  { %4110 = vst [vmem:[#allocation15] sm:$0xff] %v4073_v8  ;;  %v4076_v13 = vadd.f32 %v7383_v1, %v4075_v41  ;;  %v4398_v17 = vpop.f32.mrb[123].mxu0 }
 0xc34   :  { %3969 = vst [vmem:[#allocation18 + $0x8] sm:$0xff] %v3960_v0  ;;  %4936 = vtanh.f32 %v3960_v0 }
 0xc35   :  { %4111 = vst [vmem:[#allocation15 + $0x8] sm:$0xff] %v4076_v13 }
 0xc38   :  { %v4080_v42 = vpop.f32.mrb[124].mxu0 }
 0xc39   :  { %v4081_v6 = vadd.f32 %v7383_v1, %v4080_v42  ;;  %v4401_v39 = vpop.f32.mrb[125].mxu0 }
 0xc3a   :  { %v4083_v50 = vpop.f32.mrb[126].mxu0 }
 0xc3b   :  { %4112 = vst [vmem:[#allocation15 + $0x10] sm:$0xff] %v4081_v6  ;;  %v4084_v55 = vadd.f32 %v7383_v1, %v4083_v50  ;;  %v4402_v43 = vpop.f32.mrb[127].mxu0 }
 0xc3d   :  { %4113 = vst [vmem:[#allocation15 + $0x18] sm:$0xff] %v4084_v55 }
 0xc3e   :  { %v4937_v34 = vpop.eup %4936 }
 0xc3f   :  { %v3962_v9 = vmul.f32 %v4937_v34, %v4935_v23 }
 0xc40   :  { %v4088_v48 = vpop.f32.mrb[128].mxu0 }
 0xc41   :  { %v4089_v38 = vadd.f32 %v7383_v1, %v4088_v48  ;;  %v4405_v21 = vpop.f32.mrb[129].mxu0  ;;  %3967 = vst [vmem:[#allocation16 + $0x8] sm:$0xff] %v3962_v9  ;;  %v3983_v60 = vpack.c.bf16 %v3962_v9, %v3962_v9 }
 0xc42   :  { %v4091_v61 = vpop.f32.mrb[130].mxu0 }
 0xc43   :  { %4114 = vst [vmem:[#allocation15 + $0x20] sm:$0xff] %v4089_v38  ;;  %v4092_v49 = vadd.f32 %v7383_v1, %v4091_v61  ;;  %v4406_v11 = vpop.f32.mrb[131].mxu0  ;;  %4412 = vmatmul.mubr.bf16.gmra.mrb[136].mxu0 %v3983_v60 }
 0xc45   :  { %4115 = vst [vmem:[#allocation15 + $0x28] sm:$0xff] %v4092_v49 }
 0xc48   :  { %v4096_v20 = vpop.f32.mrb[132].mxu0 }
 0xc49   :  { %v4097_v25 = vadd.f32 %v7383_v1, %v4096_v20  ;;  %v4409_v59 = vpop.f32.mrb[133].mxu0 }
 0xc4a   :  { %v4099_v32 = vpop.f32.mrb[134].mxu0 }
 0xc4b   :  { %4116 = vst [vmem:[#allocation15 + $0x30] sm:$0xff] %v4097_v25  ;;  %v4100_v57 = vadd.f32 %v7383_v1, %v4099_v32  ;;  %v4410_v30 = vpop.f32.mrb[135].mxu0 }
 0xc4d   :  { %4117 = vst [vmem:[#allocation15 + $0x38] sm:$0xff] %v4100_v57 }
 0xc4e   :  { %5273 = shalt.err (!%p5270_p10)
}
 0xc4f   :  { %s5274_s23 = scalar_lea.hbm %s7450_s10, 256 }
 0xc50   :  { %p5275_p11 = scmp.ne.s32.totalorder %s7450_s10, %s5274_s23  ;;  %p5278_p12 = scmp.lt.u32.totalorder %s5274_s23, %s7450_s10 }
 0xc52   :  { %p5280_p13 = pnand %p5278_p12, %p5275_p11 }
 0xc54   :  { %5283 = shalt.err (!%p5280_p13)
}
 0xc55   :  { %s5354_s25 = smov 128   ;;  %s5355_s26 = smov 8  }
 0xc56   :  { %4142 = dma.vmem_to_hbm [thread:$0]  %s4137_s1, 256, %s7450_s10, [#allocation17], %s5354_s25, %s5354_s25, %s5355_s26  }
 0xc57   :  { %s5356_s12 = smov [#allocation18]  }
 0xc58   :  { %s4148_s0 = sshll.u32 %s5356_s12, 4  ;;  %s4149_s0 = int_to_ptr.vmem [resolvable:$true] %s4148_s0 }
 0xc59   :  { %s5284_s15 = scalar_lea.vmem %s4149_s0, 256  ;;  %p5289_p1 = scmp.lt.s32.totalorder %s4149_s0, %s4149_s0 }
 0xc5a   :  { %p5285_p0 = scmp.ne.s32.totalorder %s4149_s0, %s5284_s15  ;;  %p5290_p2 = scmp.lt.s32.totalorder %s5284_s15, %s5284_s15 }
 0xc5c   :  { %p5291_p3 = por %p5290_p2, %p5289_p1 }
 0xc5e   :  { %p5292_p4 = pnand %p5291_p3, %p5285_p0 }
 0xc60   :  { %5295 = shalt.err (!%p5292_p4)
}
 0xc61   :  { %s5296_s17 = scalar_lea.hbm %s7451_s11, 256 }
 0xc62   :  { %p5297_p5 = scmp.ne.s32.totalorder %s7451_s11, %s5296_s17  ;;  %p5300_p6 = scmp.lt.u32.totalorder %s5296_s17, %s7451_s11 }
 0xc64   :  { %p5302_p7 = pnand %p5300_p6, %p5297_p5 }
 0xc66   :  { %5305 = shalt.err (!%p5302_p7)
}
 0xc67   :  { %4154 = dma.vmem_to_hbm [thread:$0]  %s4149_s0, 256, %s7451_s11, [#allocation17], %s5354_s25, %s5354_s25, %s5355_s26  }
 0xc68   :  { %s5357_s4 = smov [#allocation15]  }
 0xc69   :  { %s4124_s6 = sshll.u32 %s5357_s4, 4  ;;  %s4125_s6 = int_to_ptr.vmem [resolvable:$true] %s4124_s6 }
 0xc6a   :  { %s5306_s13 = scalar_lea.vmem %s4125_s6, 1152  ;;  %p5311_p9 = scmp.lt.s32.totalorder %s4125_s6, %s4125_s6 }
 0xc6b   :  { %p5307_p8 = scmp.ne.s32.totalorder %s4125_s6, %s5306_s13  ;;  %p5312_p10 = scmp.lt.s32.totalorder %s5306_s13, %s5306_s13 }
 0xc6d   :  { %p5313_p11 = por %p5312_p10, %p5311_p9 }
 0xc6f   :  { %p5314_p12 = pnand %p5313_p11, %p5307_p8 }
 0xd16   :  { %v4104_v58 = vpop.f32.mrb[136].mxu0 }
 0xd17   :  { %v4105_v22 = vadd.f32 %v7383_v1, %v4104_v58  ;;  %v4413_v63 = vpop.f32.mrb[137].mxu0 }
 0xd18   :  { %v4107_v46 = vpop.f32.mrb[138].mxu0 }
 0xd19   :  { %4118 = vst [vmem:[#allocation15 + $0x40] sm:$0xff] %v4105_v22  ;;  %v4414_v62 = vpop.f32.mrb[139].mxu0 }
 0xd1a   :  { %5317 = shalt.err (!%p5314_p12)
}
 0xd1b   :  { %s5318_s11 = scalar_lea.hbm %s7449_s9, 1152 }
 0xd1c   :  { %p5319_p13 = scmp.ne.s32.totalorder %s7449_s9, %s5318_s11  ;;  %p5322_p0 = scmp.lt.u32.totalorder %s5318_s11, %s7449_s9 }
 0xd1e   :  { %p5324_p1 = pnand %p5322_p0, %p5319_p13 }
 0xd20   :  { %5327 = shalt.err (!%p5324_p1)
}
 0xd21   :  { %4130 = dma.vmem_to_hbm [thread:$0]  %s4125_s6, 1152, %s7449_s9, [#allocation6], %s5354_s25, %s5354_s25, %s5355_s26  }
 0xd22   :  { %5336 = dma.done.wait [#allocation6], 1152  }
 0xd23   :  { %5337 = vsyncadd [#allocation6], 4294966144 }
 0xd24   :  { %5338 = dma.done.wait [#allocation17], 512  }
 0xd25   :  { %5339 = vsyncadd [#allocation17], 4294966784 }
 0xd26   :  { %4164 = vsyncpa [#allocation5], 1 }
 0xd27   :  { %4165 = vsyncpa [#allocation8], 1 }
 0xd28   :  { %4166 = vsyncpa [#allocation11], 1 }
 0xd29   :  { %4167 = vsyncpa [#allocation14], 1 }
 0xd2a   :  { %4168 = vsyncpa [#allocation6], 1 }
 0xd2b   :  { %4169 = vsyncpa [#allocation17], 1 }

</bundles_post_ra>
